<compile_context>
chip_gen: v7x
topology: tpu7x:2x2x1
jax: 0.10.0
libtpu: 0.0.40
codegen_flags: <defaults>
</compile_context>

<pallas_src>
import math

import jax
import jax.numpy as jnp
from jax import lax
from jax.experimental import pallas as pl
from jax.experimental.pallas import tpu as pltpu

MIN_NORM = 1e-15
BALL_EPS = 4e-3            # Poincare-ball projection epsilon (geoopt / HGCN)
ARTANH_EPS = 1e-6          # artanh clip (robust in f32 near +-1)
LANE = 128                 # vreg lane width; channel dims padded to this


def _pad_to(n, m):
    return ((n + m - 1) // m) * m


# ---------- optimized hyperbolic helpers used INSIDE the kernels -------------
def _artanh(x):
    x = jnp.clip(x, -1.0 + ARTANH_EPS, 1.0 - ARTANH_EPS)
    return 0.5 * (jnp.log1p(x) - jnp.log1p(-x))


def _norm_invnorm(x):
    sq = jnp.maximum(jnp.sum(x * x, axis=-1, keepdims=True), MIN_NORM * MIN_NORM)
    inv_n = lax.rsqrt(sq)
    return sq * inv_n, inv_n       # (||x||, 1/||x||), both clamped


def _logmap0_fast(p, sqrt_c):
    n, inv_n = _norm_invnorm(p)
    return p * (_artanh(sqrt_c * n) * inv_n * (1.0 / sqrt_c))


def _concat_scale(xs, sqrt_c):
    # logmap0 scale of the (virtual) 'eucl' concat: the norm is separable over the
    # lane-padded segments, so no in-kernel concatenate is needed.
    sq = jnp.sum(xs[0] * xs[0], axis=-1, keepdims=True)
    for xk in xs[1:]:
        sq = sq + jnp.sum(xk * xk, axis=-1, keepdims=True)
    sq = jnp.maximum(sq, MIN_NORM * MIN_NORM)
    inv_n = lax.rsqrt(sq)
    n = sq * inv_n
    return _artanh(sqrt_c * n) * inv_n * (1.0 / sqrt_c)


def _expmap0_proj_fast(h, sqrt_c):
    # proj(expmap0(h)); ||expmap0(h)|| == tanh(sqrt_c*||h||)/sqrt_c analytically.
    inv_sqrt_c = 1.0 / sqrt_c
    maxnorm = (1.0 - BALL_EPS) * inv_sqrt_c
    n, inv_n = _norm_invnorm(h)
    t = jnp.tanh(sqrt_c * n)
    u = h * (t * inv_n * inv_sqrt_c)
    n_u = jnp.maximum(t * inv_sqrt_c, MIN_NORM)
    return u * jnp.minimum(1.0, maxnorm / n_u)


# ------------------------------- kernels --------------------------------------
def make_logmap0_kernel(c):
    sqrt_c = math.sqrt(c)

    def kernel(x_ref, o_ref):
        o_ref[...] = _logmap0_fast(x_ref[...], sqrt_c).astype(o_ref.dtype)

    return kernel


def _conv_core(a_ref, xtf_ref, wr_ref, wn_ref, b_ref, tm, sqrt_c):
    i = pl.program_id(0)
    row0 = pl.multiple_of(i * tm, tm)
    xt_tile = xtf_ref[pl.ds(row0, tm), :]                 # self (root) rows
    # Adjacency arrives bf16 (halved HBM stream); widen for exact f32 accumulation.
    a = a_ref[...].astype(jnp.float32)
    # neighbor mean-aggregation: dominant matmul, K = N (streamed A tile)
    agg = jnp.dot(a, xtf_ref[...], preferred_element_type=jnp.float32)
    # two back-to-back matmuls into one accumulator (fused layer update)
    h = jnp.dot(xt_tile, wr_ref[...], preferred_element_type=jnp.float32)
    h = h + jnp.dot(agg, wn_ref[...], preferred_element_type=jnp.float32)
    h = h + b_ref[...]
    return _expmap0_proj_fast(h, sqrt_c)


def make_conv_kernel(c, tm):
    # Intermediate conv layer: emits cur and its logmap0 (xt for the next layer).
    sqrt_c = math.sqrt(c)

    def kernel(a_ref, xtf_ref, wr_ref, wn_ref, b_ref, cur_ref, xto_ref):
        cur = _conv_core(a_ref, xtf_ref, wr_ref, wn_ref, b_ref, tm, sqrt_c)
        cur_ref[...] = cur.astype(cur_ref.dtype)
        xto_ref[...] = _logmap0_fast(cur, sqrt_c).astype(xto_ref.dtype)

    return kernel


def make_conv_final_kernel(c, tm, num_prev):
    # Last conv layer fused with the final HypLinear: the last layer's cur never
    # hits HBM and its logmap0 is never computed (no consumer).
    sqrt_c = math.sqrt(c)

    def kernel(*refs):
        a_ref, xtf_ref, wr_ref, wn_ref, b_ref = refs[:5]
        segs = refs[5:5 + num_prev]                        # x tile + earlier cur tiles
        fws = refs[5 + num_prev:6 + 2 * num_prev]          # final-weight segments
        fb_ref = refs[6 + 2 * num_prev]
        o_ref = refs[7 + 2 * num_prev]

        cur_last = _conv_core(a_ref, xtf_ref, wr_ref, wn_ref, b_ref, tm, sqrt_c)
        xs = [s[...] for s in segs] + [cur_last]
        scale = _concat_scale(xs, sqrt_c)
        acc = jnp.dot(xs[0], fws[0][...], preferred_element_type=jnp.float32)
        for xk, wk in zip(xs[1:], fws[1:]):
            acc = acc + jnp.dot(xk, wk[...], preferred_element_type=jnp.float32)
        # per-row scale is diagonal -> factor it out of the matmuls (exact).
        h = fb_ref[...] + scale * acc
        o_ref[...] = _expmap0_proj_fast(h, sqrt_c).astype(o_ref.dtype)

    return kernel


# ------------------------------- wrapper ---------------------------------------
def _row_spec(tm, cols):
    return pl.BlockSpec((tm, cols), lambda i: (i, 0))


def _resident_spec(shape):
    # Constant-index block: DMA'd once and kept resident; single-buffer it to halve
    # its VMEM footprint (default pipelining would still double-buffer it).
    return pl.BlockSpec(shape, lambda i: (0,) * len(shape),
                        pipeline_mode=pl.Buffered(1))


def _vmem_budget_bytes():
    # Per-generation scoped-VMEM budget: ~3/4 of physical capacity, i.e. ~96 MiB on
    # 128 MiB parts (v5e/v6e) and ~48 MiB on v7x's 64 MiB TensorCores.
    try:
        cap = int(pltpu.get_tpu_info().vmem_capacity_bytes)
    except Exception:
        cap = 64 * 1024 * 1024          # conservative fallback (v7x-sized)
    budget = (cap * 3) // 4
    return max(32 * 1024 * 1024, min(budget, 112 * 1024 * 1024))


def _conv_call_vmem(tm, n_pad, cin_pad, cp_out, a_bytes, fused_seg_pads=(), fw_rows=0):
    a_tile = 2 * tm * n_pad * a_bytes                     # streamed A, double-buffered
    xt_res = n_pad * cin_pad * 4                          # resident xt, Buffered(1)
    w_res = (2 * cin_pad + 1) * cp_out * 4                # W_root, W_nbr, bias
    segs = sum(2 * tm * p * 4 for p in fused_seg_pads)    # streamed xs tiles (fused)
    fw_res = (fw_rows + 1) * cp_out * 4 if fused_seg_pads else 0
    n_outs = 1 if fused_seg_pads else 2
    outs = n_outs * 2 * tm * cp_out * 4                   # outputs, double-buffered
    return a_tile + xt_res + w_res + segs + fw_res + outs


def _pick_conv_tm(n_pad, needs_fn, budget):
    # 256-row tiles better fill the 2x256x256 MXU on v6e/v7x; fall back to 128 when
    # the VMEM estimate does not fit the budget.
    # TODO(synk): on v5e (4x128x128 MXU) tm=128 already fills the array.
    for tm in (256, 128):
        if n_pad % tm == 0 and needs_fn(tm) <= budget:
            return tm
    return 128


def hyperbolic_rel_cnn_forward(x, adj, conv_params, final_w, final_b, c):
    """x: [N, in_ch] on the ball, adj: [N, N] row-normalized, conv_params: list of
    (W_root [Cin,Cout], W_nbr [Cin,Cout], b [1,Cout]); final_w: [Ccat, Cout]."""
    N, in_ch = x.shape
    out_ch = final_w.shape[1]
    num_layers = len(conv_params)
    assert num_layers >= 1

    cp_in = _pad_to(in_ch, LANE)
    cp_out = _pad_to(out_ch, LANE)
    n_pad = _pad_to(N, 256)            # multiple of both candidate row tiles
    a_bytes = 2                        # adjacency streamed in bf16

    budget = _vmem_budget_bytes()
    fw_rows = cp_in + num_layers * cp_out
    fused_cin = cp_in if num_layers == 1 else cp_out
    fused_segs = [cp_in] + [cp_out] * (num_layers - 1)

    def needs(tm):
        conv_need = _conv_call_vmem(tm, n_pad, max(cp_in, cp_out), cp_out, a_bytes)
        fused_need = _conv_call_vmem(tm, n_pad, fused_cin, cp_out, a_bytes,
                                     fused_seg_pads=fused_segs, fw_rows=fw_rows)
        return max(conv_need, fused_need)

    tm = _pick_conv_tm(n_pad, needs, budget)
    grid = (n_pad // tm,)

    cparams = pltpu.CompilerParams(
        dimension_semantics=("parallel",),     # shard row tiles across TCs (v7x)
        vmem_limit_bytes=budget)

    def pad2(a, rows, cols):
        return jnp.pad(a, ((0, rows - a.shape[0]), (0, cols - a.shape[1])))

    x_pad = pad2(x.astype(jnp.float32), n_pad, cp_in)
    adj_pad = pad2(adj.astype(jnp.float32), n_pad, n_pad).astype(jnp.bfloat16)

    # --- 1) xt0 = logmap0(x): purely mem-bound elementwise pass -> largest row tile.
    tm_elem = max(t for t in (1024, 512, 256, 128) if t <= n_pad and n_pad % t == 0)
    xt = pl.pallas_call(
        make_logmap0_kernel(c),
        out_shape=jax.ShapeDtypeStruct((n_pad, cp_in), jnp.float32),
        grid=(n_pad // tm_elem,),
        in_specs=[_row_spec(tm_elem, cp_in)],
        out_specs=_row_spec(tm_elem, cp_in),
        compiler_params=cparams,
    )(x_pad)

    # --- 2) intermediate conv layers: stream bf16 A row tiles; xt + weights resident.
    xs_tiles = [x_pad]
    cin_pad = cp_in
    for li in range(num_layers - 1):
        wr, wn, b = conv_params[li]
        wr_p = pad2(wr.astype(jnp.float32), cin_pad, cp_out)
        wn_p = pad2(wn.astype(jnp.float32), cin_pad, cp_out)
        b_p = pad2(b.astype(jnp.float32), 1, cp_out)
        cur, xt = pl.pallas_call(
            make_conv_kernel(c, tm),
            out_shape=(jax.ShapeDtypeStruct((n_pad, cp_out), jnp.float32),
                       jax.ShapeDtypeStruct((n_pad, cp_out), jnp.float32)),
            grid=grid,
            in_specs=[pl.BlockSpec((tm, n_pad), lambda i: (i, 0)),  # A tile (bf16)
                      _resident_spec((n_pad, cin_pad)),             # xt, all nodes
                      _resident_spec((cin_pad, cp_out)),            # W_root
                      _resident_spec((cin_pad, cp_out)),            # W_nbr
                      _resident_spec((1, cp_out))],                 # bias
            out_specs=(_row_spec(tm, cp_out), _row_spec(tm, cp_out)),
            compiler_params=cparams,
        )(adj_pad, xt, wr_p, wn_p, b_p)
        xs_tiles.append(cur)
        cin_pad = cp_out

    # --- 3) last conv layer fused with the final HypLinear on the virtual concat.
    wr, wn, b = conv_params[-1]
    wr_p = pad2(wr.astype(jnp.float32), cin_pad, cp_out)
    wn_p = pad2(wn.astype(jnp.float32), cin_pad, cp_out)
    b_p = pad2(b.astype(jnp.float32), 1, cp_out)

    seg_sizes = [in_ch] + [out_ch] * num_layers
    seg_pads = [cp_in] + [cp_out] * num_layers
    wf_segs = []
    off = 0
    for sz, prows in zip(seg_sizes, seg_pads):
        wf_segs.append(pad2(final_w[off:off + sz, :].astype(jnp.float32),
                            prows, cp_out))
        off += sz
    bf_p = pad2(final_b.astype(jnp.float32), 1, cp_out)

    num_prev = len(xs_tiles)                   # == num_layers
    in_specs = ([pl.BlockSpec((tm, n_pad), lambda i: (i, 0)),   # A tile (bf16)
                 _resident_spec((n_pad, cin_pad)),              # xt_{L-1}
                 _resident_spec((cin_pad, cp_out)),             # W_root
                 _resident_spec((cin_pad, cp_out)),             # W_nbr
                 _resident_spec((1, cp_out))]                   # bias
                + [_row_spec(tm, p) for p in seg_pads[:num_prev]]
                + [_resident_spec(w.shape) for w in wf_segs]
                + [_resident_spec((1, cp_out))])
    out_pad = pl.pallas_call(
        make_conv_final_kernel(c, tm, num_prev),
        out_shape=jax.ShapeDtypeStruct((n_pad, cp_out), jnp.float32),
        grid=grid,
        in_specs=in_specs,
        out_specs=_row_spec(tm, cp_out),
        compiler_params=cparams,
    )(adj_pad, xt, wr_p, wn_p, b_p, *xs_tiles, *wf_segs, bf_p)

    return out_pad[:N, :out_ch]


# ----------------------------- pure-JAX reference ----------------------------
def _ref_lnorm(v):
    return jnp.maximum(jnp.sqrt(jnp.sum(v * v, axis=-1, keepdims=True)), MIN_NORM)


def ref_logmap0(p, sqrt_c):
    n = _ref_lnorm(p)
    return _artanh(sqrt_c * n) * p / (sqrt_c * n)


def ref_expmap0(u, sqrt_c):
    n = _ref_lnorm(u)
    return jnp.tanh(sqrt_c * n) * u / (sqrt_c * n)


def ref_proj(x, sqrt_c):
    n = _ref_lnorm(x)
    maxnorm = (1.0 - BALL_EPS) / sqrt_c
    return jnp.where(n > maxnorm, x / n * maxnorm, x)


def reference_forward(x, adj, conv_params, final_w, final_b, c):
    sqrt_c = math.sqrt(c)
    xs = [x]
    cur = x
    for (wr, wn, b) in conv_params:
        xt = ref_logmap0(cur, sqrt_c)
        h = xt @ wr + (adj @ xt) @ wn + b
        cur = ref_proj(ref_expmap0(h, sqrt_c), sqrt_c)
        xs.append(cur)
    xcat = jnp.concatenate(xs, axis=-1)
    xt = ref_logmap0(xcat, sqrt_c)
    h = xt @ final_w + final_b
    return ref_proj(ref_expmap0(h, sqrt_c), sqrt_c)


# ------------------------------------ main ------------------------------------
if __name__ == "__main__":
    # Small, module-consistent shapes (N chosen so the row-tiled conv grid has >1
    # step even at tm=256).
    N = 512           # number of graph nodes
    IN_CH = 16        # in_channels
    OUT_CH = 32       # out_channels
    NUM_LAYERS = 2
    C = 1.0           # curvature
    E = 2048          # number of edges
    sqrt_c = math.sqrt(C)

    key = jax.random.PRNGKey(0)
    k_x, k_src, k_dst, *k_w = jax.random.split(key, 4 + 3 * NUM_LAYERS + 2)

    # Node features: map a small Euclidean vector onto the Poincare ball.
    x_eucl = 0.1 * jax.random.normal(k_x, (N, IN_CH), dtype=jnp.float32)
    x = ref_proj(ref_expmap0(x_eucl, sqrt_c), sqrt_c)

    # edge_index -> dense row-normalized adjacency (mean aggregation).
    src = jax.random.randint(k_src, (E,), 0, N)
    dst = jax.random.randint(k_dst, (E,), 0, N)
    adj = jnp.zeros((N, N), dtype=jnp.float32).at[dst, src].set(1.0)
    deg = jnp.maximum(jnp.sum(adj, axis=-1, keepdims=True), 1.0)
    adj = adj / deg

    # Deterministic parameter init (glorot-style normal, small bias).
    def glorot(k, fan_in, fan_out):
        scale = math.sqrt(2.0 / (fan_in + fan_out))
        return scale * jax.random.normal(k, (fan_in, fan_out), dtype=jnp.float32)

    conv_params = []
    cin = IN_CH
    ki = 0
    for _ in range(NUM_LAYERS):
        wr = glorot(k_w[ki], cin, OUT_CH)
        wn = glorot(k_w[ki + 1], cin, OUT_CH)
        b = 0.01 * jax.random.normal(k_w[ki + 2], (1, OUT_CH), dtype=jnp.float32)
        conv_params.append((wr, wn, b))
        cin = OUT_CH
        ki += 3

    cat_ch = IN_CH + NUM_LAYERS * OUT_CH          # cat == 'eucl'
    final_w = glorot(k_w[ki], cat_ch, OUT_CH)
    final_b = 0.01 * jax.random.normal(k_w[ki + 1], (1, OUT_CH), dtype=jnp.float32)

    # Init-only beta values (unused in forward for cat='eucl').
    def _beta(a, b):
        return math.exp(math.lgamma(a) + math.lgamma(b) - math.lgamma(a + b))
    _ = (_beta(IN_CH / 2.0, 1.0 / IN_CH),
         _beta(OUT_CH / 2.0, 1.0 / OUT_CH),
         _beta(cat_ch / 2.0, 1.0 / cat_ch))

    out = hyperbolic_rel_cnn_forward(x, adj, conv_params, final_w, final_b, C)
    out = jax.block_until_ready(out)

    ref = reference_forward(x, adj, conv_params, final_w, final_b, C)
    assert out.shape == (N, OUT_CH)
    assert bool(jnp.all(jnp.isfinite(out)))
    # Tolerance covers the bf16 adjacency cast plus matmul-precision /
    # reduction-order differences between the restructured (padded / segment-split)
    # kernel dots and the f32 XLA reference.
    assert bool(jnp.allclose(out, ref, atol=5e-3, rtol=5e-3))

    print("KERNEL_OK")
</pallas_src>

<mosaic_0001>
module attributes {stable_mosaic.version = 11 : i64} {
  func.func @kernel(%arg0: i32, %arg1: memref<512x128xf32, #tpu.memory_space<vmem>>, %arg2: memref<512x128xf32, #tpu.memory_space<vmem>>) attributes {dimension_semantics = [#tpu.dimension_semantics<parallel>], iteration_bounds = array<i64: 1>, scalar_prefetch = 0 : i64, scratch_operands = 0 : i64, tpu.core_type = #tpu.core_type<tc>, window_params = [{transform_indices = @transform_0, window_bounds = array<i64: 512, 128>}, {transform_indices = @transform_1, window_bounds = array<i64: 512, 128>}]} {
    %c0 = arith.constant 0 : index
    %c0_0 = arith.constant 0 : index
    %0 = vector.load %arg1[%c0, %c0_0] : memref<512x128xf32, #tpu.memory_space<vmem>>, vector<512x128xf32>
    %1 = arith.mulf %0, %0 : vector<512x128xf32>
    %cst = arith.constant dense<0.000000e+00> : vector<512xf32>
    %2 = vector.multi_reduction <add>, %1, %cst [1] : vector<512x128xf32> to vector<512xf32>
    %3 = vector.shape_cast %2 : vector<512xf32> to vector<512x1xf32>
    %cst_1 = arith.constant 1.000000e-30 : f32
    %4 = vector.broadcast %cst_1 : f32 to vector<512x1xf32>
    %5 = arith.maximumf %3, %4 : vector<512x1xf32>
    %6 = math.rsqrt %5 : vector<512x1xf32>
    %7 = arith.mulf %5, %6 : vector<512x1xf32>
    %cst_2 = arith.constant 1.000000e+00 : f32
    %8 = vector.broadcast %cst_2 : f32 to vector<512x1xf32>
    %9 = arith.mulf %8, %7 : vector<512x1xf32>
    %cst_3 = arith.constant -0.999998986 : f32
    %cst_4 = arith.constant 0.999998986 : f32
    %10 = vector.broadcast %cst_3 : f32 to vector<512x1xf32>
    %11 = arith.maximumf %10, %9 : vector<512x1xf32>
    %12 = vector.broadcast %cst_4 : f32 to vector<512x1xf32>
    %13 = arith.minimumf %12, %11 : vector<512x1xf32>
    %14 = math.log1p %13 : vector<512x1xf32>
    %cst_5 = arith.constant 0.000000e+00 : f32
    %15 = vector.broadcast %cst_5 : f32 to vector<512x1xf32>
    %16 = arith.subf %15, %13 : vector<512x1xf32>
    %17 = math.log1p %16 : vector<512x1xf32>
    %18 = arith.subf %14, %17 : vector<512x1xf32>
    %cst_6 = arith.constant 5.000000e-01 : f32
    %19 = vector.broadcast %cst_6 : f32 to vector<512x1xf32>
    %20 = arith.mulf %19, %18 : vector<512x1xf32>
    %21 = arith.mulf %20, %6 : vector<512x1xf32>
    %cst_7 = arith.constant 1.000000e+00 : f32
    %22 = vector.broadcast %cst_7 : f32 to vector<512x1xf32>
    %23 = arith.mulf %21, %22 : vector<512x1xf32>
    %24 = vector.broadcast %23 : vector<512x1xf32> to vector<512x128xf32>
    %25 = arith.mulf %0, %24 : vector<512x128xf32>
    %c0_8 = arith.constant 0 : index
    %c0_9 = arith.constant 0 : index
    %26 = vector.load %arg2[%c0_8, %c0_9] : memref<512x128xf32, #tpu.memory_space<vmem>>, vector<512x128xf32>
    tpu.vector_store %arg2[%c0_8, %c0_9], %25 {strides = array<i32>} : memref<512x128xf32, #tpu.memory_space<vmem>>, vector<512x128xf32>,
    return
  }
  func.func @transform_0(%arg0: i32) -> (i32, i32) {
    %c0_i32 = arith.constant 0 : i32
    %c0_i32_0 = arith.constant 0 : i32
    return %arg0, %c0_i32 : i32, i32
  }
  func.func @transform_1(%arg0: i32) -> (i32, i32) {
    %c0_i32 = arith.constant 0 : i32
    %c0_i32_0 = arith.constant 0 : i32
    return %arg0, %c0_i32 : i32, i32
  }
}

</mosaic_0001>

<bundles_post_ra>
// kernel: tpu_custom_call.1
= control target key start
LH: loop header
LB: loop body
LE: loop exit
PB: predicated region body
PF: predicated region fallthrough
CT: control target
= control target key end

     0   :  { %6 = vsyncpa [#allocation3], 0  ;;  %s4821_s0 = inlined_call_operand.hbm [shape: f32[512,128], index: 0, kind: input, shape index: {}]   ;;  %s4822_s1 = inlined_call_operand.hbm [shape: f32[512,128], index: 1, kind: output, shape index: {}]  }
   0x1   :  { %7 = vsyncpa [#allocation4], 0  ;;  %s2708_s6 = smov [#allocation2]   ;;  %s2660_s10 = scalar_lea.hbm %s4821_s0, 8192 }
   0x2   :  { %s13_s7 = sshll.u32 %s2708_s6, 4  ;;  %p2661_p0 = scmp.ne.s32.totalorder %s4821_s0, %s2660_s10  ;;  %s14_s7 = int_to_ptr.vmem [resolvable:$true] %s13_s7 }
   0x3   :  { %p2664_p1 = scmp.lt.u32.totalorder %s2660_s10, %s4821_s0 }
   0x5   :  { %p2666_p2 = pnand %p2664_p1, %p2661_p0 }
   0x7   :  { %2669 = shalt.err (!%p2666_p2)
}
   0x8   :  { %s2670_s15 = scalar_lea.vmem %s14_s7, 8192  ;;  %p2675_p4 = scmp.lt.s32.totalorder %s14_s7, %s14_s7 }
   0x9   :  { %p2671_p3 = scmp.ne.s32.totalorder %s14_s7, %s2670_s15  ;;  %p2676_p5 = scmp.lt.s32.totalorder %s2670_s15, %s2670_s15 }
   0xb   :  { %p2677_p6 = por %p2676_p5, %p2675_p4 }
   0xd   :  { %p2678_p7 = pnand %p2677_p6, %p2671_p3 }
   0xf   :  { %2681 = shalt.err (!%p2678_p7)
}
  0x10   :  { %s2709_s16 = smov 128   ;;  %s2710_s17 = smov 8  }
  0x11   :  { %19 = dma.hbm_to_vmem [thread:$0]  %s4821_s0, 8192, %s14_s7, [#allocation3], %s2709_s16, %s2709_s16, %s2710_s17  }
  0x12   :  { %2704 = dma.done.wait [#allocation3], 8192  }
  0x13   :  { %2705 = vsyncadd [#allocation3], 4294959104  ;;  %v2737_v0 = vld [vmem:[#allocation2 + $0x10] sm:$0xff]  ;;  %v2739_v1 = vld [vmem:[#allocation2] sm:$0xff]  ;;  %s2711_s0 = smov [#allocation5]  }
  0x14   :  { %v2741_v2 = vld [vmem:[#allocation2 + $0x18] sm:$0xff]  ;;  %v89_v3 = vmul.f32 %v2737_v0, %v2737_v0  ;;  %v87_v4 = vmul.f32 %v2739_v1, %v2739_v1  ;;  %v2747_v5 = vld [vmem:[#allocation2 + $0x8] sm:$0xff]  ;;  %v2755_v9 = vld [vmem:[#allocation2 + $0x20] sm:$0xff]  ;;  %s2140_s20 = sshll.u32 %s2711_s0, 4  ;;  %s2141_s20 = int_to_ptr.vmem [resolvable:$true] %s2140_s20 }
  0x15   :  { %v90_v6 = vmul.f32 %v2741_v2, %v2741_v2  ;;  %v88_v7 = vmul.f32 %v2747_v5, %v2747_v5  ;;  %v2753_v8 = vld [vmem:[#allocation2 + $0x28] sm:$0xff]  ;;  %v91_v11 = vmul.f32 %v2755_v9, %v2755_v9  ;;  %v2761_v12 = vld [vmem:[#allocation2 + $0x38] sm:$0xff]  ;;  %v2763_v13 = vld [vmem:[#allocation2 + $0x30] sm:$0xff]  ;;  %s2682_s21 = scalar_lea.vmem %s2141_s20, 8192  ;;  %p2687_p9 = scmp.lt.s32.totalorder %s2141_s20, %s2141_s20 }
  0x16   :  { %155 = vadd.xlane.f32.xlu1 %v89_v3  ;;  %151 = vadd.xlane.f32.xlu0 %v87_v4  ;;  %v92_v10 = vmul.f32 %v2753_v8, %v2753_v8  ;;  %v94_v14 = vmul.f32 %v2761_v12, %v2761_v12  ;;  %v93_v15 = vmul.f32 %v2763_v13, %v2763_v13  ;;  %v32_v16 = vld [vmem:[#allocation2 + $0x48] sm:$0xff]  ;;  %v31_v17 = vld [vmem:[#allocation2 + $0x40] sm:$0xff]  ;;  %v34_v20 = vld [vmem:[#allocation2 + $0x58] sm:$0xff]  ;;  %p2683_p8 = scmp.ne.s32.totalorder %s2141_s20, %s2682_s21  ;;  %p2688_p10 = scmp.lt.s32.totalorder %s2682_s21, %s2682_s21 }
  0x17   :  { %v96_v18 = vmul.f32 %v32_v16, %v32_v16  ;;  %v95_v19 = vmul.f32 %v31_v17, %v31_v17  ;;  %v33_v21 = vld [vmem:[#allocation2 + $0x50] sm:$0xff]  ;;  %v98_v22 = vmul.f32 %v34_v20, %v34_v20  ;;  %v36_v24 = vld [vmem:[#allocation2 + $0x68] sm:$0xff]  ;;  %v35_v25 = vld [vmem:[#allocation2 + $0x60] sm:$0xff] }
  0x18   :  { %v97_v23 = vmul.f32 %v33_v21, %v33_v21  ;;  %v100_v26 = vmul.f32 %v36_v24, %v36_v24  ;;  %v99_v27 = vmul.f32 %v35_v25, %v35_v25  ;;  %v38_v28 = vld [vmem:[#allocation2 + $0x78] sm:$0xff]  ;;  %v37_v29 = vld [vmem:[#allocation2 + $0x70] sm:$0xff]  ;;  %v40_v32 = vld [vmem:[#allocation2 + $0x88] sm:$0xff]  ;;  %p2689_p11 = por %p2688_p10, %p2687_p9 }
  0x19   :  { %v102_v30 = vmul.f32 %v38_v28, %v38_v28  ;;  %v101_v31 = vmul.f32 %v37_v29, %v37_v29  ;;  %v39_v33 = vld [vmem:[#allocation2 + $0x80] sm:$0xff]  ;;  %v104_v34 = vmul.f32 %v40_v32, %v40_v32  ;;  %v42_v36 = vld [vmem:[#allocation2 + $0x98] sm:$0xff]  ;;  %v41_v37 = vld [vmem:[#allocation2 + $0x90] sm:$0xff] }
  0x1a   :  { %157 = vadd.xlane.f32.xlu1 %v90_v6  ;;  %153 = vadd.xlane.f32.xlu0 %v88_v7  ;;  %v103_v35 = vmul.f32 %v39_v33, %v39_v33  ;;  %v106_v38 = vmul.f32 %v42_v36, %v42_v36  ;;  %v105_v39 = vmul.f32 %v41_v37, %v41_v37  ;;  %v44_v40 = vld [vmem:[#allocation2 + $0xa8] sm:$0xff]  ;;  %v43_v41 = vld [vmem:[#allocation2 + $0xa0] sm:$0xff]  ;;  %v46_v44 = vld [vmem:[#allocation2 + $0xb8] sm:$0xff]  ;;  %p2690_p12 = pnand %p2689_p11, %p2683_p8 }
  0x1b   :  { %v108_v42 = vmul.f32 %v44_v40, %v44_v40  ;;  %v107_v43 = vmul.f32 %v43_v41, %v43_v41  ;;  %v45_v45 = vld [vmem:[#allocation2 + $0xb0] sm:$0xff]  ;;  %v110_v46 = vmul.f32 %v46_v44, %v46_v44  ;;  %v48_v48 = vld [vmem:[#allocation2 + $0xc8] sm:$0xff]  ;;  %v47_v49 = vld [vmem:[#allocation2 + $0xc0] sm:$0xff] }
  0x1c   :  { %v109_v47 = vmul.f32 %v45_v45, %v45_v45  ;;  %v112_v50 = vmul.f32 %v48_v48, %v48_v48  ;;  %v111_v51 = vmul.f32 %v47_v49, %v47_v49  ;;  %v50_v52 = vld [vmem:[#allocation2 + $0xd8] sm:$0xff]  ;;  %v49_v53 = vld [vmem:[#allocation2 + $0xd0] sm:$0xff]  ;;  %v52_v56 = vld [vmem:[#allocation2 + $0xe8] sm:$0xff] }
  0x1d   :  { %v114_v54 = vmul.f32 %v50_v52, %v50_v52  ;;  %v113_v55 = vmul.f32 %v49_v53, %v49_v53  ;;  %v51_v57 = vld [vmem:[#allocation2 + $0xe0] sm:$0xff]  ;;  %v116_v58 = vmul.f32 %v52_v56, %v52_v56  ;;  %v54_v60 = vld [vmem:[#allocation2 + $0xf8] sm:$0xff]  ;;  %v53_v61 = vld [vmem:[#allocation2 + $0xf0] sm:$0xff] }
  0x1e   :  { %161 = vadd.xlane.f32.xlu1 %v92_v10  ;;  %159 = vadd.xlane.f32.xlu0 %v91_v11  ;;  %v115_v59 = vmul.f32 %v51_v57, %v51_v57  ;;  %v118_v62 = vmul.f32 %v54_v60, %v54_v60  ;;  %v117_v63 = vmul.f32 %v53_v61, %v53_v61  ;;  %v56_v3 = vld [vmem:[#allocation2 + $0x108] sm:$0xff]  ;;  %v55_v4 = vld [vmem:[#allocation2 + $0x100] sm:$0xff]  ;;  %v58_v10 = vld [vmem:[#allocation2 + $0x118] sm:$0xff] }
  0x1f   :  { %v120_v6 = vmul.f32 %v56_v3, %v56_v3  ;;  %v119_v7 = vmul.f32 %v55_v4, %v55_v4  ;;  %v57_v11 = vld [vmem:[#allocation2 + $0x110] sm:$0xff]  ;;  %v60_v16 = vld [vmem:[#allocation2 + $0x128] sm:$0xff]  ;;  %v59_v17 = vld [vmem:[#allocation2 + $0x120] sm:$0xff] }
  0x20   :  { %v62_v20 = vld [vmem:[#allocation2 + $0x138] sm:$0xff]  ;;  %v61_v21 = vld [vmem:[#allocation2 + $0x130] sm:$0xff]  ;;  %v64_v24 = vld [vmem:[#allocation2 + $0x148] sm:$0xff] }
  0x21   :  { %v63_v25 = vld [vmem:[#allocation2 + $0x140] sm:$0xff]  ;;  %v66_v28 = vld [vmem:[#allocation2 + $0x158] sm:$0xff]  ;;  %v65_v29 = vld [vmem:[#allocation2 + $0x150] sm:$0xff] }
  0x22   :  { %165 = vadd.xlane.f32.xlu1 %v94_v14  ;;  %163 = vadd.xlane.f32.xlu0 %v93_v15  ;;  %v122_v14 = vmul.f32 %v58_v10, %v58_v10  ;;  %v121_v15 = vmul.f32 %v57_v11, %v57_v11  ;;  %v68_v32 = vld [vmem:[#allocation2 + $0x168] sm:$0xff]  ;;  %v67_v33 = vld [vmem:[#allocation2 + $0x160] sm:$0xff]  ;;  %v70_v36 = vld [vmem:[#allocation2 + $0x178] sm:$0xff] }
  0x23   :  { %v69_v37 = vld [vmem:[#allocation2 + $0x170] sm:$0xff]  ;;  %v72_v40 = vld [vmem:[#allocation2 + $0x188] sm:$0xff]  ;;  %v71_v41 = vld [vmem:[#allocation2 + $0x180] sm:$0xff] }
  0x24   :  { %v74_v44 = vld [vmem:[#allocation2 + $0x198] sm:$0xff]  ;;  %v73_v45 = vld [vmem:[#allocation2 + $0x190] sm:$0xff]  ;;  %v76_v48 = vld [vmem:[#allocation2 + $0x1a8] sm:$0xff] }
  0x25   :  { %v75_v49 = vld [vmem:[#allocation2 + $0x1a0] sm:$0xff]  ;;  %v78_v52 = vld [vmem:[#allocation2 + $0x1b8] sm:$0xff]  ;;  %v77_v53 = vld [vmem:[#allocation2 + $0x1b0] sm:$0xff] }
  0x26   :  { %169 = vadd.xlane.f32.xlu1 %v96_v18  ;;  %167 = vadd.xlane.f32.xlu0 %v95_v19  ;;  %v124_v18 = vmul.f32 %v60_v16, %v60_v16  ;;  %v123_v19 = vmul.f32 %v59_v17, %v59_v17  ;;  %v80_v56 = vld [vmem:[#allocation2 + $0x1c8] sm:$0xff]  ;;  %v79_v57 = vld [vmem:[#allocation2 + $0x1c0] sm:$0xff]  ;;  %v82_v60 = vld [vmem:[#allocation2 + $0x1d8] sm:$0xff] }
  0x27   :  { %v81_v61 = vld [vmem:[#allocation2 + $0x1d0] sm:$0xff]  ;;  %v84_v3 = vld [vmem:[#allocation2 + $0x1e8] sm:$0xff]  ;;  %v83_v4 = vld [vmem:[#allocation2 + $0x1e0] sm:$0xff] }
  0x28   :  { %v86_v10 = vld [vmem:[#allocation2 + $0x1f8] sm:$0xff]  ;;  %v85_v11 = vld [vmem:[#allocation2 + $0x1f0] sm:$0xff] }
  0x2a   :  { %173 = vadd.xlane.f32.xlu1 %v98_v22  ;;  %171 = vadd.xlane.f32.xlu0 %v97_v23  ;;  %v126_v22 = vmul.f32 %v62_v20, %v62_v20  ;;  %v125_v23 = vmul.f32 %v61_v21, %v61_v21 }
  0x2e   :  { %177 = vadd.xlane.f32.xlu1 %v100_v26  ;;  %175 = vadd.xlane.f32.xlu0 %v99_v27  ;;  %v128_v26 = vmul.f32 %v64_v24, %v64_v24  ;;  %v127_v27 = vmul.f32 %v63_v25, %v63_v25 }
  0x32   :  { %181 = vadd.xlane.f32.xlu1 %v102_v30  ;;  %179 = vadd.xlane.f32.xlu0 %v101_v31  ;;  %v130_v30 = vmul.f32 %v66_v28, %v66_v28  ;;  %v129_v31 = vmul.f32 %v65_v29, %v65_v29 }
  0x36   :  { %185 = vadd.xlane.f32.xlu1 %v104_v34  ;;  %183 = vadd.xlane.f32.xlu0 %v103_v35  ;;  %v132_v34 = vmul.f32 %v68_v32, %v68_v32  ;;  %v131_v35 = vmul.f32 %v67_v33, %v67_v33 }
  0x3a   :  { %189 = vadd.xlane.f32.xlu1 %v106_v38  ;;  %187 = vadd.xlane.f32.xlu0 %v105_v39  ;;  %v134_v38 = vmul.f32 %v70_v36, %v70_v36  ;;  %v133_v39 = vmul.f32 %v69_v37, %v69_v37 }
  0x3e   :  { %193 = vadd.xlane.f32.xlu1 %v108_v42  ;;  %191 = vadd.xlane.f32.xlu0 %v107_v43  ;;  %v136_v42 = vmul.f32 %v72_v40, %v72_v40  ;;  %v135_v43 = vmul.f32 %v71_v41, %v71_v41 }
  0x42   :  { %197 = vadd.xlane.f32.xlu1 %v110_v46  ;;  %195 = vadd.xlane.f32.xlu0 %v109_v47  ;;  %v138_v46 = vmul.f32 %v74_v44, %v74_v44  ;;  %v137_v47 = vmul.f32 %v73_v45, %v73_v45 }
  0x46   :  { %201 = vadd.xlane.f32.xlu1 %v112_v50  ;;  %199 = vadd.xlane.f32.xlu0 %v111_v51  ;;  %v140_v50 = vmul.f32 %v76_v48, %v76_v48  ;;  %v139_v51 = vmul.f32 %v75_v49, %v75_v49 }
  0x4a   :  { %205 = vadd.xlane.f32.xlu1 %v114_v54  ;;  %203 = vadd.xlane.f32.xlu0 %v113_v55  ;;  %v142_v54 = vmul.f32 %v78_v52, %v78_v52  ;;  %v141_v55 = vmul.f32 %v77_v53, %v77_v53 }
  0x4e   :  { %209 = vadd.xlane.f32.xlu1 %v116_v58  ;;  %207 = vadd.xlane.f32.xlu0 %v115_v59  ;;  %v144_v58 = vmul.f32 %v80_v56, %v80_v56  ;;  %v143_v59 = vmul.f32 %v79_v57, %v79_v57 }
  0x52   :  { %213 = vadd.xlane.f32.xlu1 %v118_v62  ;;  %211 = vadd.xlane.f32.xlu0 %v117_v63  ;;  %v146_v62 = vmul.f32 %v82_v60, %v82_v60  ;;  %v145_v63 = vmul.f32 %v81_v61, %v81_v61 }
  0x56   :  { %217 = vadd.xlane.f32.xlu1 %v120_v6  ;;  %215 = vadd.xlane.f32.xlu0 %v119_v7  ;;  %v148_v6 = vmul.f32 %v84_v3, %v84_v3  ;;  %v147_v7 = vmul.f32 %v83_v4, %v83_v4 }
  0x5a   :  { %221 = vadd.xlane.f32.xlu1 %v122_v14  ;;  %219 = vadd.xlane.f32.xlu0 %v121_v15  ;;  %v150_v14 = vmul.f32 %v86_v10, %v86_v10  ;;  %v149_v15 = vmul.f32 %v85_v11, %v85_v11 }
  0x5e   :  { %225 = vadd.xlane.f32.xlu1 %v124_v18  ;;  %223 = vadd.xlane.f32.xlu0 %v123_v19 }
  0x62   :  { %229 = vadd.xlane.f32.xlu1 %v126_v22  ;;  %227 = vadd.xlane.f32.xlu0 %v125_v23 }
  0x66   :  { %233 = vadd.xlane.f32.xlu1 %v128_v26  ;;  %231 = vadd.xlane.f32.xlu0 %v127_v27 }
  0x6a   :  { %237 = vadd.xlane.f32.xlu1 %v130_v30  ;;  %235 = vadd.xlane.f32.xlu0 %v129_v31 }
  0x6e   :  { %241 = vadd.xlane.f32.xlu1 %v132_v34  ;;  %239 = vadd.xlane.f32.xlu0 %v131_v35 }
  0x72   :  { %245 = vadd.xlane.f32.xlu1 %v134_v38  ;;  %243 = vadd.xlane.f32.xlu0 %v133_v39 }
  0x76   :  { %249 = vadd.xlane.f32.xlu1 %v136_v42  ;;  %247 = vadd.xlane.f32.xlu0 %v135_v43 }
  0x7a   :  { %253 = vadd.xlane.f32.xlu1 %v138_v46  ;;  %251 = vadd.xlane.f32.xlu0 %v137_v47 }
  0x7e   :  { %257 = vadd.xlane.f32.xlu1 %v140_v50  ;;  %255 = vadd.xlane.f32.xlu0 %v139_v51 }
  0x82   :  { %261 = vadd.xlane.f32.xlu1 %v142_v54  ;;  %259 = vadd.xlane.f32.xlu0 %v141_v55 }
  0x86   :  { %265 = vadd.xlane.f32.xlu1 %v144_v58  ;;  %263 = vadd.xlane.f32.xlu0 %v143_v59 }
  0x8a   :  { %269 = vadd.xlane.f32.xlu1 %v146_v62  ;;  %267 = vadd.xlane.f32.xlu0 %v145_v63 }
  0x8e   :  { %273 = vadd.xlane.f32.xlu1 %v148_v6  ;;  %271 = vadd.xlane.f32.xlu0 %v147_v7 }
  0x92   :  { %277 = vadd.xlane.f32.xlu1 %v150_v14  ;;  %275 = vadd.xlane.f32.xlu0 %v149_v15 }
  0xa3   :  { %v156_v16 = vpop.xlane.xlu1 %155  ;;  %v152_v17 = vpop.xlane.xlu0 %151 }
  0xa4   :  { %v281_v18 = vmax.f32 %v156_v16, 1e-30  ;;  %v279_v19 = vmax.f32 %v152_v17, 1e-30 }
  0xa6   :  { %2220 = vrsqrt.f32 %v281_v18 }
  0xa7   :  { %2222 = vrsqrt.f32 %v279_v19  ;;  %v158_v20 = vpop.xlane.xlu1 %157  ;;  %v154_v21 = vpop.xlane.xlu0 %153 }
  0xa8   :  { %v282_v22 = vmax.f32 %v158_v20, 1e-30  ;;  %v280_v23 = vmax.f32 %v154_v21, 1e-30 }
  0xaa   :  { %2224 = vrsqrt.f32 %v282_v22 }
  0xab   :  { %v162_v24 = vpop.xlane.xlu1 %161  ;;  %v160_v25 = vpop.xlane.xlu0 %159  ;;  %2226 = vrsqrt.f32 %v280_v23 }
  0xac   :  { %v284_v26 = vmax.f32 %v162_v24, 1e-30  ;;  %v283_v27 = vmax.f32 %v160_v25, 1e-30 }
  0xae   :  { %2228 = vrsqrt.f32 %v284_v26 }
  0xaf   :  { %v2769_v28 = vpop.xlane.xlu1 %165  ;;  %v2771_v29 = vpop.xlane.xlu0 %163  ;;  %2230 = vrsqrt.f32 %v283_v27 }
  0xb0   :  { %v2773_v30 = vpop.eup %2220  ;;  %v286_v33 = vmax.f32 %v2769_v28, 1e-30  ;;  %v285_v35 = vmax.f32 %v2771_v29, 1e-30 }
  0xb1   :  { %v2775_v31 = vpop.eup %2222  ;;  %v409_v32 = vmul.f32 %v2773_v30, %v281_v18 }
  0xb2   :  { %v407_v34 = vmul.f32 %v2775_v31, %v279_v19  ;;  %2232 = vrsqrt.f32 %v286_v33 }
  0xb3   :  { %v2154_v36 = vclamps-f32 %v409_v32, 0.999999  ;;  %2234 = vrsqrt.f32 %v285_v35  ;;  %v2789_v48 = vpop.xlane.xlu1 %169  ;;  %v2791_v52 = vpop.xlane.xlu0 %167 }
  0xb4   :  { %v2152_v37 = vclamps-f32 %v407_v34, 0.999999  ;;  %v2785_v43 = vpop.eup %2224  ;;  %v288_v61 = vmax.f32 %v2789_v48, 1e-30  ;;  %v287_v3 = vmax.f32 %v2791_v52, 1e-30 }
  0xb5   :  { %v617_v38 = vadd.f32 1.0, %v2154_v36  ;;  %v1177_v39 = vsub.f32 0.0, %v2154_v36  ;;  %v620_v40 = vmul.f32 -0.5, %v2154_v36  ;;  %v2787_v45 = vpop.eup %2226  ;;  %v623_v50 = vand.u32 2147483647, %v2154_v36 }
  0xb6   :  { %v599_v41 = vadd.f32 1.0, %v2152_v37  ;;  %v1175_v42 = vsub.f32 0.0, %v2152_v37  ;;  %v602_v46 = vmul.f32 -0.5, %v2152_v37  ;;  %v605_v54 = vand.u32 2147483647, %v2152_v37 }
  0xb7   :  { %2236 = vlog2.f32 %v617_v38  ;;  %v1257_v44 = vadd.f32 1.0, %v1177_v39  ;;  %v621_v49 = vadd.f32 1.0, %v620_v40  ;;  %v1260_v51 = vmul.f32 -0.5, %v1177_v39 }
  0xb8   :  { %2238 = vlog2.f32 %v599_v41  ;;  %v1239_v47 = vadd.f32 1.0, %v1175_v42  ;;  %v2793_v53 = vpop.eup %2228  ;;  %v410_v55 = vmul.f32 %v2785_v43, %v282_v22  ;;  %v408_v56 = vmul.f32 %v2787_v45, %v280_v23 }
  0xb9   :  { %2240 = vlog2.f32 %v1257_v44  ;;  %v2797_v57 = vpop.eup %2230  ;;  %v1263_v58 = vand.u32 2147483647, %v1177_v39  ;;  %v603_v59 = vadd.f32 1.0, %v602_v46  ;;  %v1242_v60 = vmul.f32 -0.5, %v1175_v42 }
  0xba   :  { %2242 = vlog2.f32 %v1239_v47  ;;  %v2155_v62 = vclamps-f32 %v410_v55, 0.999999  ;;  %v2800_v63 = vclamps-f32 %v408_v56, 0.999999  ;;  %v622_v4 = vmul.f32 %v2154_v36, %v621_v49 }
  0xbb   :  { %vm2803_vm0 = vcmp.lt.f32.partialorder %v623_v50, 0.0004427343  ;;  %v1261_v7 = vadd.f32 1.0, %v1260_v51  ;;  %v1245_v10 = vand.u32 2147483647, %v1175_v42  ;;  %v412_v17 = vmul.f32 %v2793_v53, %v284_v26 }
  0xbc   :  { %v2807_v11 = vpop.eup %2232  ;;  %vm2809_vm1 = vcmp.lt.f32.partialorder %v605_v54, 0.0004427343  ;;  %v626_v15 = vadd.f32 1.0, %v2155_v62  ;;  %v2813_v16 = vsub.f32 0.0, %v2155_v62  ;;  %v411_v18 = vmul.f32 %v2797_v57, %v283_v27 }
  0xbd   :  { %v2817_v19 = vpop.eup %2234  ;;  %vm2819_vm2 = vcmp.lt.f32.partialorder %v1263_v58, 0.0004427343  ;;  %v604_v21 = vmul.f32 %v2152_v37, %v603_v59  ;;  %v1243_v22 = vadd.f32 1.0, %v1242_v60  ;;  %v608_v23 = vadd.f32 1.0, %v2800_v63 }
  0xbe   :  { %2244 = vlog2.f32 %v626_v15  ;;  %v629_v25 = vmul.f32 -0.5, %v2155_v62  ;;  %v1266_v32 = vadd.f32 1.0, %v2813_v16  ;;  %v2826_v34 = vsub.f32 0.0, %v2800_v63 }
  0xbf   :  { %v1262_v36 = vmul.f32 %v1261_v7, %v1177_v39  ;;  %vm2828_vm3 = vcmp.lt.f32.partialorder %v1245_v10, 0.0004427343  ;;  %2246 = vlog2.f32 %v608_v23  ;;  %v2832_v40 = vclamps-f32 %v412_v17, 0.999999 }
  0xc0   :  { %2248 = vlog2.f32 %v1266_v32  ;;  %v2834_v41 = vclamps-f32 %v411_v18, 0.999999  ;;  %v414_v44 = vmul.f32 %v2807_v11, %v286_v33  ;;  %v1244_v49 = vmul.f32 %v1243_v22, %v1175_v42 }
  0xc1   :  { %v2237_v24 = vpop.eup %2236  ;;  %v611_v39 = vmul.f32 -0.5, %v2800_v63  ;;  %v630_v51 = vadd.f32 1.0, %v629_v25  ;;  %v632_v54 = vand.u32 2147483647, %v2155_v62  ;;  %v1248_v55 = vadd.f32 1.0, %v2826_v34 }
  0xc2   :  { %v2239_v26 = vpop.eup %2238  ;;  %v619_v27 = vmul.f32 0.6931472, %v2237_v24  ;;  %v2844_v56 = vmul.f32 %v2817_v19, %v285_v35  ;;  %v1269_v42 = vmul.f32 -0.5, %v2813_v16  ;;  %v1272_v60 = vand.u32 2147483647, %v2813_v16 }
  0xc3   :  { %v2241_v37 = vpop.eup %2240  ;;  %v601_v47 = vmul.f32 0.6931472, %v2239_v26  ;;  %2250 = vlog2.f32 %v1248_v55  ;;  %v644_v7 = vadd.f32 1.0, %v2832_v40  ;;  %v612_v6 = vadd.f32 1.0, %v611_v39 }
  0xc4   :  { %v1259_v46 = vmul.f32 0.6931472, %v2241_v37  ;;  %v2243_v50 = vpop.eup %2242  ;;  %v625_v28 = vsel %vm2803_vm0, %v622_v4, %v619_v27  ;;  %v614_v4 = vand.u32 2147483647, %v2800_v63  ;;  %v1251_v17 = vmul.f32 -0.5, %v2826_v34 }
  0xc5   :  { %v1241_v58 = vmul.f32 0.6931472, %v2243_v50  ;;  %v607_v29 = vsel %vm2809_vm1, %v604_v21, %v601_v47  ;;  %2252 = vlog2.f32 %v644_v7  ;;  %v631_v18 = vmul.f32 %v2155_v62, %v630_v51 }
  0xc6   :  { %v1265_v33 = vsel %vm2819_vm2, %v1262_v36, %v1259_v46  ;;  %vm2859_vm4 = vcmp.lt.f32.partialorder %v632_v54, 0.0004427343  ;;  %v1270_v22 = vadd.f32 1.0, %v1269_v42  ;;  %v2864_v14 = vsub.f32 0.0, %v2832_v40 }
  0xc7   :  { %v1817_v59 = vsub.f32 %v625_v28, %v1265_v33  ;;  %v1247_v35 = vsel %vm2828_vm3, %v1244_v49, %v1241_v58  ;;  %vm2867_vm5 = vcmp.lt.f32.partialorder %v1272_v60, 0.0004427343  ;;  %v1254_v32 = vand.u32 2147483647, %v2826_v34 }
  0xc8   :  { %v1815_v15 = vsub.f32 %v607_v29, %v1247_v35  ;;  %v2245_v21 = vpop.eup %2244  ;;  %v613_v27 = vmul.f32 %v2800_v63, %v612_v6  ;;  %v1284_v36 = vadd.f32 1.0, %v2864_v14  ;;  %v635_v38 = vadd.f32 1.0, %v2834_v41 }
  0xc9   :  { %v1881_v10 = vmul.f32 0.5, %v1817_v59  ;;  %v2247_v26 = vpop.eup %2246  ;;  %v628_v62 = vmul.f32 0.6931472, %v2245_v21  ;;  %vm2877_vm6 = vcmp.lt.f32.partialorder %v614_v4, 0.0004427343  ;;  %v1252_v49 = vadd.f32 1.0, %v1251_v17 }
  0xca   :  { %v1879_v24 = vmul.f32 0.5, %v1815_v15  ;;  %v2249_v37 = vpop.eup %2248  ;;  %v1271_v50 = vmul.f32 %v1270_v22, %v2813_v16  ;;  %v647_v51 = vmul.f32 -0.5, %v2832_v40  ;;  %2254 = vlog2.f32 %v1284_v36 }
  0xcb   :  { %v1945_v23 = vmul.f32 %v2773_v30, %v1881_v10  ;;  %v1268_v39 = vmul.f32 0.6931472, %v2249_v37  ;;  %vm2884_vm7 = vcmp.lt.f32.partialorder %v1254_v32, 0.0004427343  ;;  %v634_v55 = vsel %vm2859_vm4, %v631_v18, %v628_v62 }
  0xcc   :  { %v1943_v30 = vmul.f32 %v2775_v31, %v1879_v24  ;;  %v1287_v31 = vmul.f32 -0.5, %v2864_v14  ;;  %v610_v28 = vmul.f32 0.6931472, %v2247_v26  ;;  %2256 = vlog2.f32 %v635_v38 }
  0xcd   :  { %v2009_v46 = vmul.f32 %v1945_v23, %v2737_v0  ;;  %v650_v0 = vand.u32 2147483647, %v2832_v40  ;;  %v1274_v16 = vsel %vm2867_vm5, %v1271_v50, %v1268_v39  ;;  %v2251_v33 = vpop.eup %2250  ;;  %v1179_v42 = vsub.f32 0.0, %v2834_v41 }
  0xce   :  { %v2007_v63 = vmul.f32 %v1943_v30, %v2739_v1  ;;  %v1818_v58 = vsub.f32 %v634_v55, %v1274_v16  ;;  %v1253_v1 = vmul.f32 %v1252_v49, %v2826_v34  ;;  %v2896_v59 = vclamps-f32 %v414_v44, 0.999999  ;;  %v2947_v16 = vpop.xlane.xlu1 %173 }
  0xcf   :  { %2073 = vst [vmem:[#allocation5 + $0x10] sm:$0xff] %v2009_v46  ;;  %v1250_v60 = vmul.f32 0.6931472, %v2251_v33  ;;  %v648_v7 = vadd.f32 1.0, %v647_v51  ;;  %v638_v29 = vmul.f32 -0.5, %v2834_v41  ;;  %2258 = vrsqrt.f32 %v288_v61  ;;  %v2253_v35 = vpop.eup %2252 }
  0xd0   :  { %2071 = vst [vmem:[#allocation5] sm:$0xff] %v2007_v63  ;;  %v1882_v6 = vmul.f32 0.5, %v1818_v58  ;;  %vm2901_vm8 = vcmp.lt.f32.partialorder %v650_v0, 0.0004427343  ;;  %v1290_v10 = vand.u32 2147483647, %v2864_v14  ;;  %v616_v44 = vsel %vm2877_vm6, %v613_v27, %v610_v28 }
  0xd1   :  { %v1275_v34 = vadd.f32 1.0, %v1179_v42  ;;  %v1256_v15 = vsel %vm2884_vm7, %v1253_v1, %v1250_v60  ;;  %v1288_v17 = vadd.f32 1.0, %v1287_v31  ;;  %v662_v18 = vadd.f32 1.0, %v2896_v59 }
  0xd2   :  { %v1946_v20 = vmul.f32 %v2785_v43, %v1882_v6  ;;  %v1816_v22 = vsub.f32 %v616_v44, %v1256_v15  ;;  %v2913_v21 = vclamps-f32 %v2844_v56, 0.999999  ;;  %v646_v23 = vmul.f32 0.6931472, %v2253_v35 }
  0xd3   :  { %2260 = vlog2.f32 %v1275_v34  ;;  %v639_v24 = vadd.f32 1.0, %v638_v29  ;;  %v641_v25 = vand.u32 2147483647, %v2834_v41  ;;  %v1278_v32 = vmul.f32 -0.5, %v1179_v42 }
  0xd4   :  { %v2010_v26 = vmul.f32 %v1946_v20, %v2741_v2  ;;  %v1880_v62 = vmul.f32 0.5, %v1816_v22  ;;  %2262 = vlog2.f32 %v662_v18  ;;  %v665_v27 = vmul.f32 -0.5, %v2896_v59  ;;  %v2255_v36 = vpop.eup %2254 }
  0xd5   :  { %v649_v38 = vmul.f32 %v2832_v40, %v648_v7  ;;  %vm2919_vm9 = vcmp.lt.f32.partialorder %v1290_v10, 0.0004427343  ;;  %v1281_v56 = vand.u32 2147483647, %v1179_v42  ;;  %v2924_v37 = vsub.f32 0.0, %v2896_v59  ;;  %v2958_v7 = vpop.xlane.xlu0 %171 }
  0xd6   :  { %2074 = vst [vmem:[#allocation5 + $0x18] sm:$0xff] %v2010_v26  ;;  %v1944_v46 = vmul.f32 %v2787_v45, %v1880_v62  ;;  %v1286_v30 = vmul.f32 0.6931472, %v2255_v36  ;;  %v1289_v2 = vmul.f32 %v1288_v17, %v2864_v14  ;;  %v653_v47 = vadd.f32 1.0, %v2913_v21  ;;  %v2257_v49 = vpop.eup %2256 }
  0xd7   :  { %v640_v39 = vmul.f32 %v2834_v41, %v639_v24  ;;  %vm2930_vm10 = vcmp.lt.f32.partialorder %v641_v25, 0.0004427343  ;;  %v1279_v50 = vadd.f32 1.0, %v1278_v32  ;;  %v1302_v51 = vadd.f32 1.0, %v2924_v37 }
  0xd8   :  { %v2008_v63 = vmul.f32 %v1944_v46, %v2747_v5  ;;  %v652_v45 = vsel %vm2901_vm8, %v649_v38, %v646_v23  ;;  %v1292_v14 = vsel %vm2919_vm9, %v1289_v2, %v1286_v30  ;;  %v666_v54 = vadd.f32 1.0, %v665_v27 }
  0xd9   :  { %v2940_v0 = vpop.eup %2258  ;;  %v1820_v31 = vsub.f32 %v652_v45, %v1292_v14  ;;  %vm2942_vm11 = vcmp.lt.f32.partialorder %v1281_v56, 0.0004427343  ;;  %2264 = vlog2.f32 %v1302_v51  ;;  %v656_v55 = vmul.f32 -0.5, %v2913_v21  ;;  %v2984_v36 = vpop.xlane.xlu0 %175 }
  0xda   :  { %2072 = vst [vmem:[#allocation5 + $0x8] sm:$0xff] %v2008_v63  ;;  %v637_v5 = vmul.f32 0.6931472, %v2257_v49  ;;  %v1305_v28 = vmul.f32 -0.5, %v2924_v37  ;;  %2266 = vlog2.f32 %v653_v47  ;;  %v2951_v33 = vsub.f32 0.0, %v2913_v21 }
  0xdb   :  { %v1884_v58 = vmul.f32 0.5, %v1820_v31  ;;  %v1280_v1 = vmul.f32 %v1279_v50, %v1179_v42  ;;  %v416_v60 = vmul.f32 %v2940_v0, %v288_v61  ;;  %2268 = vrsqrt.f32 %v287_v3 }
  0xdc   :  { %v667_v35 = vmul.f32 %v2896_v59, %v666_v54  ;;  %v668_v6 = vand.u32 2147483647, %v2896_v59  ;;  %v1308_v4 = vand.u32 2147483647, %v2924_v37  ;;  %v1293_v10 = vadd.f32 1.0, %v2951_v33 }
  0xdd   :  { %v2261_v29 = vpop.eup %2260  ;;  %v1948_v42 = vmul.f32 %v2793_v53, %v1884_v58  ;;  %v657_v48 = vadd.f32 1.0, %v656_v55  ;;  %v2161_v44 = vclamps-f32 %v416_v60, 0.999999  ;;  %v643_v15 = vsel %vm2930_vm10, %v640_v39, %v637_v5  ;;  %v2972_v53 = vpop.xlane.xlu1 %177 }
  0xde   :  { %v1277_v34 = vmul.f32 0.6931472, %v2261_v29  ;;  %v2263_v61 = vpop.eup %2262  ;;  %v1306_v17 = vadd.f32 1.0, %v1305_v28  ;;  %2270 = vlog2.f32 %v1293_v10  ;;  %v290_v18 = vmax.f32 %v2947_v16, 1e-30 }
  0xdf   :  { %v2012_v20 = vmul.f32 %v1948_v42, %v2753_v8  ;;  %v1296_v22 = vmul.f32 -0.5, %v2951_v33  ;;  %v680_v23 = vadd.f32 1.0, %v2161_v44  ;;  %vm2974_vm12 = vcmp.lt.f32.partialorder %v668_v6, 0.0004427343 }
  0xe0   :  { %v1283_v59 = vsel %vm2942_vm11, %v1280_v1, %v1277_v34  ;;  %v659_v32 = vand.u32 2147483647, %v2913_v21  ;;  %v289_v26 = vmax.f32 %v2958_v7, 1e-30  ;;  %v664_v62 = vmul.f32 0.6931472, %v2263_v61  ;;  %v3015_v1 = vpop.xlane.xlu0 %179 }
  0xe1   :  { %v1819_v24 = vsub.f32 %v643_v15, %v1283_v59  ;;  %2076 = vst [vmem:[#allocation5 + $0x28] sm:$0xff] %v2012_v20  ;;  %vm2980_vm13 = vcmp.lt.f32.partialorder %v1308_v4, 0.0004427343  ;;  %2272 = vlog2.f32 %v680_v23  ;;  %v1184_v27 = vsub.f32 0.0, %v2161_v44  ;;  %v2999_v14 = vpop.xlane.xlu1 %181 }
  0xe2   :  { %v658_v43 = vmul.f32 %v2913_v21, %v657_v48  ;;  %v683_v56 = vmul.f32 -0.5, %v2161_v44  ;;  %2274 = vrsqrt.f32 %v290_v18  ;;  %v1307_v30 = vmul.f32 %v1306_v17, %v2924_v37 }
  0xe3   :  { %v1883_v38 = vmul.f32 0.5, %v1819_v24  ;;  %v2265_v46 = vpop.eup %2264  ;;  %v1297_v2 = vadd.f32 1.0, %v1296_v22  ;;  %v1299_v47 = vand.u32 2147483647, %v2951_v33  ;;  %v1320_v49 = vadd.f32 1.0, %v1184_v27 }
  0xe4   :  { %v2267_v39 = vpop.eup %2266  ;;  %v1304_v50 = vmul.f32 0.6931472, %v2265_v46  ;;  %v1323_v51 = vmul.f32 -0.5, %v1184_v27  ;;  %2276 = vrsqrt.f32 %v289_v26  ;;  %v670_v63 = vsel %vm2974_vm12, %v667_v35, %v664_v62  ;;  %v3050_v62 = vpop.xlane.xlu0 %183 }
  0xe5   :  { %v1947_v40 = vmul.f32 %v2797_v57, %v1883_v38  ;;  %v2994_v21 = vpop.eup %2268  ;;  %v686_v45 = vand.u32 2147483647, %v2161_v44  ;;  %2278 = vlog2.f32 %v1320_v49  ;;  %v292_v37 = vmax.f32 %v2972_v53, 1e-30  ;;  %v3037_v20 = vpop.xlane.xlu1 %185 }
  0xe6   :  { %v1310_v57 = vsel %vm2980_vm13, %v1307_v30, %v1304_v50  ;;  %v684_v31 = vadd.f32 1.0, %v683_v56  ;;  %v415_v41 = vmul.f32 %v2994_v21, %v287_v3  ;;  %v655_v5 = vmul.f32 0.6931472, %v2267_v39 }
  0xe7   :  { %v2011_v54 = vmul.f32 %v1947_v40, %v2755_v9  ;;  %v1822_v55 = vsub.f32 %v670_v63, %v1310_v57  ;;  %vm3007_vm14 = vcmp.lt.f32.partialorder %v659_v32, 0.0004427343  ;;  %vm3011_vm15 = vcmp.lt.f32.partialorder %v1299_v47, 0.0004427343 }
  0xe8   :  { %v2271_v9 = vpop.eup %2270  ;;  %v1298_v60 = vmul.f32 %v1297_v2, %v2951_v33  ;;  %v1324_v29 = vadd.f32 1.0, %v1323_v51  ;;  %v1326_v52 = vand.u32 2147483647, %v1184_v27  ;;  %v3018_v35 = vclamps-f32 %v415_v41, 0.999999 }
  0xe9   :  { %2075 = vst [vmem:[#allocation5 + $0x20] sm:$0xff] %v2011_v54  ;;  %v1886_v3 = vmul.f32 0.5, %v1822_v55  ;;  %v1295_v6 = vmul.f32 0.6931472, %v2271_v9  ;;  %2280 = vrsqrt.f32 %v292_v37  ;;  %v291_v4 = vmax.f32 %v2984_v36, 1e-30 }
  0xea   :  { %v685_v10 = vmul.f32 %v2161_v44, %v684_v31  ;;  %vm3023_vm0 = vcmp.lt.f32.partialorder %v686_v45, 0.0004427343  ;;  %v671_v34 = vadd.f32 1.0, %v3018_v35  ;;  %v3029_v33 = vsub.f32 0.0, %v3018_v35 }
  0xeb   :  { %v2273_v48 = vpop.eup %2272  ;;  %v1950_v61 = vmul.f32 %v2807_v11, %v1886_v3  ;;  %v661_v15 = vsel %vm3007_vm14, %v658_v43, %v655_v5  ;;  %v1301_v17 = vsel %vm3011_vm15, %v1298_v60, %v1295_v6  ;;  %v294_v44 = vmax.f32 %v2999_v14, 1e-30 }
  0xec   :  { %v3039_v59 = vpop.eup %2274  ;;  %v1821_v22 = vsub.f32 %v661_v15, %v1301_v17  ;;  %v1325_v23 = vmul.f32 %v1324_v29, %v1184_v27  ;;  %vm3041_vm1 = vcmp.lt.f32.partialorder %v1326_v52, 0.0004427343  ;;  %2282 = vlog2.f32 %v671_v34 }
  0xed   :  { %v2014_v11 = vmul.f32 %v1950_v61, %v2761_v12  ;;  %v1311_v25 = vadd.f32 1.0, %v3029_v33  ;;  %2284 = vrsqrt.f32 %v291_v4  ;;  %v293_v32 = vmax.f32 %v3015_v1, 1e-30  ;;  %v2604_v61 = vld [vmem:[#allocation2 + $0x48] sm:$0xff] }
  0xee   :  { %v3052_v8 = vpop.eup %2276  ;;  %v1885_v38 = vmul.f32 0.5, %v1821_v22  ;;  %v682_v27 = vmul.f32 0.6931472, %v2273_v48  ;;  %v674_v43 = vmul.f32 -0.5, %v3018_v35  ;;  %v296_v56 = vmax.f32 %v3037_v20, 1e-30 }
  0xef   :  { %v2279_v46 = vpop.eup %2278  ;;  %2078 = vst [vmem:[#allocation5 + $0x38] sm:$0xff] %v2014_v11  ;;  %2286 = vlog2.f32 %v1311_v25  ;;  %v1314_v12 = vmul.f32 -0.5, %v3029_v33  ;;  %v418_v30 = vmul.f32 %v3039_v59, %v290_v18  ;;  %v417_v2 = vmul.f32 %v3052_v8, %v289_v26  ;;  %v3077_v26 = vpop.xlane.xlu1 %189 }
  0xf0   :  { %v1949_v47 = vmul.f32 %v2817_v19, %v1885_v38  ;;  %v1322_v49 = vmul.f32 0.6931472, %v2279_v46  ;;  %2288 = vrsqrt.f32 %v294_v44  ;;  %v295_v39 = vmax.f32 %v3050_v62, 1e-30 }
  0xf1   :  { %v677_v40 = vand.u32 2147483647, %v3018_v35  ;;  %v2163_v50 = vclamps-f32 %v418_v30, 0.999999  ;;  %v3068_v51 = vclamps-f32 %v417_v2, 0.999999  ;;  %2290 = vrsqrt.f32 %v293_v32 }
  0xf2   :  { %v2013_v16 = vmul.f32 %v1949_v47, %v2763_v13  ;;  %v688_v7 = vsel %vm3023_vm0, %v685_v10, %v682_v27  ;;  %v1328_v19 = vsel %vm3041_vm1, %v1325_v23, %v1322_v49  ;;  %v675_v18 = vadd.f32 1.0, %v674_v43 }
  0xf3   :  { %v3079_v63 = vpop.eup %2280  ;;  %v1824_v45 = vsub.f32 %v688_v7, %v1328_v19  ;;  %v1315_v54 = vadd.f32 1.0, %v1314_v12  ;;  %v1317_v57 = vand.u32 2147483647, %v3029_v33  ;;  %v698_v31 = vadd.f32 1.0, %v2163_v50 }
  0xf4   :  { %2077 = vst [vmem:[#allocation5 + $0x30] sm:$0xff] %v2013_v16  ;;  %v701_v41 = vmul.f32 -0.5, %v2163_v50  ;;  %v3082_v55 = vsub.f32 0.0, %v2163_v50  ;;  %v689_v13 = vadd.f32 1.0, %v3068_v51  ;;  %2292 = vrsqrt.f32 %v296_v56 }
  0xf5   :  { %v1888_v5 = vmul.f32 0.5, %v1824_v45  ;;  %vm3087_vm2 = vcmp.lt.f32.partialorder %v677_v40, 0.0004427343  ;;  %2294 = vlog2.f32 %v698_v31  ;;  %v298_v58 = vmax.f32 %v3077_v26, 1e-30  ;;  %v2609_v26 = vld [vmem:[#allocation2 + $0x60] sm:$0xff] }
  0xf6   :  { %v2283_v9 = vpop.eup %2282  ;;  %v676_v60 = vmul.f32 %v3018_v35, %v675_v18  ;;  %v1338_v29 = vadd.f32 1.0, %v3082_v55  ;;  %2296 = vlog2.f32 %v689_v13  ;;  %v420_v52 = vmul.f32 %v3079_v63, %v292_v37 }
  0xf7   :  { %v3097_v3 = vpop.eup %2284  ;;  %v1952_v6 = vmul.f32 %v2940_v0, %v1888_v5  ;;  %vm3100_vm3 = vcmp.lt.f32.partialorder %v1317_v57, 0.0004427343  ;;  %v704_v42 = vand.u32 2147483647, %v2163_v50  ;;  %2298 = vrsqrt.f32 %v295_v39 }
  0xf8   :  { %v673_v35 = vmul.f32 0.6931472, %v2283_v9  ;;  %v1316_v34 = vmul.f32 %v1315_v54, %v3029_v33  ;;  %v702_v48 = vadd.f32 1.0, %v701_v41  ;;  %2300 = vlog2.f32 %v1338_v29 }
  0xf9   :  { %v2287_v53 = vpop.eup %2286  ;;  %v2016_v37 = vmul.f32 %v2604_v61, %v1952_v6  ;;  %v1341_v15 = vmul.f32 -0.5, %v3082_v55  ;;  %v692_v0 = vmul.f32 -0.5, %v3068_v51  ;;  %v1185_v17 = vsub.f32 0.0, %v3068_v51 }
  0xfa   :  { %v3110_v22 = vpop.eup %2288  ;;  %v1313_v23 = vmul.f32 0.6931472, %v2287_v53  ;;  %v695_v24 = vand.u32 2147483647, %v3068_v51  ;;  %v3113_v11 = vclamps-f32 %v420_v52, 0.999999  ;;  %2302 = vrsqrt.f32 %v298_v58 }
  0xfb   :  { %v3117_v33 = vpop.eup %2290  ;;  %2080 = vst [vmem:[#allocation5 + $0x48] sm:$0xff] %v2016_v37  ;;  %vm3119_vm4 = vcmp.lt.f32.partialorder %v704_v42, 0.0004427343  ;;  %v1344_v38 = vand.u32 2147483647, %v3082_v55  ;;  %v1329_v27 = vadd.f32 1.0, %v1185_v17  ;;  %v419_v43 = vmul.f32 %v3097_v3, %v291_v4 }
  0xfc   :  { %v679_v46 = vsel %vm3087_vm2, %v676_v60, %v673_v35  ;;  %v1319_v12 = vsel %vm3100_vm3, %v1316_v34, %v1313_v23  ;;  %v703_v30 = vmul.f32 %v2163_v50, %v702_v48  ;;  %v716_v2 = vadd.f32 1.0, %v3113_v11  ;;  %v2605_v42 = vld [vmem:[#allocation2 + $0x40] sm:$0xff] }
  0xfd   :  { %v1823_v47 = vsub.f32 %v679_v46, %v1319_v12  ;;  %v1342_v49 = vadd.f32 1.0, %v1341_v15  ;;  %2304 = vlog2.f32 %v1329_v27  ;;  %v422_v40 = vmul.f32 %v3110_v22, %v294_v44 }
  0xfe   :  { %v3135_v16 = vpop.eup %2292  ;;  %v693_v36 = vadd.f32 1.0, %v692_v0  ;;  %v1332_v4 = vmul.f32 -0.5, %v1185_v17  ;;  %2306 = vlog2.f32 %v716_v2  ;;  %v1188_v7 = vsub.f32 0.0, %v3113_v11 }
  0xff   :  { %v2295_v19 = vpop.eup %2294  ;;  %v1887_v18 = vmul.f32 0.5, %v1823_v47  ;;  %vm3138_vm5 = vcmp.lt.f32.partialorder %v1344_v38, 0.0004427343  ;;  %v719_v45 = vmul.f32 -0.5, %v3113_v11  ;;  %v3143_v54 = vclamps-f32 %v419_v43, 0.999999 }
 0x100   :  { %v2297_v14 = vpop.eup %2296  ;;  %v700_v57 = vmul.f32 0.6931472, %v2295_v19  ;;  %vm3145_vm6 = vcmp.lt.f32.partialorder %v695_v24, 0.0004427343  ;;  %v1356_v31 = vadd.f32 1.0, %v1188_v7  ;;  %v1359_v41 = vmul.f32 -0.5, %v1188_v7 }
 0x101   :  { %v3149_v13 = vpop.eup %2298  ;;  %v1951_v5 = vmul.f32 %v2994_v21, %v1887_v18  ;;  %v1343_v28 = vmul.f32 %v1342_v49, %v3082_v55  ;;  %v707_v9 = vadd.f32 1.0, %v3143_v54  ;;  %v3154_v60 = vclamps-f32 %v422_v40, 0.999999 }
 0x102   :  { %v2301_v29 = vpop.eup %2300  ;;  %v1333_v52 = vadd.f32 1.0, %v1332_v4  ;;  %v1335_v6 = vand.u32 2147483647, %v1185_v17  ;;  %v722_v10 = vand.u32 2147483647, %v3113_v11  ;;  %2308 = vlog2.f32 %v1356_v31 }
 0x103   :  { %v2015_v35 = vmul.f32 %v2605_v42, %v1951_v5  ;;  %v1340_v34 = vmul.f32 0.6931472, %v2301_v29  ;;  %v691_v48 = vmul.f32 0.6931472, %v2297_v14  ;;  %v720_v53 = vadd.f32 1.0, %v719_v45  ;;  %v3197_v42 = vpop.xlane.xlu0 %187 }
 0x104   :  { %v3157_v61 = vpop.eup %2302  ;;  %v706_v21 = vsel %vm3119_vm4, %v703_v30, %v700_v57  ;;  %v694_v55 = vmul.f32 %v3068_v51, %v693_v36  ;;  %v1360_v37 = vadd.f32 1.0, %v1359_v41  ;;  %v1362_v15 = vand.u32 2147483647, %v1188_v7  ;;  %v2606_v41 = vld [vmem:[#allocation2 + $0x58] sm:$0xff] }
 0x105   :  { %2079 = vst [vmem:[#allocation5 + $0x40] sm:$0xff] %v2015_v35  ;;  %v1346_v0 = vsel %vm3138_vm5, %v1343_v28, %v1340_v34  ;;  %2310 = vlog2.f32 %v707_v9  ;;  %v1187_v23 = vsub.f32 0.0, %v3143_v54  ;;  %v734_v24 = vadd.f32 1.0, %v3154_v60 }
 0x106   :  { %v1826_v38 = vsub.f32 %v706_v21, %v1346_v0  ;;  %v1334_v27 = vmul.f32 %v1333_v52, %v1185_v17  ;;  %vm3166_vm7 = vcmp.lt.f32.partialorder %v1335_v6, 0.0004427343  ;;  %vm3170_vm8 = vcmp.lt.f32.partialorder %v722_v10, 0.0004427343 }
 0x107   :  { %v2305_v51 = vpop.eup %2304  ;;  %v697_v46 = vsel %vm3145_vm6, %v694_v55, %v691_v48  ;;  %v721_v12 = vmul.f32 %v3113_v11, %v720_v53  ;;  %v710_v30 = vmul.f32 -0.5, %v3143_v54  ;;  %v1347_v2 = vadd.f32 1.0, %v1187_v23 }
 0x108   :  { %v2307_v47 = vpop.eup %2306  ;;  %v1890_v49 = vmul.f32 0.5, %v1826_v38  ;;  %v1331_v17 = vmul.f32 0.6931472, %v2305_v51  ;;  %vm3178_vm9 = vcmp.lt.f32.partialorder %v1362_v15, 0.0004427343  ;;  %2312 = vlog2.f32 %v734_v24  ;;  %v2607_v38 = vld [vmem:[#allocation2 + $0x50] sm:$0xff] }
 0x109   :  { %v1361_v36 = vmul.f32 %v1360_v37, %v1188_v7  ;;  %2314 = vlog2.f32 %v1347_v2  ;;  %v1350_v4 = vmul.f32 -0.5, %v1187_v23  ;;  %v737_v19 = vmul.f32 -0.5, %v3154_v60 }
 0x10a   :  { %v1954_v18 = vmul.f32 %v3039_v59, %v1890_v49  ;;  %v1337_v11 = vsel %vm3166_vm7, %v1334_v27, %v1331_v17  ;;  %v718_v50 = vmul.f32 0.6931472, %v2307_v47  ;;  %v3187_v45 = vsub.f32 0.0, %v3154_v60 }
 0x10b   :  { %v1825_v14 = vsub.f32 %v697_v46, %v1337_v11  ;;  %v711_v57 = vadd.f32 1.0, %v710_v30  ;;  %v713_v44 = vand.u32 2147483647, %v3143_v54  ;;  %v421_v7 = vmul.f32 %v3117_v33, %v293_v32 }
 0x10c   :  { %v2309_v31 = vpop.eup %2308  ;;  %v2018_v5 = vmul.f32 %v2606_v41, %v1954_v18  ;;  %v1353_v28 = vand.u32 2147483647, %v1187_v23  ;;  %v740_v59 = vand.u32 2147483647, %v3154_v60  ;;  %v1374_v9 = vadd.f32 1.0, %v3187_v45  ;;  %v2608_v18 = vld [vmem:[#allocation2 + $0x68] sm:$0xff] }
 0x10d   :  { %v1889_v29 = vmul.f32 0.5, %v1825_v14  ;;  %v1358_v52 = vmul.f32 0.6931472, %v2309_v31  ;;  %v738_v6 = vadd.f32 1.0, %v737_v19  ;;  %v3195_v10 = vclamps-f32 %v421_v7, 0.999999 }
 0x10e   :  { %2082 = vst [vmem:[#allocation5 + $0x58] sm:$0xff] %v2018_v5  ;;  %v724_v1 = vsel %vm3170_vm8, %v721_v12, %v718_v50  ;;  %v1351_v32 = vadd.f32 1.0, %v1350_v4  ;;  %2316 = vlog2.f32 %v1374_v9  ;;  %v1377_v35 = vmul.f32 -0.5, %v3187_v45 }
 0x10f   :  { %v2311_v34 = vpop.eup %2310  ;;  %v1953_v48 = vmul.f32 %v3052_v8, %v1889_v29  ;;  %v1364_v53 = vsel %vm3178_vm9, %v1361_v36, %v1358_v52  ;;  %v725_v21 = vadd.f32 1.0, %v3195_v10  ;;  %v424_v55 = vmul.f32 %v3135_v16, %v296_v56 }
 0x110   :  { %v1828_v37 = vsub.f32 %v724_v1, %v1364_v53  ;;  %v712_v15 = vmul.f32 %v3143_v54, %v711_v57  ;;  %vm3210_vm10 = vcmp.lt.f32.partialorder %v713_v44, 0.0004427343  ;;  %v297_v24 = vmax.f32 %v3197_v42, 1e-30 }
 0x111   :  { %v2017_v8 = vmul.f32 %v2607_v38, %v1953_v48  ;;  %vm3215_vm11 = vcmp.lt.f32.partialorder %v1353_v28, 0.0004427343  ;;  %vm3219_vm12 = vcmp.lt.f32.partialorder %v740_v59, 0.0004427343  ;;  %2318 = vlog2.f32 %v725_v21 }
 0x112   :  { %v1189_v20 = vsub.f32 0.0, %v3195_v10  ;;  %v2313_v56 = vpop.eup %2312  ;;  %v1892_v54 = vmul.f32 0.5, %v1828_v37  ;;  %v709_v25 = vmul.f32 0.6931472, %v2311_v34  ;;  %v1352_v51 = vmul.f32 %v1351_v32, %v1187_v23 }
 0x113   :  { %v739_v46 = vmul.f32 %v3154_v60, %v738_v6  ;;  %v2315_v12 = vpop.eup %2314  ;;  %2081 = vst [vmem:[#allocation5 + $0x50] sm:$0xff] %v2017_v8  ;;  %v1378_v30 = vadd.f32 1.0, %v1377_v35  ;;  %v1380_v2 = vand.u32 2147483647, %v3187_v45  ;;  %v3226_v49 = vclamps-f32 %v424_v55, 0.999999 }
 0x114   :  { %v1365_v47 = vadd.f32 1.0, %v1189_v20  ;;  %v1956_v17 = vmul.f32 %v3079_v63, %v1892_v54  ;;  %v1349_v40 = vmul.f32 0.6931472, %v2315_v12  ;;  %v728_v36 = vmul.f32 -0.5, %v3195_v10 }
 0x115   :  { %v423_v4 = vmul.f32 %v3149_v13, %v295_v39  ;;  %v731_v23 = vand.u32 2147483647, %v3195_v10  ;;  %v1368_v60 = vmul.f32 -0.5, %v1189_v20  ;;  %v752_v19 = vadd.f32 1.0, %v3226_v49 }
 0x116   :  { %2320 = vlog2.f32 %v1365_v47  ;;  %v2020_v11 = vmul.f32 %v2608_v18, %v1956_v17  ;;  %v715_v50 = vsel %vm3210_vm10, %v712_v15, %v709_v25  ;;  %v1355_v63 = vsel %vm3215_vm11, %v1352_v51, %v1349_v40 }
 0x117   :  { %v736_v14 = vmul.f32 0.6931472, %v2313_v56  ;;  %v1827_v57 = vsub.f32 %v715_v50, %v1355_v63  ;;  %vm3239_vm13 = vcmp.lt.f32.partialorder %v1380_v2, 0.0004427343  ;;  %2322 = vlog2.f32 %v752_v19 }
 0x118   :  { %v1192_v39 = vsub.f32 0.0, %v3226_v49  ;;  %v2317_v44 = vpop.eup %2316  ;;  %2084 = vst [vmem:[#allocation5 + $0x68] sm:$0xff] %v2020_v11  ;;  %v1379_v7 = vmul.f32 %v1378_v30, %v3187_v45  ;;  %v729_v31 = vadd.f32 1.0, %v728_v36  ;;  %v1371_v41 = vand.u32 2147483647, %v1189_v20  ;;  %v2610_v36 = vld [vmem:[#allocation2 + $0x78] sm:$0xff] }
 0x119   :  { %v3245_v5 = vclamps-f32 %v423_v4, 0.999999  ;;  %v1891_v28 = vmul.f32 0.5, %v1827_v57  ;;  %v1376_v59 = vmul.f32 0.6931472, %v2317_v44  ;;  %v1369_v9 = vadd.f32 1.0, %v1368_v60 }
 0x11a   :  { %v1392_v29 = vadd.f32 1.0, %v1192_v39  ;;  %v742_v52 = vsel %vm3219_vm12, %v739_v46, %v736_v14  ;;  %vm3249_vm14 = vcmp.lt.f32.partialorder %v731_v23, 0.0004427343  ;;  %v426_v45 = vmul.f32 %v3157_v61, %v298_v58 }
 0x11b   :  { %v743_v1 = vadd.f32 1.0, %v3245_v5  ;;  %v2319_v32 = vpop.eup %2318  ;;  %v1955_v35 = vmul.f32 %v3097_v3, %v1891_v28  ;;  %v1382_v34 = vsel %vm3239_vm13, %v1379_v7, %v1376_v59  ;;  %v755_v48 = vmul.f32 -0.5, %v3226_v49  ;;  %v3267_v3 = vpop.xlane.xlu1 %193 }
 0x11c   :  { %2324 = vlog2.f32 %v1392_v29  ;;  %v1830_v53 = vsub.f32 %v742_v52, %v1382_v34  ;;  %v730_v21 = vmul.f32 %v3195_v10, %v729_v31  ;;  %vm3262_vm15 = vcmp.lt.f32.partialorder %v1371_v41, 0.0004427343  ;;  %v3274_v10 = vpop.xlane.xlu0 %191  ;;  %v2611_v34 = vld [vmem:[#allocation2 + $0x70] sm:$0xff] }
 0x11d   :  { %v1395_v37 = vmul.f32 -0.5, %v1192_v39  ;;  %v2019_v15 = vmul.f32 %v2609_v26, %v1955_v35  ;;  %v1370_v58 = vmul.f32 %v1369_v9, %v1189_v20  ;;  %v758_v0 = vand.u32 2147483647, %v3226_v49 }
 0x11e   :  { %2326 = vlog2.f32 %v743_v1  ;;  %v1894_v38 = vmul.f32 0.5, %v1830_v53  ;;  %v727_v8 = vmul.f32 0.6931472, %v2319_v32  ;;  %v3270_v27 = vsub.f32 0.0, %v3245_v5 }
 0x11f   :  { %v3272_v43 = vclamps-f32 %v426_v45, 0.999999  ;;  %2083 = vst [vmem:[#allocation5 + $0x60] sm:$0xff] %v2019_v15  ;;  %v756_v54 = vadd.f32 1.0, %v755_v48  ;;  %v1398_v25 = vand.u32 2147483647, %v1192_v39  ;;  %2328 = vrsqrt.f32 %v297_v24  ;;  %v3296_v50 = vpop.xlane.xlu1 %197 }
 0x120   :  { %v2321_v56 = vpop.eup %2320  ;;  %v746_v20 = vmul.f32 -0.5, %v3245_v5  ;;  %v1958_v51 = vmul.f32 %v3110_v22, %v1894_v38  ;;  %v1396_v12 = vadd.f32 1.0, %v1395_v37  ;;  %v1383_v30 = vadd.f32 1.0, %v3270_v27  ;;  %v3299_v62 = vpop.xlane.xlu0 %195 }
 0x121   :  { %v1367_v46 = vmul.f32 0.6931472, %v2321_v56  ;;  %v2323_v2 = vpop.eup %2322  ;;  %vm3281_vm0 = vcmp.lt.f32.partialorder %v758_v0, 0.0004427343  ;;  %v770_v17 = vadd.f32 1.0, %v3272_v43  ;;  %v733_v23 = vsel %vm3249_vm14, %v730_v21, %v727_v8 }
 0x122   :  { %v300_v40 = vmax.f32 %v3267_v3, 1e-30  ;;  %v2022_v4 = vmul.f32 %v2610_v36, %v1958_v51  ;;  %2330 = vlog2.f32 %v1383_v30  ;;  %v754_v19 = vmul.f32 0.6931472, %v2323_v2 }
 0x123   :  { %v1373_v22 = vsel %vm3262_vm15, %v1370_v58, %v1367_v46  ;;  %v757_v18 = vmul.f32 %v3226_v49, %v756_v54  ;;  %vm3292_vm1 = vcmp.lt.f32.partialorder %v1398_v25, 0.0004427343  ;;  %v1397_v63 = vmul.f32 %v1396_v12, %v1192_v39  ;;  %v3318_v21 = vpop.xlane.xlu1 %201 }
 0x124   :  { %v1829_v60 = vsub.f32 %v733_v23, %v1373_v22  ;;  %2086 = vst [vmem:[#allocation5 + $0x78] sm:$0xff] %v2022_v4  ;;  %v747_v14 = vadd.f32 1.0, %v746_v20  ;;  %2332 = vlog2.f32 %v770_v17  ;;  %v1194_v57 = vsub.f32 0.0, %v3272_v43  ;;  %v3324_v58 = vpop.xlane.xlu0 %199 }
 0x125   :  { %v1386_v31 = vmul.f32 -0.5, %v3270_v27  ;;  %2334 = vrsqrt.f32 %v300_v40  ;;  %v299_v49 = vmax.f32 %v3274_v10, 1e-30  ;;  %v749_v28 = vand.u32 2147483647, %v3245_v5 }
 0x126   :  { %v2325_v44 = vpop.eup %2324  ;;  %v1893_v7 = vmul.f32 0.5, %v1829_v60  ;;  %v773_v39 = vmul.f32 -0.5, %v3272_v43  ;;  %v1410_v59 = vadd.f32 1.0, %v1194_v57  ;;  %v760_v52 = vsel %vm3281_vm0, %v757_v18, %v754_v19 }
 0x127   :  { %v1394_v41 = vmul.f32 0.6931472, %v2325_v44  ;;  %v1389_v6 = vand.u32 2147483647, %v3270_v27  ;;  %2336 = vrsqrt.f32 %v299_v49  ;;  %v1413_v45 = vmul.f32 -0.5, %v1194_v57 }
 0x128   :  { %v2327_v9 = vpop.eup %2326  ;;  %v1957_v29 = vmul.f32 %v3117_v33, %v1893_v7  ;;  %2338 = vlog2.f32 %v1410_v59  ;;  %v302_v32 = vmax.f32 %v3296_v50, 1e-30  ;;  %v1387_v53 = vadd.f32 1.0, %v1386_v31  ;;  %v3364_v11 = vpop.xlane.xlu0 %203 }
 0x129   :  { %v1400_v1 = vsel %vm3292_vm1, %v1397_v63, %v1394_v41  ;;  %v3316_v35 = vpop.eup %2328  ;;  %v745_v55 = vmul.f32 0.6931472, %v2327_v9  ;;  %v774_v37 = vadd.f32 1.0, %v773_v39  ;;  %v776_v26 = vand.u32 2147483647, %v3272_v43 }
 0x12a   :  { %v2021_v48 = vmul.f32 %v2611_v34, %v1957_v29  ;;  %v1832_v33 = vsub.f32 %v760_v52, %v1400_v1  ;;  %v425_v15 = vmul.f32 %v3316_v35, %v297_v24  ;;  %v748_v38 = vmul.f32 %v3245_v5, %v747_v14  ;;  %v2613_v34 = vld [vmem:[#allocation2 + $0x80] sm:$0xff] }
 0x12b   :  { %vm3327_vm2 = vcmp.lt.f32.partialorder %v749_v28, 0.0004427343  ;;  %v1416_v56 = vand.u32 2147483647, %v1194_v57  ;;  %vm3331_vm3 = vcmp.lt.f32.partialorder %v1389_v6, 0.0004427343  ;;  %2340 = vrsqrt.f32 %v302_v32 }
 0x12c   :  { %2085 = vst [vmem:[#allocation5 + $0x70] sm:$0xff] %v2021_v48  ;;  %v1896_v0 = vmul.f32 0.5, %v1832_v33  ;;  %v2331_v54 = vpop.eup %2330  ;;  %v1414_v20 = vadd.f32 1.0, %v1413_v45  ;;  %v3335_v42 = vclamps-f32 %v425_v15, 0.999999  ;;  %v1388_v5 = vmul.f32 %v1387_v53, %v3270_v27 }
 0x12d   :  { %v1385_v51 = vmul.f32 0.6931472, %v2331_v54  ;;  %v301_v46 = vmax.f32 %v3299_v62, 1e-30  ;;  %v751_v30 = vsel %vm3327_vm2, %v748_v38, %v745_v55  ;;  %v775_v2 = vmul.f32 %v3272_v43, %v774_v37  ;;  %v3361_v43 = vpop.xlane.xlu1 %205 }
 0x12e   :  { %v1960_v24 = vmul.f32 %v3135_v16, %v1896_v0  ;;  %v2333_v12 = vpop.eup %2332  ;;  %vm3345_vm4 = vcmp.lt.f32.partialorder %v776_v26, 0.0004427343  ;;  %v761_v17 = vadd.f32 1.0, %v3335_v42  ;;  %v2612_v16 = vld [vmem:[#allocation2 + $0x88] sm:$0xff]  ;;  %vm3354_vm5 = vcmp.lt.f32.partialorder %v1416_v56, 0.0004427343 }
 0x12f   :  { %v3350_v36 = vpop.eup %2334  ;;  %v1391_v27 = vsel %vm3331_vm3, %v1388_v5, %v1385_v51  ;;  %v3359_v22 = vsub.f32 0.0, %v3335_v42  ;;  %v1415_v19 = vmul.f32 %v1414_v20, %v1194_v57  ;;  %v304_v18 = vmax.f32 %v3318_v21, 1e-30 }
 0x130   :  { %v2024_v4 = vmul.f32 %v2612_v16, %v1960_v24  ;;  %v1831_v60 = vsub.f32 %v751_v30, %v1391_v27  ;;  %2342 = vlog2.f32 %v761_v17  ;;  %v772_v14 = vmul.f32 0.6931472, %v2333_v12 }
 0x131   :  { %v3366_v63 = vpop.eup %2336  ;;  %v1401_v44 = vadd.f32 1.0, %v3359_v22  ;;  %2344 = vrsqrt.f32 %v301_v46  ;;  %v303_v7 = vmax.f32 %v3324_v58, 1e-30  ;;  %v764_v57 = vmul.f32 -0.5, %v3335_v42 }
 0x132   :  { %2088 = vst [vmem:[#allocation5 + $0x88] sm:$0xff] %v2024_v4  ;;  %v2339_v31 = vpop.eup %2338  ;;  %v1895_v41 = vmul.f32 0.5, %v1831_v60  ;;  %v428_v28 = vmul.f32 %v3350_v36, %v300_v40  ;;  %v427_v39 = vmul.f32 %v3366_v63, %v299_v49  ;;  %v306_v9 = vmax.f32 %v3361_v43, 1e-30  ;;  %v3394_v49 = vpop.xlane.xlu1 %209 }
 0x133   :  { %v1412_v59 = vmul.f32 0.6931472, %v2339_v31  ;;  %2346 = vlog2.f32 %v1401_v44  ;;  %v305_v29 = vmax.f32 %v3364_v11, 1e-30  ;;  %v1404_v6 = vmul.f32 -0.5, %v3359_v22 }
 0x134   :  { %v1959_v52 = vmul.f32 %v3149_v13, %v1895_v41  ;;  %v3383_v1 = vclamps-f32 %v428_v28, 0.999999  ;;  %v3385_v45 = vclamps-f32 %v427_v39, 0.999999  ;;  %v778_v3 = vsel %vm3345_vm4, %v775_v2, %v772_v14  ;;  %v2614_v2 = vld [vmem:[#allocation2 + $0x98] sm:$0xff] }
 0x135   :  { %v1418_v10 = vsel %vm3354_vm5, %v1415_v19, %v1412_v59  ;;  %v767_v40 = vand.u32 2147483647, %v3335_v42  ;;  %2348 = vrsqrt.f32 %v304_v18  ;;  %v3396_v13 = vpop.eup %2340  ;;  %v765_v53 = vadd.f32 1.0, %v764_v57 }
 0x136   :  { %v2023_v48 = vmul.f32 %v2613_v34, %v1959_v52  ;;  %v1834_v33 = vsub.f32 %v778_v3, %v1418_v10  ;;  %v788_v55 = vadd.f32 1.0, %v3383_v1  ;;  %v1407_v37 = vand.u32 2147483647, %v3359_v22 }
 0x137   :  { %v3401_v26 = vsub.f32 0.0, %v3383_v1  ;;  %v779_v15 = vadd.f32 1.0, %v3385_v45  ;;  %2350 = vrsqrt.f32 %v303_v7  ;;  %v1405_v38 = vadd.f32 1.0, %v1404_v6 }
 0x138   :  { %2087 = vst [vmem:[#allocation5 + $0x80] sm:$0xff] %v2023_v48  ;;  %v1898_v0 = vmul.f32 0.5, %v1834_v33  ;;  %2352 = vlog2.f32 %v788_v55  ;;  %v308_v8 = vmax.f32 %v3394_v49, 1e-30  ;;  %v791_v56 = vmul.f32 -0.5, %v3383_v1 }
 0x139   :  { %v1428_v54 = vadd.f32 1.0, %v3401_v26  ;;  %v430_v25 = vmul.f32 %v3396_v13, %v302_v32  ;;  %2354 = vrsqrt.f32 %v306_v9  ;;  %v766_v51 = vmul.f32 %v3335_v42, %v765_v53 }
 0x13a   :  { %v2343_v20 = vpop.eup %2342  ;;  %v1962_v24 = vmul.f32 %v3157_v61, %v1898_v0  ;;  %vm3416_vm6 = vcmp.lt.f32.partialorder %v767_v40, 0.0004427343  ;;  %2356 = vlog2.f32 %v779_v15  ;;  %vm3422_vm7 = vcmp.lt.f32.partialorder %v1407_v37, 0.0004427343 }
 0x13b   :  { %v3420_v12 = vpop.eup %2344  ;;  %v794_v50 = vand.u32 2147483647, %v3383_v1  ;;  %2358 = vlog2.f32 %v1428_v54  ;;  %v782_v32 = vmul.f32 -0.5, %v3385_v45  ;;  %v763_v47 = vmul.f32 0.6931472, %v2343_v20 }
 0x13c   :  { %v2026_v61 = vmul.f32 %v2614_v2, %v1962_v24  ;;  %v1431_v42 = vmul.f32 -0.5, %v3401_v26  ;;  %v3430_v17 = vsub.f32 0.0, %v3385_v45  ;;  %v1406_v4 = vmul.f32 %v1405_v38, %v3359_v22  ;;  %v2615_v2 = vld [vmem:[#allocation2 + $0x90] sm:$0xff] }
 0x13d   :  { %v2347_v16 = vpop.eup %2346  ;;  %v792_v27 = vadd.f32 1.0, %v791_v56  ;;  %v785_v23 = vand.u32 2147483647, %v3385_v45  ;;  %v3434_v60 = vclamps-f32 %v430_v25, 0.999999  ;;  %2360 = vrsqrt.f32 %v305_v29 }
 0x13e   :  { %2090 = vst [vmem:[#allocation5 + $0x98] sm:$0xff] %v2026_v61  ;;  %v1403_v19 = vmul.f32 0.6931472, %v2347_v16  ;;  %v1434_v14 = vand.u32 2147483647, %v3401_v26  ;;  %v1419_v44 = vadd.f32 1.0, %v3430_v17  ;;  %v429_v28 = vmul.f32 %v3420_v12, %v301_v46 }
 0x13f   :  { %v3440_v31 = vpop.eup %2348  ;;  %v783_v41 = vadd.f32 1.0, %v782_v32  ;;  %v806_v57 = vadd.f32 1.0, %v3434_v60  ;;  %v1198_v22 = vsub.f32 0.0, %v3434_v60  ;;  %v769_v39 = vsel %vm3416_vm6, %v766_v51, %v763_v47 }
 0x140   :  { %v1409_v59 = vsel %vm3422_vm7, %v1406_v4, %v1403_v19  ;;  %v1432_v52 = vadd.f32 1.0, %v1431_v42  ;;  %2362 = vlog2.f32 %v1419_v44  ;;  %v793_v10 = vmul.f32 %v3383_v1, %v792_v27 }
 0x141   :  { %v3451_v6 = vpop.eup %2350  ;;  %v1833_v3 = vsub.f32 %v769_v39, %v1409_v59  ;;  %vm3454_vm8 = vcmp.lt.f32.partialorder %v794_v50, 0.0004427343  ;;  %2364 = vlog2.f32 %v806_v57  ;;  %vm3458_vm9 = vcmp.lt.f32.partialorder %v1434_v14, 0.0004427343 }
 0x142   :  { %v2353_v62 = vpop.eup %2352  ;;  %v1422_v34 = vmul.f32 -0.5, %v3430_v17  ;;  %v809_v48 = vmul.f32 -0.5, %v3434_v60  ;;  %v1446_v33 = vadd.f32 1.0, %v1198_v22  ;;  %v784_v1 = vmul.f32 %v3385_v45, %v783_v41 }
 0x143   :  { %v3464_v53 = vpop.eup %2354  ;;  %v1897_v55 = vmul.f32 0.5, %v1833_v3  ;;  %v1449_v37 = vmul.f32 -0.5, %v1198_v22  ;;  %v3467_v15 = vclamps-f32 %v429_v28, 0.999999  ;;  %v790_v38 = vmul.f32 0.6931472, %v2353_v62 }
 0x144   :  { %v2357_v0 = vpop.eup %2356  ;;  %v1433_v56 = vmul.f32 %v1432_v52, %v3401_v26  ;;  %2366 = vlog2.f32 %v1446_v33  ;;  %v432_v54 = vmul.f32 %v3440_v31, %v304_v18  ;;  %v1425_v24 = vand.u32 2147483647, %v3430_v17 }
 0x145   :  { %v2359_v25 = vpop.eup %2358  ;;  %v1961_v20 = vmul.f32 %v3316_v35, %v1897_v55  ;;  %v812_v51 = vand.u32 2147483647, %v3434_v60  ;;  %v797_v45 = vadd.f32 1.0, %v3467_v15  ;;  %v1423_v30 = vadd.f32 1.0, %v1422_v34 }
 0x146   :  { %v1430_v5 = vmul.f32 0.6931472, %v2359_v25  ;;  %v810_v50 = vadd.f32 1.0, %v809_v48  ;;  %v1452_v32 = vand.u32 2147483647, %v1198_v22  ;;  %v1450_v61 = vadd.f32 1.0, %v1449_v37 }
 0x147   :  { %v2025_v26 = vmul.f32 %v2615_v2, %v1961_v20  ;;  %2368 = vlog2.f32 %v797_v45  ;;  %v3478_v21 = vsub.f32 0.0, %v3467_v15  ;;  %v3480_v18 = vpop.eup %2360  ;;  %v796_v35 = vsel %vm3454_vm8, %v793_v10, %v790_v38 }
 0x148   :  { %v1436_v47 = vsel %vm3458_vm9, %v1433_v56, %v1430_v5  ;;  %v781_v42 = vmul.f32 0.6931472, %v2357_v0  ;;  %v3486_v16 = vclamps-f32 %v432_v54, 0.999999  ;;  %vm3488_vm10 = vcmp.lt.f32.partialorder %v785_v23, 0.0004427343 }
 0x149   :  { %2089 = vst [vmem:[#allocation5 + $0x90] sm:$0xff] %v2025_v26  ;;  %v1836_v4 = vsub.f32 %v796_v35, %v1436_v47  ;;  %vm3492_vm11 = vcmp.lt.f32.partialorder %v1425_v24, 0.0004427343  ;;  %v1437_v14 = vadd.f32 1.0, %v3478_v21  ;;  %v1424_v41 = vmul.f32 %v1423_v30, %v3430_v17 }
 0x14a   :  { %v2363_v44 = vpop.eup %2362  ;;  %vm3498_vm12 = vcmp.lt.f32.partialorder %v812_v51, 0.0004427343  ;;  %v800_v28 = vmul.f32 -0.5, %v3467_v15  ;;  %v824_v23 = vadd.f32 1.0, %v3486_v16  ;;  %v811_v3 = vmul.f32 %v3434_v60, %v810_v50 }
 0x14b   :  { %v2365_v39 = vpop.eup %2364  ;;  %v1900_v59 = vmul.f32 0.5, %v1836_v4  ;;  %v1421_v52 = vmul.f32 0.6931472, %v2363_v44  ;;  %2370 = vlog2.f32 %v1437_v14  ;;  %v787_v10 = vsel %vm3488_vm10, %v784_v1, %v781_v42  ;;  %v2616_v1 = vld [vmem:[#allocation2 + $0xa8] sm:$0xff] }
 0x14c   :  { %v1451_v40 = vmul.f32 %v1450_v61, %v1198_v22  ;;  %vm3507_vm13 = vcmp.lt.f32.partialorder %v1452_v32, 0.0004427343  ;;  %v803_v62 = vand.u32 2147483647, %v3467_v15  ;;  %v808_v48 = vmul.f32 0.6931472, %v2365_v39 }
 0x14d   :  { %v1964_v46 = vmul.f32 %v3350_v36, %v1900_v59  ;;  %v1427_v34 = vsel %vm3492_vm11, %v1424_v41, %v1421_v52  ;;  %v1440_v33 = vmul.f32 -0.5, %v3478_v21  ;;  %v801_v37 = vadd.f32 1.0, %v800_v28  ;;  %v2617_v61 = vld [vmem:[#allocation2 + $0xa0] sm:$0xff]  ;;  %v2618_v59 = vld [vmem:[#allocation2 + $0xb8] sm:$0xff] }
 0x14e   :  { %v2367_v60 = vpop.eup %2366  ;;  %v1835_v55 = vsub.f32 %v787_v10, %v1427_v34  ;;  %2372 = vlog2.f32 %v824_v23  ;;  %v3517_v22 = vsub.f32 0.0, %v3486_v16  ;;  %v431_v36 = vmul.f32 %v3451_v6, %v303_v7  ;;  %v3568_v34 = vpop.xlane.xlu0 %207 }
 0x14f   :  { %v2028_v0 = vmul.f32 %v2616_v1, %v1964_v46  ;;  %v1448_v38 = vmul.f32 0.6931472, %v2367_v60  ;;  %v434_v56 = vmul.f32 %v3464_v53, %v306_v9  ;;  %vm3525_vm14 = vcmp.lt.f32.partialorder %v803_v62, 0.0004427343 }
 0x150   :  { %v1899_v54 = vmul.f32 0.5, %v1835_v55  ;;  %v827_v20 = vmul.f32 -0.5, %v3486_v16  ;;  %v1464_v24 = vadd.f32 1.0, %v3517_v22  ;;  %v814_v58 = vsel %vm3498_vm12, %v811_v3, %v808_v48 }
 0x151   :  { %v2369_v51 = vpop.eup %2368  ;;  %2092 = vst [vmem:[#allocation5 + $0xa8] sm:$0xff] %v2028_v0  ;;  %v1454_v7 = vsel %vm3507_vm13, %v1451_v40, %v1448_v38  ;;  %v1441_v43 = vadd.f32 1.0, %v1440_v33  ;;  %v3535_v45 = vclamps-f32 %v431_v36, 0.999999  ;;  %v3538_v30 = vclamps-f32 %v434_v56, 0.999999 }
 0x152   :  { %v1963_v9 = vmul.f32 %v3366_v63, %v1899_v54  ;;  %v1838_v5 = vsub.f32 %v814_v58, %v1454_v7  ;;  %2374 = vlog2.f32 %v1464_v24  ;;  %v802_v50 = vmul.f32 %v3467_v15, %v801_v37  ;;  %v2619_v58 = vld [vmem:[#allocation2 + $0xb0] sm:$0xff] }
 0x153   :  { %v1443_v32 = vand.u32 2147483647, %v3478_v21  ;;  %v1467_v2 = vmul.f32 -0.5, %v3517_v22  ;;  %v815_v26 = vadd.f32 1.0, %v3535_v45  ;;  %v799_v42 = vmul.f32 0.6931472, %v2369_v51  ;;  %v3581_v51 = vpop.xlane.xlu1 %213 }
 0x154   :  { %v2027_v35 = vmul.f32 %v2617_v61, %v1963_v9  ;;  %v1902_v47 = vmul.f32 0.5, %v1838_v5  ;;  %v830_v4 = vand.u32 2147483647, %v3486_v16  ;;  %v1442_v63 = vmul.f32 %v1441_v43, %v3478_v21 }
 0x155   :  { %v2371_v27 = vpop.eup %2370  ;;  %v828_v19 = vadd.f32 1.0, %v827_v20  ;;  %2376 = vlog2.f32 %v815_v26  ;;  %v1199_v14 = vsub.f32 0.0, %v3535_v45  ;;  %v1470_v41 = vand.u32 2147483647, %v3517_v22 }
 0x156   :  { %2091 = vst [vmem:[#allocation5 + $0xa0] sm:$0xff] %v2027_v35  ;;  %v1966_v15 = vmul.f32 %v3396_v13, %v1902_v47  ;;  %v1439_v44 = vmul.f32 0.6931472, %v2371_v27  ;;  %v842_v57 = vadd.f32 1.0, %v3538_v30  ;;  %vm1444_vm15 = vcmp.lt.f32.partialorder %v1443_v32, 0.0004427343 }
 0x157   :  { %v1468_v28 = vadd.f32 1.0, %v1467_v2  ;;  %v1455_v23 = vadd.f32 1.0, %v1199_v14  ;;  %v433_v39 = vmul.f32 %v3480_v18, %v305_v29  ;;  %v805_v3 = vsel %vm3525_vm14, %v802_v50, %v799_v42  ;;  %v3596_v2 = vpop.xlane.xlu0 %211 }
 0x158   :  { %v2373_v21 = vpop.eup %2372  ;;  %v2030_v52 = vmul.f32 %v2618_v59, %v1966_v15  ;;  %v1445_v10 = vsel %vm1444_vm15, %v1442_v63, %v1439_v44  ;;  %2378 = vlog2.f32 %v842_v57  ;;  %vm3555_vm0 = vcmp.lt.f32.partialorder %v830_v4, 0.0004427343 }
 0x159   :  { %v1837_v13 = vsub.f32 %v805_v3, %v1445_v10  ;;  %v818_v17 = vmul.f32 -0.5, %v3535_v45  ;;  %2380 = vlog2.f32 %v1455_v23  ;;  %v829_v11 = vmul.f32 %v3486_v16, %v828_v19  ;;  %v2620_v10 = vld [vmem:[#allocation2 + $0xc8] sm:$0xff] }
 0x15a   :  { %2094 = vst [vmem:[#allocation5 + $0xb8] sm:$0xff] %v2030_v52  ;;  %vm3561_vm1 = vcmp.lt.f32.partialorder %v1470_v41, 0.0004427343  ;;  %v1458_v62 = vmul.f32 -0.5, %v1199_v14  ;;  %v3566_v46 = vsub.f32 0.0, %v3538_v30  ;;  %2382 = vrsqrt.f32 %v308_v8 }
 0x15b   :  { %v1901_v48 = vmul.f32 0.5, %v1837_v13  ;;  %v826_v33 = vmul.f32 0.6931472, %v2373_v21  ;;  %v3570_v60 = vclamps-f32 %v433_v39, 0.999999  ;;  %v1469_v16 = vmul.f32 %v1468_v28, %v3517_v22 }
 0x15c   :  { %v2375_v55 = vpop.eup %2374  ;;  %v821_v37 = vand.u32 2147483647, %v3535_v45  ;;  %v1461_v1 = vand.u32 2147483647, %v1199_v14  ;;  %v1482_v0 = vadd.f32 1.0, %v3566_v46  ;;  %v819_v56 = vadd.f32 1.0, %v818_v17 }
 0x15d   :  { %v1965_v38 = vmul.f32 %v3420_v12, %v1901_v48  ;;  %v1466_v36 = vmul.f32 0.6931472, %v2375_v55  ;;  %v833_v54 = vadd.f32 1.0, %v3570_v60  ;;  %v1459_v25 = vadd.f32 1.0, %v1458_v62 }
 0x15e   :  { %v845_v20 = vmul.f32 -0.5, %v3538_v30  ;;  %v848_v24 = vand.u32 2147483647, %v3538_v30  ;;  %2384 = vlog2.f32 %v1482_v0  ;;  %v832_v43 = vsel %vm3555_vm0, %v829_v11, %v826_v33  ;;  %v3627_v11 = vpop.xlane.xlu0 %215 }
 0x15f   :  { %v2377_v22 = vpop.eup %2376  ;;  %v2029_v7 = vmul.f32 %v2619_v58, %v1965_v38  ;;  %v1472_v12 = vsel %vm3561_vm1, %v1469_v16, %v1466_v36  ;;  %v1485_v9 = vmul.f32 -0.5, %v3566_v46  ;;  %vm3588_vm2 = vcmp.lt.f32.partialorder %v821_v37, 0.0004427343 }
 0x160   :  { %v1840_v5 = vsub.f32 %v832_v43, %v1472_v12  ;;  %vm3592_vm3 = vcmp.lt.f32.partialorder %v1461_v1, 0.0004427343  ;;  %2386 = vlog2.f32 %v833_v54  ;;  %v817_v26 = vmul.f32 0.6931472, %v2377_v22  ;;  %v2621_v12 = vld [vmem:[#allocation2 + $0xc0] sm:$0xff] }
 0x161   :  { %2093 = vst [vmem:[#allocation5 + $0xb0] sm:$0xff] %v2029_v7  ;;  %v820_v61 = vmul.f32 %v3535_v45, %v819_v56  ;;  %v3600_v35 = vsub.f32 0.0, %v3570_v60  ;;  %v307_v47 = vmax.f32 %v3568_v34, 1e-30  ;;  %v1460_v27 = vmul.f32 %v1459_v25, %v1199_v14  ;;  %v3614_v14 = vpop.xlane.xlu1 %217 }
 0x162   :  { %v2379_v42 = vpop.eup %2378  ;;  %v1904_v4 = vmul.f32 0.5, %v1840_v5  ;;  %v846_v63 = vadd.f32 1.0, %v845_v20  ;;  %vm3603_vm4 = vcmp.lt.f32.partialorder %v848_v24, 0.0004427343  ;;  %v1486_v44 = vadd.f32 1.0, %v1485_v9  ;;  %v3659_v43 = vpop.xlane.xlu0 %219 }
 0x163   :  { %v2381_v15 = vpop.eup %2380  ;;  %v1488_v41 = vand.u32 2147483647, %v3566_v46  ;;  %v1473_v57 = vadd.f32 1.0, %v3600_v35  ;;  %v310_v45 = vmax.f32 %v3581_v51, 1e-30  ;;  %v836_v39 = vmul.f32 -0.5, %v3570_v60 }
 0x164   :  { %v1968_v28 = vmul.f32 %v3440_v31, %v1904_v4  ;;  %v1457_v23 = vmul.f32 0.6931472, %v2381_v15  ;;  %2388 = vrsqrt.f32 %v307_v47  ;;  %v3616_v21 = vpop.eup %2382  ;;  %v823_v59 = vsel %vm3588_vm2, %v820_v61, %v817_v26 }
 0x165   :  { %v844_v52 = vmul.f32 0.6931472, %v2379_v42  ;;  %2390 = vlog2.f32 %v1473_v57  ;;  %v1476_v3 = vmul.f32 -0.5, %v3600_v35  ;;  %v436_v40 = vmul.f32 %v3616_v21, %v308_v8 }
 0x166   :  { %v2032_v13 = vmul.f32 %v2620_v10, %v1968_v28  ;;  %v1463_v31 = vsel %vm3592_vm3, %v1460_v27, %v1457_v23  ;;  %v309_v17 = vmax.f32 %v3596_v2, 1e-30  ;;  %vm3629_vm5 = vcmp.lt.f32.partialorder %v1488_v41, 0.0004427343 }
 0x167   :  { %v1839_v29 = vsub.f32 %v823_v59, %v1463_v31  ;;  %2392 = vrsqrt.f32 %v310_v45  ;;  %v312_v48 = vmax.f32 %v3614_v14, 1e-30  ;;  %v847_v49 = vmul.f32 %v3538_v30, %v846_v63  ;;  %v3647_v30 = vpop.xlane.xlu1 %221 }
 0x168   :  { %v2385_v33 = vpop.eup %2384  ;;  %2096 = vst [vmem:[#allocation5 + $0xc8] sm:$0xff] %v2032_v13  ;;  %v837_v55 = vadd.f32 1.0, %v836_v39  ;;  %v839_v8 = vand.u32 2147483647, %v3570_v60  ;;  %v3638_v16 = vclamps-f32 %v436_v40, 0.999999  ;;  %v1487_v0 = vmul.f32 %v1486_v44, %v3566_v46 }
 0x169   :  { %v1903_v37 = vmul.f32 0.5, %v1839_v29  ;;  %v1484_v1 = vmul.f32 0.6931472, %v2385_v33  ;;  %v1479_v38 = vand.u32 2147483647, %v3600_v35  ;;  %v850_v56 = vsel %vm3603_vm4, %v847_v49, %v844_v52  ;;  %v2622_v39 = vld [vmem:[#allocation2 + $0xd8] sm:$0xff] }
 0x16a   :  { %v2387_v36 = vpop.eup %2386  ;;  %v1477_v54 = vadd.f32 1.0, %v1476_v3  ;;  %v860_v25 = vadd.f32 1.0, %v3638_v16  ;;  %2394 = vrsqrt.f32 %v309_v17  ;;  %v3653_v46 = vsub.f32 0.0, %v3638_v16 }
 0x16b   :  { %v1967_v20 = vmul.f32 %v3451_v6, %v1903_v37  ;;  %v1490_v24 = vsel %vm3629_vm5, %v1487_v0, %v1484_v1  ;;  %2396 = vrsqrt.f32 %v312_v48  ;;  %v838_v58 = vmul.f32 %v3570_v60, %v837_v55  ;;  %v3683_v41 = vpop.xlane.xlu1 %225 }
 0x16c   :  { %v1842_v22 = vsub.f32 %v850_v56, %v1490_v24  ;;  %2398 = vlog2.f32 %v860_v25  ;;  %v311_v7 = vmax.f32 %v3627_v11, 1e-30  ;;  %v835_v6 = vmul.f32 0.6931472, %v2387_v36 }
 0x16d   :  { %v2031_v9 = vmul.f32 %v2621_v12, %v1967_v20  ;;  %v863_v5 = vmul.f32 -0.5, %v3638_v16  ;;  %v1500_v50 = vadd.f32 1.0, %v3653_v46  ;;  %vm3665_vm6 = vcmp.lt.f32.partialorder %v839_v8, 0.0004427343  ;;  %v2623_v12 = vld [vmem:[#allocation2 + $0xd0] sm:$0xff] }
 0x16e   :  { %v3663_v32 = vpop.eup %2388  ;;  %v1906_v26 = vmul.f32 0.5, %v1842_v22  ;;  %v1478_v60 = vmul.f32 %v1477_v54, %v3600_v35  ;;  %vm3670_vm7 = vcmp.lt.f32.partialorder %v1479_v38, 0.0004427343  ;;  %v314_v63 = vmax.f32 %v3647_v30, 1e-30  ;;  %v3723_v54 = vpop.xlane.xlu0 %223 }
 0x16f   :  { %v2391_v4 = vpop.eup %2390  ;;  %2095 = vst [vmem:[#allocation5 + $0xc0] sm:$0xff] %v2031_v9  ;;  %2400 = vlog2.f32 %v1500_v50  ;;  %v435_v27 = vmul.f32 %v3663_v32, %v307_v47  ;;  %v313_v19 = vmax.f32 %v3659_v43, 1e-30  ;;  %v866_v35 = vand.u32 2147483647, %v3638_v16  ;;  %v3725_v22 = vpop.xlane.xlu1 %229 }
 0x170   :  { %v1970_v15 = vmul.f32 %v3464_v53, %v1906_v26  ;;  %v1475_v44 = vmul.f32 0.6931472, %v2391_v4  ;;  %2402 = vrsqrt.f32 %v311_v7  ;;  %v841_v34 = vsel %vm3665_vm6, %v838_v58, %v835_v6 }
 0x171   :  { %v3685_v57 = vpop.eup %2392  ;;  %v864_v47 = vadd.f32 1.0, %v863_v5  ;;  %v1503_v28 = vmul.f32 -0.5, %v3653_v46  ;;  %v2180_v23 = vclamps-f32 %v435_v27, 0.999999  ;;  %v1506_v52 = vand.u32 2147483647, %v3653_v46 }
 0x172   :  { %v2034_v59 = vmul.f32 %v2622_v39, %v1970_v15  ;;  %v1481_v53 = vsel %vm3670_vm7, %v1478_v60, %v1475_v44  ;;  %v438_v3 = vmul.f32 %v3685_v57, %v310_v45  ;;  %v316_v40 = vmax.f32 %v3683_v41, 1e-30 }
 0x173   :  { %v1841_v10 = vsub.f32 %v841_v34, %v1481_v53  ;;  %v851_v13 = vadd.f32 1.0, %v2180_v23  ;;  %v854_v31 = vmul.f32 -0.5, %v2180_v23  ;;  %vm3699_vm8 = vcmp.lt.f32.partialorder %v866_v35, 0.0004427343 }
 0x174   :  { %v3697_v29 = vpop.eup %2394  ;;  %2098 = vst [vmem:[#allocation5 + $0xd8] sm:$0xff] %v2034_v59  ;;  %v1203_v33 = vsub.f32 0.0, %v2180_v23  ;;  %v3703_v49 = vclamps-f32 %v438_v3, 0.999999  ;;  %2404 = vrsqrt.f32 %v314_v63  ;;  %v865_v55 = vmul.f32 %v3638_v16, %v864_v47 }
 0x175   :  { %v3707_v51 = vpop.eup %2396  ;;  %v1905_v45 = vmul.f32 0.5, %v1841_v10  ;;  %v1504_v8 = vadd.f32 1.0, %v1503_v28  ;;  %2406 = vlog2.f32 %v851_v13  ;;  %vm3710_vm9 = vcmp.lt.f32.partialorder %v1506_v52, 0.0004427343 }
 0x176   :  { %v2399_v37 = vpop.eup %2398  ;;  %v1491_v0 = vadd.f32 1.0, %v1203_v33  ;;  %v878_v38 = vadd.f32 1.0, %v3703_v49  ;;  %2408 = vrsqrt.f32 %v313_v19  ;;  %v855_v56 = vadd.f32 1.0, %v854_v31 }
 0x177   :  { %v1969_v36 = vmul.f32 %v3480_v18, %v1905_v45  ;;  %v437_v16 = vmul.f32 %v3697_v29, %v309_v17  ;;  %2410 = vrsqrt.f32 %v316_v40  ;;  %v862_v25 = vmul.f32 0.6931472, %v2399_v37 }
 0x178   :  { %v857_v20 = vand.u32 2147483647, %v2180_v23  ;;  %2412 = vlog2.f32 %v1491_v0  ;;  %v1494_v24 = vmul.f32 -0.5, %v1203_v33  ;;  %v1505_v18 = vmul.f32 %v1504_v8, %v3653_v46 }
 0x179   :  { %v2401_v58 = vpop.eup %2400  ;;  %v2033_v9 = vmul.f32 %v2623_v12, %v1969_v36  ;;  %2414 = vlog2.f32 %v878_v38  ;;  %v440_v2 = vmul.f32 %v3707_v51, %v312_v48  ;;  %v881_v5 = vmul.f32 -0.5, %v3703_v49 }
 0x17a   :  { %v3731_v17 = vpop.eup %2402  ;;  %v1502_v6 = vmul.f32 0.6931472, %v2401_v58  ;;  %v1206_v50 = vsub.f32 0.0, %v3703_v49  ;;  %v315_v26 = vmax.f32 %v3723_v54, 1e-30  ;;  %v856_v61 = vmul.f32 %v2180_v23, %v855_v56 }
 0x17b   :  { %2097 = vst [vmem:[#allocation5 + $0xd0] sm:$0xff] %v2033_v9  ;;  %v1497_v60 = vand.u32 2147483647, %v1203_v33  ;;  %v2182_v42 = vclamps-f32 %v437_v16, 0.999999  ;;  %v868_v14 = vsel %vm3699_vm8, %v865_v55, %v862_v25  ;;  %v1495_v27 = vadd.f32 1.0, %v1494_v24 }
 0x17c   :  { %v318_v46 = vmax.f32 %v3725_v22, 1e-30  ;;  %v1508_v48 = vsel %vm3710_vm9, %v1505_v18, %v1502_v6  ;;  %vm3741_vm10 = vcmp.lt.f32.partialorder %v857_v20, 0.0004427343  ;;  %v1518_v15 = vadd.f32 1.0, %v1206_v50  ;;  %v2624_v24 = vld [vmem:[#allocation2 + $0xe8] sm:$0xff] }
 0x17d   :  { %v1844_v44 = vsub.f32 %v868_v14, %v1508_v48  ;;  %v884_v35 = vand.u32 2147483647, %v3703_v49  ;;  %v869_v34 = vadd.f32 1.0, %v2182_v42  ;;  %v3746_v47 = vclamps-f32 %v440_v2, 0.999999 }
 0x17e   :  { %v3748_v28 = vpop.eup %2404  ;;  %v882_v23 = vadd.f32 1.0, %v881_v5  ;;  %2416 = vlog2.f32 %v1518_v15  ;;  %v1521_v39 = vmul.f32 -0.5, %v1206_v50  ;;  %v1205_v59 = vsub.f32 0.0, %v2182_v42 }
 0x17f   :  { %v2407_v53 = vpop.eup %2406  ;;  %v1908_v52 = vmul.f32 0.5, %v1844_v44  ;;  %vm3750_vm11 = vcmp.lt.f32.partialorder %v1497_v60, 0.0004427343  ;;  %2418 = vlog2.f32 %v869_v34  ;;  %v872_v10 = vmul.f32 -0.5, %v2182_v42 }
 0x180   :  { %v3754_v13 = vpop.eup %2408  ;;  %v1496_v31 = vmul.f32 %v1495_v27, %v1203_v33  ;;  %v1524_v62 = vand.u32 2147483647, %v1206_v50  ;;  %v1509_v45 = vadd.f32 1.0, %v1205_v59  ;;  %v1512_v55 = vmul.f32 -0.5, %v1205_v59 }
 0x181   :  { %v3756_v8 = vpop.eup %2410  ;;  %v1972_v37 = vmul.f32 %v3616_v21, %v1908_v52  ;;  %v853_v1 = vmul.f32 0.6931472, %v2407_v53  ;;  %vm3759_vm12 = vcmp.lt.f32.partialorder %v884_v35, 0.0004427343  ;;  %v896_v38 = vadd.f32 1.0, %v3746_v47 }
 0x182   :  { %v439_v36 = vmul.f32 %v3731_v17, %v311_v7  ;;  %v2413_v56 = vpop.eup %2412  ;;  %v883_v33 = vmul.f32 %v3703_v49, %v882_v23  ;;  %v1522_v16 = vadd.f32 1.0, %v1521_v39  ;;  %v875_v25 = vand.u32 2147483647, %v2182_v42 }
 0x183   :  { %2420 = vlog2.f32 %v1509_v45  ;;  %v2415_v20 = vpop.eup %2414  ;;  %v2036_v21 = vmul.f32 %v2624_v24, %v1972_v37  ;;  %v1493_v58 = vmul.f32 0.6931472, %v2413_v56  ;;  %v873_v12 = vadd.f32 1.0, %v872_v10 }
 0x184   :  { %v1515_v9 = vand.u32 2147483647, %v1205_v59  ;;  %vm3768_vm13 = vcmp.lt.f32.partialorder %v1524_v62, 0.0004427343  ;;  %v1513_v2 = vadd.f32 1.0, %v1512_v55  ;;  %2422 = vlog2.f32 %v896_v38  ;;  %v2625_v38 = vld [vmem:[#allocation2 + $0xe0] sm:$0xff] }
 0x185   :  { %v899_v11 = vmul.f32 -0.5, %v3746_v47  ;;  %2100 = vst [vmem:[#allocation5 + $0xe8] sm:$0xff] %v2036_v21  ;;  %v859_v7 = vsel %vm3741_vm10, %v856_v61, %v853_v1  ;;  %v1499_v49 = vsel %vm3750_vm11, %v1496_v31, %v1493_v58  ;;  %v1208_v6 = vsub.f32 0.0, %v3746_v47 }
 0x186   :  { %v3778_v5 = vclamps-f32 %v439_v36, 0.999999  ;;  %v1843_v60 = vsub.f32 %v859_v7, %v1499_v49  ;;  %v880_v14 = vmul.f32 0.6931472, %v2415_v20  ;;  %v1523_v48 = vmul.f32 %v1522_v16, %v1206_v50 }
 0x187   :  { %vm3780_vm14 = vcmp.lt.f32.partialorder %v875_v25, 0.0004427343  ;;  %v874_v15 = vmul.f32 %v2182_v42, %v873_v12  ;;  %vm3784_vm15 = vcmp.lt.f32.partialorder %v1515_v9, 0.0004427343  ;;  %v1536_v61 = vadd.f32 1.0, %v1208_v6 }
 0x188   :  { %v887_v4 = vadd.f32 1.0, %v3778_v5  ;;  %v2417_v35 = vpop.eup %2416  ;;  %v1907_v34 = vmul.f32 0.5, %v1843_v60  ;;  %v1514_v23 = vmul.f32 %v1513_v2, %v1205_v59  ;;  %v900_v39 = vadd.f32 1.0, %v899_v11 }
 0x189   :  { %v3790_v53 = vsub.f32 0.0, %v3778_v5  ;;  %v2419_v50 = vpop.eup %2418  ;;  %v1520_v52 = vmul.f32 0.6931472, %v2417_v35  ;;  %v902_v3 = vand.u32 2147483647, %v3746_v47  ;;  %2424 = vlog2.f32 %v1536_v61 }
 0x18a   :  { %v1539_v42 = vmul.f32 -0.5, %v1208_v6  ;;  %v1971_v10 = vmul.f32 %v3663_v32, %v1907_v34  ;;  %v886_v31 = vsel %vm3759_vm12, %v883_v33, %v880_v14  ;;  %2426 = vlog2.f32 %v887_v4  ;;  %v2626_v14 = vld [vmem:[#allocation2 + $0xf8] sm:$0xff] }
 0x18b   :  { %v442_v59 = vmul.f32 %v3748_v28, %v314_v63  ;;  %v1526_v62 = vsel %vm3768_vm13, %v1523_v48, %v1520_v52  ;;  %v871_v45 = vmul.f32 0.6931472, %v2419_v50  ;;  %v1542_v55 = vand.u32 2147483647, %v1208_v6 }
 0x18c   :  { %v1527_v37 = vadd.f32 1.0, %v3790_v53  ;;  %v2035_v36 = vmul.f32 %v2625_v38, %v1971_v10  ;;  %v1846_v56 = vsub.f32 %v886_v31, %v1526_v62  ;;  %v901_v32 = vmul.f32 %v3746_v47, %v900_v39  ;;  %v2627_v10 = vld [vmem:[#allocation2 + $0xf0] sm:$0xff] }
 0x18d   :  { %v2421_v1 = vpop.eup %2420  ;;  %v890_v0 = vmul.f32 -0.5, %v3778_v5  ;;  %vm3804_vm0 = vcmp.lt.f32.partialorder %v902_v3, 0.0004427343  ;;  %v1540_v63 = vadd.f32 1.0, %v1539_v42  ;;  %v893_v20 = vand.u32 2147483647, %v3778_v5 }
 0x18e   :  { %v1511_v33 = vmul.f32 0.6931472, %v2421_v1  ;;  %2428 = vlog2.f32 %v1527_v37  ;;  %v2423_v16 = vpop.eup %2422  ;;  %2099 = vst [vmem:[#allocation5 + $0xe0] sm:$0xff] %v2035_v36  ;;  %v1910_v25 = vmul.f32 0.5, %v1846_v56  ;;  %v3809_v24 = vclamps-f32 %v442_v59, 0.999999 }
 0x18f   :  { %v441_v47 = vmul.f32 %v3754_v13, %v313_v19  ;;  %v877_v21 = vsel %vm3780_vm14, %v874_v15, %v871_v45  ;;  %vm3818_vm1 = vcmp.lt.f32.partialorder %v1542_v55, 0.0004427343  ;;  %v1530_v9 = vmul.f32 -0.5, %v3790_v53 }
 0x190   :  { %v1517_v58 = vsel %vm3784_vm15, %v1514_v23, %v1511_v33  ;;  %v1974_v18 = vmul.f32 %v3685_v57, %v1910_v25  ;;  %v891_v11 = vadd.f32 1.0, %v890_v0  ;;  %v914_v43 = vadd.f32 1.0, %v3809_v24 }
 0x191   :  { %v1845_v2 = vsub.f32 %v877_v21, %v1517_v58  ;;  %v898_v7 = vmul.f32 0.6931472, %v2423_v16  ;;  %v1541_v19 = vmul.f32 %v1540_v63, %v1208_v6  ;;  %v1533_v49 = vand.u32 2147483647, %v3790_v53  ;;  %v3873_v21 = vpop.xlane.xlu0 %227  ;;  %v2628_v58 = vld [vmem:[#allocation2 + $0x108] sm:$0xff] }
 0x192   :  { %v3827_v60 = vsub.f32 0.0, %v3809_v24  ;;  %v2038_v48 = vmul.f32 %v2626_v14, %v1974_v18  ;;  %2430 = vlog2.f32 %v914_v43  ;;  %v3829_v15 = vclamps-f32 %v441_v47, 0.999999 }
 0x193   :  { %v1909_v27 = vmul.f32 0.5, %v1845_v2  ;;  %v2425_v44 = vpop.eup %2424  ;;  %vm3831_vm2 = vcmp.lt.f32.partialorder %v893_v20, 0.0004427343  ;;  %v1531_v61 = vadd.f32 1.0, %v1530_v9  ;;  %v917_v4 = vmul.f32 -0.5, %v3809_v24 }
 0x194   :  { %v1554_v6 = vadd.f32 1.0, %v3827_v60  ;;  %v2427_v35 = vpop.eup %2426  ;;  %2102 = vst [vmem:[#allocation5 + $0xf8] sm:$0xff] %v2038_v48  ;;  %v1538_v23 = vmul.f32 0.6931472, %v2425_v44  ;;  %v892_v39 = vmul.f32 %v3778_v5, %v891_v11  ;;  %v905_v50 = vadd.f32 1.0, %v3829_v15 }
 0x195   :  { %v1973_v34 = vmul.f32 %v3697_v29, %v1909_v27  ;;  %v904_v52 = vsel %vm3804_vm0, %v901_v32, %v898_v7  ;;  %vm3842_vm3 = vcmp.lt.f32.partialorder %v1533_v49, 0.0004427343  ;;  %v444_v42 = vmul.f32 %v3756_v8, %v316_v40  ;;  %v3909_v3 = vpop.xlane.xlu0 %231 }
 0x196   :  { %2432 = vlog2.f32 %v1554_v6  ;;  %v1544_v29 = vsel %vm3818_vm1, %v1541_v19, %v1538_v23  ;;  %v889_v5 = vmul.f32 0.6931472, %v2427_v35  ;;  %v1532_v45 = vmul.f32 %v1531_v61, %v3790_v53  ;;  %v2629_v6 = vld [vmem:[#allocation2 + $0x100] sm:$0xff] }
 0x197   :  { %v2037_v31 = vmul.f32 %v2627_v10, %v1973_v34  ;;  %2434 = vlog2.f32 %v905_v50  ;;  %v1848_v62 = vsub.f32 %v904_v52, %v1544_v29  ;;  %v918_v55 = vadd.f32 1.0, %v917_v4 }
 0x198   :  { %v2429_v59 = vpop.eup %2428  ;;  %v920_v37 = vand.u32 2147483647, %v3809_v24  ;;  %v1557_v41 = vmul.f32 -0.5, %v3827_v60  ;;  %v3855_v40 = vsub.f32 0.0, %v3829_v15  ;;  %2436 = vrsqrt.f32 %v315_v26 }
 0x199   :  { %2101 = vst [vmem:[#allocation5 + $0xf0] sm:$0xff] %v2037_v31  ;;  %v1529_v1 = vmul.f32 0.6931472, %v2429_v59  ;;  %v1912_v38 = vmul.f32 0.5, %v1848_v62  ;;  %v1560_v36 = vand.u32 2147483647, %v3827_v60  ;;  %2438 = vrsqrt.f32 %v318_v46  ;;  %v3973_v61 = vpop.xlane.xlu0 %235 }
 0x19a   :  { %v3860_v56 = vclamps-f32 %v444_v42, 0.999999  ;;  %v895_v53 = vsel %vm3831_vm2, %v892_v39, %v889_v5  ;;  %v908_v0 = vmul.f32 -0.5, %v3829_v15  ;;  %v1545_v33 = vadd.f32 1.0, %v3855_v40 }
 0x19b   :  { %v1535_v32 = vsel %vm3842_vm3, %v1532_v45, %v1529_v1  ;;  %v1976_v30 = vmul.f32 %v3707_v51, %v1912_v38  ;;  %v1558_v25 = vadd.f32 1.0, %v1557_v41  ;;  %v911_v20 = vand.u32 2147483647, %v3829_v15  ;;  %v3880_v51 = vpop.xlane.xlu1 %233 }
 0x19c   :  { %v1847_v63 = vsub.f32 %v895_v53, %v1535_v32  ;;  %v2431_v16 = vpop.eup %2430  ;;  %2440 = vlog2.f32 %v1545_v33  ;;  %v932_v47 = vadd.f32 1.0, %v3860_v56  ;;  %v919_v18 = vmul.f32 %v3809_v24, %v918_v55 }
 0x19d   :  { %v2040_v12 = vmul.f32 %v2628_v58, %v1976_v30  ;;  %vm3876_vm4 = vcmp.lt.f32.partialorder %v920_v37, 0.0004427343  ;;  %v916_v11 = vmul.f32 0.6931472, %v2431_v16  ;;  %vm3882_vm5 = vcmp.lt.f32.partialorder %v1560_v36, 0.0004427343 }
 0x19e   :  { %v1911_v9 = vmul.f32 0.5, %v1847_v63  ;;  %v909_v7 = vadd.f32 1.0, %v908_v0  ;;  %v1548_v19 = vmul.f32 -0.5, %v3855_v40  ;;  %2442 = vlog2.f32 %v932_v47  ;;  %v2630_v16 = vld [vmem:[#allocation2 + $0x118] sm:$0xff] }
 0x19f   :  { %2104 = vst [vmem:[#allocation5 + $0x108] sm:$0xff] %v2040_v12  ;;  %v3889_v24 = vsub.f32 0.0, %v3860_v56  ;;  %v317_v48 = vmax.f32 %v3873_v21, 1e-30  ;;  %v1559_v57 = vmul.f32 %v1558_v25, %v3827_v60  ;;  %vm3893_vm6 = vcmp.lt.f32.partialorder %v911_v20, 0.0004427343  ;;  %v3923_v45 = vpop.xlane.xlu1 %237 }
 0x1a0   :  { %v2433_v49 = vpop.eup %2432  ;;  %v1975_v14 = vmul.f32 %v3731_v17, %v1911_v9  ;;  %v320_v4 = vmax.f32 %v3880_v51, 1e-30  ;;  %v1551_v17 = vand.u32 2147483647, %v3855_v40  ;;  %v935_v34 = vmul.f32 -0.5, %v3860_v56 }
 0x1a1   :  { %v2435_v27 = vpop.eup %2434  ;;  %v1556_v44 = vmul.f32 0.6931472, %v2433_v49  ;;  %v1572_v23 = vadd.f32 1.0, %v3889_v24  ;;  %v922_v50 = vsel %vm3876_vm4, %v919_v18, %v916_v11  ;;  %v1549_v52 = vadd.f32 1.0, %v1548_v19 }
 0x1a2   :  { %v2039_v35 = vmul.f32 %v2629_v6, %v1975_v14  ;;  %v3901_v39 = vpop.eup %2436  ;;  %2444 = vrsqrt.f32 %v317_v48  ;;  %v907_v31 = vmul.f32 0.6931472, %v2435_v27  ;;  %v910_v29 = vmul.f32 %v3829_v15, %v909_v7 }
 0x1a3   :  { %v1562_v60 = vsel %vm3882_vm5, %v1559_v57, %v1556_v44  ;;  %v3911_v42 = vpop.eup %2438  ;;  %2446 = vlog2.f32 %v1572_v23  ;;  %v1575_v5 = vmul.f32 -0.5, %v3889_v24  ;;  %v443_v59 = vmul.f32 %v3901_v39, %v315_v26 }
 0x1a4   :  { %2103 = vst [vmem:[#allocation5 + $0x100] sm:$0xff] %v2039_v35  ;;  %v1850_v10 = vsub.f32 %v922_v50, %v1562_v60  ;;  %v446_v62 = vmul.f32 %v3911_v42, %v318_v46  ;;  %2448 = vrsqrt.f32 %v320_v4  ;;  %vm3925_vm7 = vcmp.lt.f32.partialorder %v1551_v17, 0.0004427343 }
 0x1a5   :  { %v936_v15 = vadd.f32 1.0, %v935_v34  ;;  %v319_v1 = vmax.f32 %v3909_v3, 1e-30  ;;  %v1550_v26 = vmul.f32 %v1549_v52, %v3855_v40  ;;  %v938_v22 = vand.u32 2147483647, %v3860_v56  ;;  %v3987_v52 = vpop.xlane.xlu1 %241  ;;  %v4036_v3 = vpop.xlane.xlu0 %239 }
 0x1a6   :  { %v1914_v55 = vmul.f32 0.5, %v1850_v10  ;;  %v2441_v54 = vpop.eup %2440  ;;  %v3932_v41 = vclamps-f32 %v443_v59, 0.999999  ;;  %v3934_v46 = vclamps-f32 %v446_v62, 0.999999  ;;  %v913_v0 = vsel %vm3893_vm6, %v910_v29, %v907_v31 }
 0x1a7   :  { %v1547_v36 = vmul.f32 0.6931472, %v2441_v54  ;;  %v1578_v53 = vand.u32 2147483647, %v3889_v24  ;;  %v322_v32 = vmax.f32 %v3923_v45, 1e-30  ;;  %2450 = vrsqrt.f32 %v319_v1 }
 0x1a8   :  { %v1978_v38 = vmul.f32 %v3748_v28, %v1914_v55  ;;  %v1576_v33 = vadd.f32 1.0, %v1575_v5  ;;  %v923_v30 = vadd.f32 1.0, %v3932_v41  ;;  %v3943_v40 = vsub.f32 0.0, %v3932_v41  ;;  %v2443_v63 = vpop.eup %2442 }
 0x1a9   :  { %v1553_v28 = vsel %vm3925_vm7, %v1550_v26, %v1547_v36  ;;  %v950_v20 = vadd.f32 1.0, %v3934_v46  ;;  %v926_v58 = vmul.f32 -0.5, %v3932_v41  ;;  %v934_v2 = vmul.f32 0.6931472, %v2443_v63 }
 0x1aa   :  { %v2042_v25 = vmul.f32 %v2630_v16, %v1978_v38  ;;  %v1849_v47 = vsub.f32 %v913_v0, %v1553_v28  ;;  %2452 = vlog2.f32 %v923_v30  ;;  %v1563_v12 = vadd.f32 1.0, %v3943_v40 }
 0x1ab   :  { %2454 = vrsqrt.f32 %v322_v32  ;;  %v937_v11 = vmul.f32 %v3860_v56, %v936_v15  ;;  %vm3957_vm8 = vcmp.lt.f32.partialorder %v938_v22, 0.0004427343  ;;  %v1577_v19 = vmul.f32 %v1576_v33, %v3889_v24 }
 0x1ac   :  { %2106 = vst [vmem:[#allocation5 + $0x118] sm:$0xff] %v2042_v25  ;;  %v3954_v9 = vpop.eup %2444  ;;  %v1913_v18 = vmul.f32 0.5, %v1849_v47  ;;  %2456 = vlog2.f32 %v950_v20  ;;  %vm3962_vm9 = vcmp.lt.f32.partialorder %v1578_v53, 0.0004427343  ;;  %v1566_v56 = vmul.f32 -0.5, %v3943_v40  ;;  %v2632_v20 = vld [vmem:[#allocation2 + $0x128] sm:$0xff] }
 0x1ad   :  { %v2447_v43 = vpop.eup %2446  ;;  %2458 = vlog2.f32 %v1563_v12  ;;  %v3971_v57 = vsub.f32 0.0, %v3934_v46  ;;  %v927_v6 = vadd.f32 1.0, %v926_v58  ;;  %v929_v24 = vand.u32 2147483647, %v3932_v41 }
 0x1ae   :  { %v3966_v14 = vpop.eup %2448  ;;  %v1977_v27 = vmul.f32 %v3754_v13, %v1913_v18  ;;  %v1574_v44 = vmul.f32 0.6931472, %v2447_v43  ;;  %v445_v35 = vmul.f32 %v3954_v9, %v317_v48  ;;  %v2631_v13 = vld [vmem:[#allocation2 + $0x110] sm:$0xff]  ;;  %v940_v23 = vsel %vm3957_vm8, %v937_v11, %v934_v2 }
 0x1af   :  { %v448_v17 = vmul.f32 %v3966_v14, %v320_v4  ;;  %v1590_v60 = vadd.f32 1.0, %v3971_v57  ;;  %v953_v21 = vmul.f32 -0.5, %v3934_v46  ;;  %v321_v51 = vmax.f32 %v3973_v61, 1e-30 }
 0x1b0   :  { %v2041_v34 = vmul.f32 %v2631_v13, %v1977_v27  ;;  %v1580_v50 = vsel %vm3962_vm9, %v1577_v19, %v1574_v44  ;;  %v3990_v48 = vclamps-f32 %v445_v35, 0.999999  ;;  %v1567_v4 = vadd.f32 1.0, %v1566_v56  ;;  %v4043_v44 = vpop.xlane.xlu1 %245 }
 0x1b1   :  { %v1852_v10 = vsub.f32 %v940_v23, %v1580_v50  ;;  %v1569_v31 = vand.u32 2147483647, %v3943_v40  ;;  %2460 = vlog2.f32 %v1590_v60  ;;  %v3994_v29 = vclamps-f32 %v448_v17, 0.999999  ;;  %v3996_v5 = vpop.eup %2450 }
 0x1b2   :  { %2105 = vst [vmem:[#allocation5 + $0x110] sm:$0xff] %v2041_v34  ;;  %v956_v62 = vand.u32 2147483647, %v3934_v46  ;;  %v941_v55 = vadd.f32 1.0, %v3990_v48  ;;  %v324_v37 = vmax.f32 %v3987_v52, 1e-30  ;;  %v928_v54 = vmul.f32 %v3932_v41, %v927_v6 }
 0x1b3   :  { %v1916_v59 = vmul.f32 0.5, %v1852_v10  ;;  %vm4002_vm10 = vcmp.lt.f32.partialorder %v929_v24, 0.0004427343  ;;  %v1593_v22 = vmul.f32 -0.5, %v3971_v57  ;;  %v4008_v38 = vsub.f32 0.0, %v3990_v48 }
 0x1b4   :  { %v2453_v15 = vpop.eup %2452  ;;  %v954_v33 = vadd.f32 1.0, %v953_v21  ;;  %2462 = vlog2.f32 %v941_v55  ;;  %v1568_v63 = vmul.f32 %v1567_v4, %v3943_v40  ;;  %vm4014_vm11 = vcmp.lt.f32.partialorder %v1569_v31, 0.0004427343 }
 0x1b5   :  { %v4010_v36 = vpop.eup %2454  ;;  %v1980_v53 = vmul.f32 %v3756_v8, %v1916_v59  ;;  %v925_v0 = vmul.f32 0.6931472, %v2453_v15  ;;  %v1581_v16 = vadd.f32 1.0, %v4008_v38  ;;  %v968_v25 = vadd.f32 1.0, %v3994_v29  ;;  %v4065_v15 = vpop.xlane.xlu0 %243 }
 0x1b6   :  { %v2457_v30 = vpop.eup %2456  ;;  %vm4020_vm12 = vcmp.lt.f32.partialorder %v956_v62, 0.0004427343  ;;  %v1596_v8 = vand.u32 2147483647, %v3971_v57  ;;  %v447_v40 = vmul.f32 %v3996_v5, %v319_v1  ;;  %v1594_v18 = vadd.f32 1.0, %v1593_v22 }
 0x1b7   :  { %v2459_v28 = vpop.eup %2458  ;;  %v2044_v47 = vmul.f32 %v2632_v20, %v1980_v53  ;;  %v944_v2 = vmul.f32 -0.5, %v3990_v48  ;;  %2464 = vlog2.f32 %v1581_v16  ;;  %v931_v11 = vsel %vm4002_vm10, %v928_v54, %v925_v0  ;;  %v4069_v53 = vpop.xlane.xlu1 %249  ;;  %v2633_v0 = vld [vmem:[#allocation2 + $0x120] sm:$0xff] }
 0x1b8   :  { %v1565_v12 = vmul.f32 0.6931472, %v2459_v28  ;;  %v955_v43 = vmul.f32 %v3934_v46, %v954_v33  ;;  %v1584_v7 = vmul.f32 -0.5, %v4008_v38  ;;  %v450_v19 = vmul.f32 %v4010_v36, %v322_v32 }
 0x1b9   :  { %2108 = vst [vmem:[#allocation5 + $0x128] sm:$0xff] %v2044_v47  ;;  %v952_v49 = vmul.f32 0.6931472, %v2457_v30  ;;  %2466 = vlog2.f32 %v968_v25  ;;  %v4041_v27 = vsub.f32 0.0, %v3994_v29  ;;  %vm4045_vm13 = vcmp.lt.f32.partialorder %v1596_v8, 0.0004427343 }
 0x1ba   :  { %v1571_v1 = vsel %vm4014_vm11, %v1568_v63, %v1565_v12  ;;  %v971_v45 = vmul.f32 -0.5, %v3994_v29  ;;  %v4050_v32 = vclamps-f32 %v447_v40, 0.999999  ;;  %v1595_v24 = vmul.f32 %v1594_v18, %v3971_v57 }
 0x1bb   :  { %v1851_v56 = vsub.f32 %v931_v11, %v1571_v1  ;;  %v2461_v6 = vpop.eup %2460  ;;  %v945_v35 = vadd.f32 1.0, %v944_v2  ;;  %v947_v17 = vand.u32 2147483647, %v3990_v48  ;;  %v1608_v13 = vadd.f32 1.0, %v4041_v27  ;;  %v2634_v1 = vld [vmem:[#allocation2 + $0x138] sm:$0xff] }
 0x1bc   :  { %v1592_v23 = vmul.f32 0.6931472, %v2461_v6  ;;  %v1587_v50 = vand.u32 2147483647, %v4008_v38  ;;  %v959_v60 = vadd.f32 1.0, %v4050_v32  ;;  %v958_v10 = vsel %vm4020_vm12, %v955_v43, %v952_v49 }
 0x1bd   :  { %v1915_v34 = vmul.f32 0.5, %v1851_v56  ;;  %v1585_v21 = vadd.f32 1.0, %v1584_v7  ;;  %2468 = vlog2.f32 %v1608_v13  ;;  %v4059_v4 = vclamps-f32 %v450_v19, 0.999999  ;;  %v4101_v19 = vpop.xlane.xlu0 %247  ;;  %v4104_v56 = vpop.xlane.xlu1 %253 }
 0x1be   :  { %v2463_v31 = vpop.eup %2462  ;;  %v1598_v59 = vsel %vm4045_vm13, %v1595_v24, %v1592_v23  ;;  %v972_v62 = vadd.f32 1.0, %v971_v45  ;;  %v974_v55 = vand.u32 2147483647, %v3994_v29  ;;  %v1611_v26 = vmul.f32 -0.5, %v4041_v27 }
 0x1bf   :  { %v1979_v57 = vmul.f32 %v3901_v39, %v1915_v34  ;;  %v1854_v54 = vsub.f32 %v958_v10, %v1598_v59  ;;  %v1614_v22 = vand.u32 2147483647, %v4041_v27  ;;  %2470 = vlog2.f32 %v959_v60 }
 0x1c0   :  { %v943_v30 = vmul.f32 0.6931472, %v2463_v31  ;;  %vm4071_vm14 = vcmp.lt.f32.partialorder %v947_v17, 0.0004427343  ;;  %v4076_v63 = vsub.f32 0.0, %v4050_v32  ;;  %v946_v25 = vmul.f32 %v3990_v48, %v945_v35 }
 0x1c1   :  { %v2043_v33 = vmul.f32 %v2633_v0, %v1979_v57  ;;  %v2465_v41 = vpop.eup %2464  ;;  %v1918_v16 = vmul.f32 0.5, %v1854_v54  ;;  %vm4079_vm15 = vcmp.lt.f32.partialorder %v1587_v50, 0.0004427343  ;;  %v986_v20 = vadd.f32 1.0, %v4059_v4  ;;  %v2635_v54 = vld [vmem:[#allocation2 + $0x130] sm:$0xff] }
 0x1c2   :  { %v1583_v47 = vmul.f32 0.6931472, %v2465_v41  ;;  %v1586_v58 = vmul.f32 %v1585_v21, %v4008_v38  ;;  %vm4085_vm0 = vcmp.lt.f32.partialorder %v974_v55, 0.0004427343  ;;  %v1599_v40 = vadd.f32 1.0, %v4076_v63 }
 0x1c3   :  { %2107 = vst [vmem:[#allocation5 + $0x120] sm:$0xff] %v2043_v33  ;;  %v2467_v12 = vpop.eup %2466  ;;  %v1982_v18 = vmul.f32 %v3911_v42, %v1918_v16  ;;  %v973_v48 = vmul.f32 %v3994_v29, %v972_v62  ;;  %v1612_v2 = vadd.f32 1.0, %v1611_v26  ;;  %vm4092_vm1 = vcmp.lt.f32.partialorder %v1614_v22, 0.0004427343  ;;  %v4130_v33 = vpop.xlane.xlu1 %257 }
 0x1c4   :  { %v949_v43 = vsel %vm4071_vm14, %v946_v25, %v943_v30  ;;  %v1589_v38 = vsel %vm4079_vm15, %v1586_v58, %v1583_v47  ;;  %v962_v7 = vmul.f32 -0.5, %v4050_v32  ;;  %2472 = vlog2.f32 %v1599_v40 }
 0x1c5   :  { %v2046_v42 = vmul.f32 %v2634_v1, %v1982_v18  ;;  %v1853_v49 = vsub.f32 %v949_v43, %v1589_v38  ;;  %2474 = vlog2.f32 %v986_v20  ;;  %v989_v29 = vmul.f32 -0.5, %v4059_v4  ;;  %v2636_v38 = vld [vmem:[#allocation2 + $0x148] sm:$0xff] }
 0x1c6   :  { %v970_v46 = vmul.f32 0.6931472, %v2467_v12  ;;  %v1602_v45 = vmul.f32 -0.5, %v4076_v63  ;;  %v4108_v6 = vsub.f32 0.0, %v4059_v4  ;;  %2476 = vrsqrt.f32 %v321_v51 }
 0x1c7   :  { %v2469_v24 = vpop.eup %2468  ;;  %2110 = vst [vmem:[#allocation5 + $0x138] sm:$0xff] %v2046_v42  ;;  %v1917_v35 = vmul.f32 0.5, %v1853_v49  ;;  %v965_v17 = vand.u32 2147483647, %v4050_v32  ;;  %2478 = vrsqrt.f32 %v324_v37  ;;  %v323_v13 = vmax.f32 %v4036_v3, 1e-30 }
 0x1c8   :  { %v1610_v34 = vmul.f32 0.6931472, %v2469_v24  ;;  %v1613_v23 = vmul.f32 %v1612_v2, %v4041_v27  ;;  %v963_v50 = vadd.f32 1.0, %v962_v7  ;;  %v1626_v60 = vadd.f32 1.0, %v4108_v6  ;;  %v4126_v27 = vpop.xlane.xlu0 %251 }
 0x1c9   :  { %v2471_v10 = vpop.eup %2470  ;;  %v1981_v21 = vmul.f32 %v3954_v9, %v1917_v35  ;;  %v1605_v31 = vand.u32 2147483647, %v4076_v63  ;;  %v990_v57 = vadd.f32 1.0, %v989_v29  ;;  %2480 = vrsqrt.f32 %v323_v13  ;;  %v4171_v29 = vpop.xlane.xlu1 %261 }
 0x1ca   :  { %v976_v59 = vsel %vm4085_vm0, %v973_v48, %v970_v46  ;;  %v1616_v62 = vsel %vm4092_vm1, %v1613_v23, %v1610_v34  ;;  %v1603_v55 = vadd.f32 1.0, %v1602_v45  ;;  %2482 = vlog2.f32 %v1626_v60 }
 0x1cb   :  { %v2045_v26 = vmul.f32 %v2635_v54, %v1981_v21  ;;  %v1856_v22 = vsub.f32 %v976_v59, %v1616_v62  ;;  %v1629_v9 = vmul.f32 -0.5, %v4108_v6  ;;  %v326_v0 = vmax.f32 %v4043_v44, 1e-30 }
 0x1cc   :  { %v961_v30 = vmul.f32 0.6931472, %v2471_v10  ;;  %v992_v39 = vand.u32 2147483647, %v4059_v4  ;;  %v1632_v41 = vand.u32 2147483647, %v4108_v6  ;;  %v964_v20 = vmul.f32 %v4050_v32, %v963_v50 }
 0x1cd   :  { %2109 = vst [vmem:[#allocation5 + $0x130] sm:$0xff] %v2045_v26  ;;  %v1920_v16 = vmul.f32 0.5, %v1856_v22  ;;  %vm4134_vm2 = vcmp.lt.f32.partialorder %v965_v17, 0.0004427343  ;;  %v1604_v47 = vmul.f32 %v1603_v55, %v4076_v63  ;;  %vm4140_vm3 = vcmp.lt.f32.partialorder %v1605_v31, 0.0004427343  ;;  %v4209_v26 = vpop.xlane.xlu1 %265 }
 0x1ce   :  { %v2473_v28 = vpop.eup %2472  ;;  %v991_v8 = vmul.f32 %v4059_v4, %v990_v57  ;;  %v1630_v48 = vadd.f32 1.0, %v1629_v9  ;;  %2484 = vrsqrt.f32 %v326_v0  ;;  %v967_v32 = vsel %vm4134_vm2, %v964_v20, %v961_v30  ;;  %v4161_v4 = vpop.xlane.xlu0 %255  ;;  %v2637_v22 = vld [vmem:[#allocation2 + $0x140] sm:$0xff] }
 0x1cf   :  { %v2475_v40 = vpop.eup %2474  ;;  %v1984_v12 = vmul.f32 %v3966_v14, %v1920_v16  ;;  %v1601_v18 = vmul.f32 0.6931472, %v2473_v28  ;;  %vm4152_vm4 = vcmp.lt.f32.partialorder %v992_v39, 0.0004427343  ;;  %vm4156_vm5 = vcmp.lt.f32.partialorder %v1632_v41, 0.0004427343 }
 0x1d0   :  { %v4148_v2 = vpop.eup %2476  ;;  %v325_v14 = vmax.f32 %v4065_v15, 1e-30  ;;  %v328_v49 = vmax.f32 %v4069_v53, 1e-30  ;;  %v327_v24 = vmax.f32 %v4101_v19, 1e-30  ;;  %v1631_v61 = vmul.f32 %v1630_v48, %v4108_v6 }
 0x1d1   :  { %v4163_v43 = vpop.eup %2478  ;;  %v2048_v7 = vmul.f32 %v2636_v38, %v1984_v12  ;;  %v1607_v1 = vsel %vm4140_vm3, %v1604_v47, %v1601_v18  ;;  %v449_v42 = vmul.f32 %v4148_v2, %v321_v51  ;;  %v330_v35 = vmax.f32 %v4104_v56, 1e-30 }
 0x1d2   :  { %v1855_v46 = vsub.f32 %v967_v32, %v1607_v1  ;;  %v452_v45 = vmul.f32 %v4163_v43, %v324_v37  ;;  %v988_v34 = vmul.f32 0.6931472, %v2475_v40  ;;  %v329_v23 = vmax.f32 %v4126_v27, 1e-30  ;;  %v4200_v62 = vpop.xlane.xlu0 %259 }
 0x1d3   :  { %v4178_v17 = vpop.eup %2480  ;;  %2112 = vst [vmem:[#allocation5 + $0x148] sm:$0xff] %v2048_v7  ;;  %v4181_v51 = vclamps-f32 %v449_v42, 0.999999  ;;  %2486 = vrsqrt.f32 %v325_v14  ;;  %v332_v52 = vmax.f32 %v4130_v33, 1e-30  ;;  %v2638_v7 = vld [vmem:[#allocation2 + $0x158] sm:$0xff] }
 0x1d4   :  { %v2483_v50 = vpop.eup %2482  ;;  %v1919_v60 = vmul.f32 0.5, %v1855_v46  ;;  %v4184_v10 = vclamps-f32 %v452_v45, 0.999999  ;;  %2488 = vrsqrt.f32 %v328_v49  ;;  %v331_v6 = vmax.f32 %v4161_v4, 1e-30 }
 0x1d5   :  { %v1628_v37 = vmul.f32 0.6931472, %v2483_v50  ;;  %v977_v21 = vadd.f32 1.0, %v4181_v51  ;;  %v4195_v57 = vsub.f32 0.0, %v4181_v51  ;;  %2490 = vrsqrt.f32 %v327_v24 }
 0x1d6   :  { %v1983_v31 = vmul.f32 %v3996_v5, %v1919_v60  ;;  %v1004_v59 = vadd.f32 1.0, %v4184_v10  ;;  %v994_v55 = vsel %vm4152_vm4, %v991_v8, %v988_v34  ;;  %v451_v5 = vmul.f32 %v4178_v17, %v323_v13 }
 0x1d7   :  { %v1634_v54 = vsel %vm4156_vm5, %v1631_v61, %v1628_v37  ;;  %2492 = vlog2.f32 %v977_v21  ;;  %v1617_v39 = vadd.f32 1.0, %v4195_v57  ;;  %v980_v16 = vmul.f32 -0.5, %v4181_v51 }
 0x1d8   :  { %v2047_v9 = vmul.f32 %v2637_v22, %v1983_v31  ;;  %v1858_v30 = vsub.f32 %v994_v55, %v1634_v54  ;;  %2494 = vrsqrt.f32 %v330_v35  ;;  %v4214_v41 = vpop.eup %2484  ;;  %v334_v25 = vmax.f32 %v4171_v29, 1e-30 }
 0x1d9   :  { %2496 = vlog2.f32 %v1004_v59  ;;  %v333_v3 = vmax.f32 %v4200_v62, 1e-30  ;;  %v1007_v28 = vmul.f32 -0.5, %v4184_v10  ;;  %v336_v20 = vmax.f32 %v4209_v26, 1e-30 }
 0x1da   :  { %2111 = vst [vmem:[#allocation5 + $0x140] sm:$0xff] %v2047_v9  ;;  %v1922_v13 = vmul.f32 0.5, %v1858_v30  ;;  %2498 = vlog2.f32 %v1617_v39  ;;  %v1620_v47 = vmul.f32 -0.5, %v4195_v57  ;;  %v1220_v58 = vsub.f32 0.0, %v4184_v10 }
 0x1db   :  { %v2196_v8 = vclamps-f32 %v451_v5, 0.999999  ;;  %2500 = vrsqrt.f32 %v329_v23  ;;  %v983_v12 = vand.u32 2147483647, %v4181_v51  ;;  %v454_v18 = vmul.f32 %v4214_v41, %v326_v0 }
 0x1dc   :  { %v1986_v40 = vmul.f32 %v4010_v36, %v1922_v13  ;;  %2502 = vrsqrt.f32 %v332_v52  ;;  %v981_v48 = vadd.f32 1.0, %v980_v16  ;;  %v1623_v32 = vand.u32 2147483647, %v4195_v57 }
 0x1dd   :  { %v1644_v63 = vadd.f32 1.0, %v1220_v58  ;;  %v995_v11 = vadd.f32 1.0, %v2196_v8  ;;  %v4233_v38 = vpop.eup %2486  ;;  %v1008_v42 = vadd.f32 1.0, %v1007_v28  ;;  %v1647_v36 = vmul.f32 -0.5, %v1220_v58 }
 0x1de   :  { %v2050_v1 = vmul.f32 %v2638_v7, %v1986_v40  ;;  %v1219_v46 = vsub.f32 0.0, %v2196_v8  ;;  %v4235_v45 = vpop.eup %2488  ;;  %v1621_v44 = vadd.f32 1.0, %v1620_v47  ;;  %v1010_v0 = vand.u32 2147483647, %v4184_v10 }
 0x1df   :  { %2504 = vlog2.f32 %v1644_v63  ;;  %v4238_v34 = vclamps-f32 %v454_v18, 0.999999  ;;  %v4240_v61 = vpop.eup %2490  ;;  %v1650_v50 = vand.u32 2147483647, %v1220_v58  ;;  %v998_v60 = vmul.f32 -0.5, %v2196_v8 }
 0x1e0   :  { %2114 = vst [vmem:[#allocation5 + $0x158] sm:$0xff] %v2050_v1  ;;  %2506 = vlog2.f32 %v995_v11  ;;  %v1635_v37 = vadd.f32 1.0, %v1219_v46  ;;  %v982_v31 = vmul.f32 %v4181_v51, %v981_v48  ;;  %vm4243_vm6 = vcmp.lt.f32.partialorder %v983_v12, 0.0004427343 }
 0x1e1   :  { %v2493_v21 = vpop.eup %2492  ;;  %vm4247_vm7 = vcmp.lt.f32.partialorder %v1623_v32, 0.0004427343  ;;  %v1022_v54 = vadd.f32 1.0, %v4238_v34  ;;  %v1648_v22 = vadd.f32 1.0, %v1647_v36  ;;  %v1001_v9 = vand.u32 2147483647, %v2196_v8 }
 0x1e2   :  { %v4252_v5 = vpop.eup %2494  ;;  %2508 = vlog2.f32 %v1635_v37  ;;  %v1638_v30 = vmul.f32 -0.5, %v1219_v46  ;;  %v979_v16 = vmul.f32 0.6931472, %v2493_v21  ;;  %v1622_v51 = vmul.f32 %v1621_v44, %v4195_v57 }
 0x1e3   :  { %v2497_v39 = vpop.eup %2496  ;;  %v1009_v13 = vmul.f32 %v4184_v10, %v1008_v42  ;;  %vm4256_vm8 = vcmp.lt.f32.partialorder %v1010_v0, 0.0004427343  ;;  %vm4260_vm9 = vcmp.lt.f32.partialorder %v1650_v50, 0.0004427343  ;;  %v999_v12 = vadd.f32 1.0, %v998_v60 }
 0x1e4   :  { %v2499_v47 = vpop.eup %2498  ;;  %2510 = vlog2.f32 %v1022_v54  ;;  %v4265_v18 = vsub.f32 0.0, %v4238_v34  ;;  %v1641_v57 = vand.u32 2147483647, %v1219_v46  ;;  %v1025_v10 = vmul.f32 -0.5, %v4238_v34 }
 0x1e5   :  { %v4267_v48 = vpop.eup %2500  ;;  %v1619_v32 = vmul.f32 0.6931472, %v2499_v47  ;;  %v453_v63 = vmul.f32 %v4233_v38, %v325_v14  ;;  %v1649_v7 = vmul.f32 %v1648_v22, %v1220_v58  ;;  %vm4275_vm10 = vcmp.lt.f32.partialorder %v1001_v9, 0.0004427343 }
 0x1e6   :  { %v4273_v11 = vpop.eup %2502  ;;  %v1639_v42 = vadd.f32 1.0, %v1638_v30  ;;  %v1662_v36 = vadd.f32 1.0, %v4265_v18  ;;  %v985_v44 = vsel %vm4243_vm6, %v982_v31, %v979_v16  ;;  %v1006_v50 = vmul.f32 0.6931472, %v2497_v39 }
 0x1e7   :  { %v1625_v0 = vsel %vm4247_vm7, %v1622_v51, %v1619_v32  ;;  %v4284_v15 = vclamps-f32 %v453_v63, 0.999999  ;;  %v1000_v60 = vmul.f32 %v2196_v8, %v999_v12  ;;  %v1028_v58 = vand.u32 2147483647, %v4238_v34 }
 0x1e8   :  { %v1857_v14 = vsub.f32 %v985_v44, %v1625_v0  ;;  %2512 = vlog2.f32 %v1662_v36  ;;  %vm4287_vm11 = vcmp.lt.f32.partialorder %v1641_v57, 0.0004427343  ;;  %v1026_v54 = vadd.f32 1.0, %v1025_v10 }
 0x1e9   :  { %v2505_v37 = vpop.eup %2504  ;;  %v1665_v59 = vmul.f32 -0.5, %v4265_v18  ;;  %v1013_v31 = vadd.f32 1.0, %v4284_v15  ;;  %v1640_v30 = vmul.f32 %v1639_v42, %v1219_v46  ;;  %v4294_v39 = vsub.f32 0.0, %v4284_v15 }
 0x1ea   :  { %v2507_v55 = vpop.eup %2506  ;;  %v1921_v22 = vmul.f32 0.5, %v1857_v14  ;;  %v1646_v9 = vmul.f32 0.6931472, %v2505_v37  ;;  %v1012_v8 = vsel %vm4256_vm8, %v1009_v13, %v1006_v50  ;;  %v456_v51 = vmul.f32 %v4235_v45, %v328_v49 }
 0x1eb   :  { %v997_v16 = vmul.f32 0.6931472, %v2507_v55  ;;  %2514 = vlog2.f32 %v1013_v31  ;;  %vm4304_vm12 = vcmp.lt.f32.partialorder %v1028_v58, 0.0004427343  ;;  %v1653_v57 = vadd.f32 1.0, %v4294_v39 }
 0x1ec   :  { %v2509_v47 = vpop.eup %2508  ;;  %v1985_v12 = vmul.f32 %v4148_v2, %v1921_v22  ;;  %v1652_v32 = vsel %vm4260_vm9, %v1649_v7, %v1646_v9  ;;  %v455_v13 = vmul.f32 %v4240_v61, %v327_v24  ;;  %v1027_v49 = vmul.f32 %v4238_v34, %v1026_v54  ;;  %v2639_v2 = vld [vmem:[#allocation2 + $0x150] sm:$0xff]  ;;  %v2640_v22 = vld [vmem:[#allocation2 + $0x168] sm:$0xff] }
 0x1ed   :  { %v1860_v28 = vsub.f32 %v1012_v8, %v1652_v32  ;;  %v1637_v53 = vmul.f32 0.6931472, %v2509_v47  ;;  %v1666_v10 = vadd.f32 1.0, %v1665_v59  ;;  %v1016_v40 = vmul.f32 -0.5, %v4284_v15 }
 0x1ee   :  { %v2511_v63 = vpop.eup %2510  ;;  %v2049_v42 = vmul.f32 %v2639_v2, %v1985_v12  ;;  %2516 = vlog2.f32 %v1653_v57  ;;  %v1656_v7 = vmul.f32 -0.5, %v4294_v39  ;;  %v1003_v44 = vsel %vm4275_vm10, %v1000_v60, %v997_v16  ;;  %v2641_v57 = vld [vmem:[#allocation2 + $0x160] sm:$0xff] }
 0x1ef   :  { %v1924_v36 = vmul.f32 0.5, %v1860_v28  ;;  %v1643_v19 = vsel %vm4287_vm11, %v1640_v30, %v1637_v53  ;;  %v4319_v24 = vclamps-f32 %v456_v51, 0.999999  ;;  %v1668_v0 = vand.u32 2147483647, %v4265_v18 }
 0x1f0   :  { %2113 = vst [vmem:[#allocation5 + $0x150] sm:$0xff] %v2049_v42  ;;  %v1859_v34 = vsub.f32 %v1003_v44, %v1643_v19  ;;  %v1019_v50 = vand.u32 2147483647, %v4284_v15  ;;  %v4323_v14 = vclamps-f32 %v455_v13, 0.999999  ;;  %v1667_v54 = vmul.f32 %v1666_v10, %v4265_v18 }
 0x1f1   :  { %v1988_v58 = vmul.f32 %v4163_v43, %v1924_v36  ;;  %v1024_v37 = vmul.f32 0.6931472, %v2511_v63  ;;  %v1040_v1 = vadd.f32 1.0, %v4319_v24  ;;  %v1017_v59 = vadd.f32 1.0, %v1016_v40 }
 0x1f2   :  { %v2513_v60 = vpop.eup %2512  ;;  %v1923_v21 = vmul.f32 0.5, %v1859_v34  ;;  %v1657_v31 = vadd.f32 1.0, %v1656_v7  ;;  %v4329_v55 = vsub.f32 0.0, %v4319_v24  ;;  %v1031_v8 = vadd.f32 1.0, %v4323_v14 }
 0x1f3   :  { %v2052_v9 = vmul.f32 %v2640_v22, %v1988_v58  ;;  %v1664_v30 = vmul.f32 0.6931472, %v2513_v60  ;;  %2518 = vlog2.f32 %v1040_v1  ;;  %vm1669_vm13 = vcmp.lt.f32.partialorder %v1668_v0, 0.0004427343 }
 0x1f4   :  { %v1987_v43 = vmul.f32 %v4178_v17, %v1923_v21  ;;  %v1659_v18 = vand.u32 2147483647, %v4294_v39  ;;  %v1680_v16 = vadd.f32 1.0, %v4329_v55  ;;  %v1030_v47 = vsel %vm4304_vm12, %v1027_v49, %v1024_v37  ;;  %v2642_v37 = vld [vmem:[#allocation2 + $0x178] sm:$0xff] }
 0x1f5   :  { %v2515_v51 = vpop.eup %2514  ;;  %2116 = vst [vmem:[#allocation5 + $0x168] sm:$0xff] %v2052_v9  ;;  %v1670_v12 = vsel %vm1669_vm13, %v1667_v54, %v1664_v30  ;;  %v1043_v32 = vmul.f32 -0.5, %v4319_v24  ;;  %2520 = vrsqrt.f32 %v331_v6  ;;  %vm4340_vm14 = vcmp.lt.f32.partialorder %v1019_v50, 0.0004427343 }
 0x1f6   :  { %v2051_v13 = vmul.f32 %v2641_v57, %v1987_v43  ;;  %v1862_v28 = vsub.f32 %v1030_v47, %v1670_v12  ;;  %2522 = vlog2.f32 %v1680_v16  ;;  %v1015_v53 = vmul.f32 0.6931472, %v2515_v51 }
 0x1f7   :  { %v1018_v10 = vmul.f32 %v4284_v15, %v1017_v59  ;;  %v1658_v46 = vmul.f32 %v1657_v31, %v4294_v39  ;;  %2524 = vlog2.f32 %v1031_v8  ;;  %vm4346_vm15 = vcmp.lt.f32.partialorder %v1659_v18, 0.0004427343 }
 0x1f8   :  { %v2517_v49 = vpop.eup %2516  ;;  %2115 = vst [vmem:[#allocation5 + $0x160] sm:$0xff] %v2051_v13  ;;  %v1926_v63 = vmul.f32 0.5, %v1862_v28  ;;  %v4351_v42 = vsub.f32 0.0, %v4323_v14  ;;  %v458_v40 = vmul.f32 %v4252_v5, %v330_v35  ;;  %v1044_v36 = vadd.f32 1.0, %v1043_v32 }
 0x1f9   :  { %v1655_v7 = vmul.f32 0.6931472, %v2517_v49  ;;  %v1046_v15 = vand.u32 2147483647, %v4319_v24  ;;  %v1683_v39 = vmul.f32 -0.5, %v4329_v55  ;;  %v1034_v34 = vmul.f32 -0.5, %v4323_v14 }
 0x1fa   :  { %v1990_v44 = vmul.f32 %v4214_v41, %v1926_v63  ;;  %v1686_v19 = vand.u32 2147483647, %v4329_v55  ;;  %v1671_v0 = vadd.f32 1.0, %v4351_v42  ;;  %v1021_v50 = vsel %vm4340_vm14, %v1018_v10, %v1015_v53  ;;  %v2643_v53 = vld [vmem:[#allocation2 + $0x170] sm:$0xff] }
 0x1fb   :  { %v1661_v56 = vsel %vm4346_vm15, %v1658_v46, %v1655_v7  ;;  %v4366_v35 = vclamps-f32 %v458_v40, 0.999999  ;;  %v457_v58 = vmul.f32 %v4267_v48, %v329_v23  ;;  %v1037_v1 = vand.u32 2147483647, %v4323_v14 }
 0x1fc   :  { %v2054_v41 = vmul.f32 %v2642_v37, %v1990_v44  ;;  %v1861_v54 = vsub.f32 %v1021_v50, %v1661_v56  ;;  %2526 = vlog2.f32 %v1671_v0  ;;  %v1684_v21 = vadd.f32 1.0, %v1683_v39 }
 0x1fd   :  { %v2519_v60 = vpop.eup %2518  ;;  %v1674_v59 = vmul.f32 -0.5, %v4351_v42  ;;  %v1058_v31 = vadd.f32 1.0, %v4366_v35  ;;  %2528 = vrsqrt.f32 %v334_v25  ;;  %v1045_v27 = vmul.f32 %v4319_v24, %v1044_v36 }
 0x1fe   :  { %2118 = vst [vmem:[#allocation5 + $0x178] sm:$0xff] %v2054_v41  ;;  %v1925_v22 = vmul.f32 0.5, %v1861_v54  ;;  %vm4377_vm0 = vcmp.lt.f32.partialorder %v1046_v15, 0.0004427343  ;;  %v4382_v9 = vsub.f32 0.0, %v4366_v35  ;;  %v1035_v43 = vadd.f32 1.0, %v1034_v34 }
 0x1ff   :  { %v4384_v30 = vpop.eup %2520  ;;  %v1042_v8 = vmul.f32 0.6931472, %v2519_v60  ;;  %2530 = vlog2.f32 %v1058_v31  ;;  %v4386_v18 = vclamps-f32 %v457_v58, 0.999999  ;;  %vm4389_vm1 = vcmp.lt.f32.partialorder %v1686_v19, 0.0004427343 }
 0x200   :  { %v2523_v16 = vpop.eup %2522  ;;  %v1989_v51 = vmul.f32 %v4233_v38, %v1925_v22  ;;  %vm4393_vm2 = vcmp.lt.f32.partialorder %v1037_v1, 0.0004427343  ;;  %v1698_v12 = vadd.f32 1.0, %v4382_v9  ;;  %v1685_v13 = vmul.f32 %v1684_v21, %v4329_v55  ;;  %v2644_v31 = vld [vmem:[#allocation2 + $0x188] sm:$0xff] }
 0x201   :  { %v2525_v32 = vpop.eup %2524  ;;  %v1682_v57 = vmul.f32 0.6931472, %v2523_v16  ;;  %v1675_v28 = vadd.f32 1.0, %v1674_v59  ;;  %v1677_v17 = vand.u32 2147483647, %v4351_v42  ;;  %v1049_v46 = vadd.f32 1.0, %v4386_v18 }
 0x202   :  { %v2053_v10 = vmul.f32 %v2643_v53, %v1989_v51  ;;  %v1064_v38 = vand.u32 2147483647, %v4366_v35  ;;  %2532 = vlog2.f32 %v1698_v12  ;;  %v1048_v49 = vsel %vm4377_vm0, %v1045_v27, %v1042_v8 }
 0x203   :  { %v1688_v63 = vsel %vm4389_vm1, %v1685_v13, %v1682_v57  ;;  %v1036_v2 = vmul.f32 %v4323_v14, %v1035_v43  ;;  %v1061_v55 = vmul.f32 -0.5, %v4366_v35  ;;  %v1033_v7 = vmul.f32 0.6931472, %v2525_v32 }
 0x204   :  { %2117 = vst [vmem:[#allocation5 + $0x170] sm:$0xff] %v2053_v10  ;;  %v1864_v40 = vsub.f32 %v1048_v49, %v1688_v63  ;;  %2534 = vlog2.f32 %v1049_v46  ;;  %v1225_v36 = vsub.f32 0.0, %v4386_v18  ;;  %vm4409_vm3 = vcmp.lt.f32.partialorder %v1677_v17, 0.0004427343 }
 0x205   :  { %v1701_v39 = vmul.f32 -0.5, %v4382_v9  ;;  %v460_v44 = vmul.f32 %v4273_v11, %v332_v52  ;;  %v459_v14 = vmul.f32 %v4384_v30, %v331_v6  ;;  %v1676_v0 = vmul.f32 %v1675_v28, %v4351_v42 }
 0x206   :  { %v2527_v19 = vpop.eup %2526  ;;  %v1928_v34 = vmul.f32 0.5, %v1864_v40  ;;  %vm4421_vm4 = vcmp.lt.f32.partialorder %v1064_v38, 0.0004427343  ;;  %v1689_v56 = vadd.f32 1.0, %v1225_v36  ;;  %v1062_v41 = vadd.f32 1.0, %v1061_v55 }
 0x207   :  { %v4425_v58 = vpop.eup %2528  ;;  %v1673_v37 = vmul.f32 0.6931472, %v2527_v19  ;;  %v1052_v33 = vmul.f32 -0.5, %v4386_v18  ;;  %v4428_v52 = vclamps-f32 %v460_v44, 0.999999  ;;  %v1039_v6 = vsel %vm4393_vm2, %v1036_v2, %v1033_v7 }
 0x208   :  { %v1992_v4 = vmul.f32 %v4235_v45, %v1928_v34  ;;  %2536 = vlog2.f32 %v1689_v56  ;;  %v4433_v42 = vclamps-f32 %v459_v14, 0.999999  ;;  %v1702_v60 = vadd.f32 1.0, %v1701_v39  ;;  %v4472_v56 = vpop.xlane.xlu0 %263 }
 0x209   :  { %v2531_v54 = vpop.eup %2530  ;;  %v1679_v1 = vsel %vm4409_vm3, %v1676_v0, %v1673_v37  ;;  %v1692_v21 = vmul.f32 -0.5, %v1225_v36  ;;  %v1076_v59 = vadd.f32 1.0, %v4428_v52  ;;  %v1704_v23 = vand.u32 2147483647, %v4382_v9  ;;  %v4474_v37 = vpop.xlane.xlu1 %269 }
 0x20a   :  { %v2056_v22 = vmul.f32 %v2644_v31, %v1992_v4  ;;  %v1863_v27 = vsub.f32 %v1039_v6, %v1679_v1  ;;  %v1055_v45 = vand.u32 2147483647, %v4386_v18  ;;  %v1060_v8 = vmul.f32 0.6931472, %v2531_v54  ;;  %v2646_v1 = vld [vmem:[#allocation2 + $0x198] sm:$0xff] }
 0x20b   :  { %v1053_v43 = vadd.f32 1.0, %v1052_v33  ;;  %2538 = vlog2.f32 %v1076_v59  ;;  %v4441_v16 = vsub.f32 0.0, %v4428_v52  ;;  %v1063_v24 = vmul.f32 %v4366_v35, %v1062_v41 }
 0x20c   :  { %v2533_v51 = vpop.eup %2532  ;;  %2120 = vst [vmem:[#allocation5 + $0x188] sm:$0xff] %v2056_v22  ;;  %v1927_v47 = vmul.f32 0.5, %v1863_v27  ;;  %v1695_v12 = vand.u32 2147483647, %v1225_v36  ;;  %v1067_v32 = vadd.f32 1.0, %v4433_v42  ;;  %v1703_v13 = vmul.f32 %v1702_v60, %v4382_v9  ;;  %v2645_v9 = vld [vmem:[#allocation2 + $0x180] sm:$0xff] }
 0x20d   :  { %v1700_v57 = vmul.f32 0.6931472, %v2533_v51  ;;  %v1693_v28 = vadd.f32 1.0, %v1692_v21  ;;  %v1716_v17 = vadd.f32 1.0, %v4441_v16  ;;  %vm1705_vm5 = vcmp.lt.f32.partialorder %v1704_v23, 0.0004427343  ;;  %v4514_v38 = vpop.xlane.xlu1 %273 }
 0x20e   :  { %v2535_v53 = vpop.eup %2534  ;;  %v1991_v10 = vmul.f32 %v4240_v61, %v1927_v47  ;;  %vm4448_vm6 = vcmp.lt.f32.partialorder %v1055_v45, 0.0004427343  ;;  %v1079_v46 = vmul.f32 -0.5, %v4428_v52  ;;  %v1066_v35 = vsel %vm4421_vm4, %v1063_v24, %v1060_v8 }
 0x20f   :  { %v1706_v49 = vsel %vm1705_vm5, %v1703_v13, %v1700_v57  ;;  %v1054_v63 = vmul.f32 %v4386_v18, %v1053_v43  ;;  %2540 = vlog2.f32 %v1716_v17  ;;  %vm4456_vm7 = vcmp.lt.f32.partialorder %v1695_v12, 0.0004427343  ;;  %v4508_v17 = vpop.xlane.xlu0 %267 }
 0x210   :  { %v2055_v2 = vmul.f32 %v2645_v9, %v1991_v10  ;;  %v1866_v55 = vsub.f32 %v1066_v35, %v1706_v49  ;;  %2542 = vlog2.f32 %v1067_v32  ;;  %v1051_v61 = vmul.f32 0.6931472, %v2535_v53 }
 0x211   :  { %v1694_v7 = vmul.f32 %v1693_v28, %v1225_v36  ;;  %v1719_v15 = vmul.f32 -0.5, %v4441_v16  ;;  %v4462_v39 = vsub.f32 0.0, %v4433_v42  ;;  %v1080_v18 = vadd.f32 1.0, %v1079_v46 }
 0x212   :  { %v2537_v44 = vpop.eup %2536  ;;  %2119 = vst [vmem:[#allocation5 + $0x180] sm:$0xff] %v2055_v2  ;;  %v1930_v14 = vmul.f32 0.5, %v1866_v55  ;;  %v462_v19 = vmul.f32 %v4425_v58, %v334_v25  ;;  %2544 = vrsqrt.f32 %v333_v3  ;;  %v1082_v0 = vand.u32 2147483647, %v4428_v52 }
 0x213   :  { %v1691_v34 = vmul.f32 0.6931472, %v2537_v44  ;;  %v1070_v36 = vmul.f32 -0.5, %v4433_v42  ;;  %v1707_v50 = vadd.f32 1.0, %v4462_v39  ;;  %v1722_v29 = vand.u32 2147483647, %v4441_v16 }
 0x214   :  { %v1994_v41 = vmul.f32 %v4252_v5, %v1930_v14  ;;  %v4478_v33 = vclamps-f32 %v462_v19, 0.999999  ;;  %2546 = vrsqrt.f32 %v336_v20  ;;  %v1057_v4 = vsel %vm4448_vm6, %v1054_v63, %v1051_v61 }
 0x215   :  { %v2539_v25 = vpop.eup %2538  ;;  %v1697_v6 = vsel %vm4456_vm7, %v1694_v7, %v1691_v34  ;;  %v1720_v54 = vadd.f32 1.0, %v1719_v15  ;;  %2548 = vlog2.f32 %v1707_v50  ;;  %v335_v5 = vmax.f32 %v4472_v56, 1e-30 }
 0x216   :  { %v2058_v60 = vmul.f32 %v2646_v1, %v1994_v41  ;;  %v1865_v21 = vsub.f32 %v1057_v4, %v1697_v6  ;;  %v338_v59 = vmax.f32 %v4474_v37, 1e-30  ;;  %v1081_v31 = vmul.f32 %v4428_v52, %v1080_v18  ;;  %v2648_v1 = vld [vmem:[#allocation2 + $0x1a8] sm:$0xff] }
 0x217   :  { %vm4489_vm8 = vcmp.lt.f32.partialorder %v1082_v0, 0.0004427343  ;;  %v1710_v27 = vmul.f32 -0.5, %v4462_v39  ;;  %v1094_v23 = vadd.f32 1.0, %v4478_v33  ;;  %v1078_v8 = vmul.f32 0.6931472, %v2539_v25 }
 0x218   :  { %2122 = vst [vmem:[#allocation5 + $0x198] sm:$0xff] %v2058_v60  ;;  %v1929_v45 = vmul.f32 0.5, %v1865_v21  ;;  %v1071_v43 = vadd.f32 1.0, %v1070_v36  ;;  %v4496_v51 = vsub.f32 0.0, %v4478_v33  ;;  %v1721_v24 = vmul.f32 %v1720_v54, %v4441_v16  ;;  %v4558_v21 = vpop.xlane.xlu0 %271 }
 0x219   :  { %v2541_v47 = vpop.eup %2540  ;;  %vm4499_vm9 = vcmp.lt.f32.partialorder %v1722_v29, 0.0004427343  ;;  %v1073_v12 = vand.u32 2147483647, %v4433_v42  ;;  %2550 = vlog2.f32 %v1094_v23  ;;  %v1711_v53 = vadd.f32 1.0, %v1710_v27 }
 0x21a   :  { %v2543_v32 = vpop.eup %2542  ;;  %v1993_v57 = vmul.f32 %v4267_v48, %v1929_v45  ;;  %v1718_v13 = vmul.f32 0.6931472, %v2541_v47  ;;  %v1734_v28 = vadd.f32 1.0, %v4496_v51  ;;  %2552 = vrsqrt.f32 %v335_v5  ;;  %v2647_v48 = vld [vmem:[#allocation2 + $0x190] sm:$0xff]  ;;  %v4569_v45 = vpop.xlane.xlu1 %277 }
 0x21b   :  { %v1713_v16 = vand.u32 2147483647, %v4462_v39  ;;  %v1097_v10 = vmul.f32 -0.5, %v4478_v33  ;;  %2554 = vrsqrt.f32 %v338_v59  ;;  %v1084_v49 = vsel %vm4489_vm8, %v1081_v31, %v1078_v8 }
 0x21c   :  { %v4516_v46 = vpop.eup %2544  ;;  %v2057_v35 = vmul.f32 %v2647_v48, %v1993_v57  ;;  %v1724_v63 = vsel %vm4499_vm9, %v1721_v24, %v1718_v13  ;;  %2556 = vlog2.f32 %v1734_v28  ;;  %v1069_v2 = vmul.f32 0.6931472, %v2543_v32  ;;  %v2649_v48 = vld [vmem:[#allocation2 + $0x1a0] sm:$0xff] }
 0x21d   :  { %v1868_v9 = vsub.f32 %v1084_v49, %v1724_v63  ;;  %v461_v55 = vmul.f32 %v4516_v46, %v333_v3  ;;  %v337_v40 = vmax.f32 %v4508_v17, 1e-30  ;;  %v1072_v7 = vmul.f32 %v4433_v42, %v1071_v43 }
 0x21e   :  { %v4526_v61 = vpop.eup %2546  ;;  %2121 = vst [vmem:[#allocation5 + $0x190] sm:$0xff] %v2057_v35  ;;  %vm4529_vm10 = vcmp.lt.f32.partialorder %v1073_v12, 0.0004427343  ;;  %v1737_v44 = vmul.f32 -0.5, %v4496_v51  ;;  %v340_v14 = vmax.f32 %v4514_v38, 1e-30  ;;  %v1712_v0 = vmul.f32 %v1711_v53, %v4462_v39 }
 0x21f   :  { %v2549_v18 = vpop.eup %2548  ;;  %v1932_v19 = vmul.f32 0.5, %v1868_v9  ;;  %vm4535_vm11 = vcmp.lt.f32.partialorder %v1713_v16, 0.0004427343  ;;  %v4539_v3 = vclamps-f32 %v461_v55, 0.999999  ;;  %v464_v42 = vmul.f32 %v4526_v61, %v336_v20  ;;  %v4600_v9 = vpop.xlane.xlu0 %275 }
 0x220   :  { %v1709_v34 = vmul.f32 0.6931472, %v2549_v18  ;;  %v1098_v36 = vadd.f32 1.0, %v1097_v10  ;;  %v1100_v50 = vand.u32 2147483647, %v4478_v33  ;;  %v1075_v29 = vsel %vm4529_vm10, %v1072_v7, %v1069_v2 }
 0x221   :  { %v1996_v41 = vmul.f32 %v4273_v11, %v1932_v19  ;;  %v1740_v25 = vand.u32 2147483647, %v4496_v51  ;;  %v1085_v4 = vadd.f32 1.0, %v4539_v3  ;;  %v1738_v6 = vadd.f32 1.0, %v1737_v44 }
 0x222   :  { %v1715_v26 = vsel %vm4535_vm11, %v1712_v0, %v1709_v34  ;;  %v4554_v20 = vsub.f32 0.0, %v4539_v3  ;;  %v4556_v39 = vclamps-f32 %v464_v42, 0.999999  ;;  %vm4562_vm12 = vcmp.lt.f32.partialorder %v1100_v50, 0.0004427343 }
 0x223   :  { %v2551_v54 = vpop.eup %2550  ;;  %v2060_v60 = vmul.f32 %v2648_v1, %v1996_v41  ;;  %v1867_v11 = vsub.f32 %v1075_v29, %v1715_v26  ;;  %2558 = vlog2.f32 %v1085_v4  ;;  %v1099_v47 = vmul.f32 %v4478_v33, %v1098_v36 }
 0x224   :  { %v4560_v31 = vpop.eup %2552  ;;  %v1096_v22 = vmul.f32 0.6931472, %v2551_v54  ;;  %v1725_v23 = vadd.f32 1.0, %v4554_v20  ;;  %2560 = vrsqrt.f32 %v337_v40  ;;  %v1112_v24 = vadd.f32 1.0, %v4556_v39 }
 0x225   :  { %v4571_v8 = vpop.eup %2554  ;;  %2124 = vst [vmem:[#allocation5 + $0x1a8] sm:$0xff] %v2060_v60  ;;  %v1931_v43 = vmul.f32 0.5, %v1867_v11  ;;  %2562 = vrsqrt.f32 %v340_v14  ;;  %v1739_v12 = vmul.f32 %v1738_v6, %v4496_v51  ;;  %vm4578_vm13 = vcmp.lt.f32.partialorder %v1740_v25, 0.0004427343  ;;  %v2650_v6 = vld [vmem:[#allocation2 + $0x1b8] sm:$0xff] }
 0x226   :  { %v2557_v52 = vpop.eup %2556  ;;  %2564 = vlog2.f32 %v1725_v23  ;;  %v339_v57 = vmax.f32 %v4558_v21, 1e-30  ;;  %v1088_v33 = vmul.f32 -0.5, %v4539_v3  ;;  %v342_v53 = vmax.f32 %v4569_v45, 1e-30 }
 0x227   :  { %v1995_v13 = vmul.f32 %v4384_v30, %v1931_v43  ;;  %v1736_v28 = vmul.f32 0.6931472, %v2557_v52  ;;  %v1102_v16 = vsel %vm4562_vm12, %v1099_v47, %v1096_v22  ;;  %v1728_v10 = vmul.f32 -0.5, %v4554_v20 }
 0x228   :  { %2566 = vlog2.f32 %v1112_v24  ;;  %v4590_v51 = vsub.f32 0.0, %v4556_v39  ;;  %v463_v30 = vmul.f32 %v4560_v31, %v335_v5  ;;  %v466_v63 = vmul.f32 %v4571_v8, %v338_v59 }
 0x229   :  { %v2059_v35 = vmul.f32 %v2649_v48, %v1995_v13  ;;  %v1742_v49 = vsel %vm4578_vm13, %v1739_v12, %v1736_v28  ;;  %v1091_v7 = vand.u32 2147483647, %v4539_v3  ;;  %v1115_v15 = vmul.f32 -0.5, %v4556_v39 }
 0x22a   :  { %v1870_v2 = vsub.f32 %v1102_v16, %v1742_v49  ;;  %v1752_v55 = vadd.f32 1.0, %v4590_v51  ;;  %v4605_v44 = vclamps-f32 %v463_v30, 0.999999  ;;  %2568 = vrsqrt.f32 %v339_v57 }
 0x22b   :  { %2123 = vst [vmem:[#allocation5 + $0x1a0] sm:$0xff] %v2059_v35  ;;  %v1089_v5 = vadd.f32 1.0, %v1088_v33  ;;  %v341_v37 = vmax.f32 %v4600_v9, 1e-30  ;;  %v1729_v18 = vadd.f32 1.0, %v1728_v10  ;;  %v1755_v36 = vmul.f32 -0.5, %v4590_v51 }
 0x22c   :  { %v1934_v56 = vmul.f32 0.5, %v1870_v2  ;;  %2570 = vlog2.f32 %v1752_v55  ;;  %v1103_v19 = vadd.f32 1.0, %v4605_v44  ;;  %v4611_v62 = vclamps-f32 %v466_v63, 0.999999 }
 0x22d   :  { %v2559_v59 = vpop.eup %2558  ;;  %2572 = vrsqrt.f32 %v342_v53  ;;  %v1731_v0 = vand.u32 2147483647, %v4554_v20  ;;  %v4621_v50 = vsub.f32 0.0, %v4605_v44  ;;  %vm4625_vm14 = vcmp.lt.f32.partialorder %v1091_v7, 0.0004427343 }
 0x22e   :  { %v4615_v42 = vpop.eup %2560  ;;  %v1998_v34 = vmul.f32 %v4425_v58, %v1934_v56  ;;  %v1087_v29 = vmul.f32 0.6931472, %v2559_v59  ;;  %v1116_v4 = vadd.f32 1.0, %v1115_v15  ;;  %2574 = vlog2.f32 %v1103_v19 }
 0x22f   :  { %v4623_v41 = vpop.eup %2562  ;;  %v1090_v58 = vmul.f32 %v4539_v3, %v1089_v5  ;;  %v1118_v1 = vand.u32 2147483647, %v4556_v39  ;;  %v1743_v60 = vadd.f32 1.0, %v4621_v50  ;;  %v1730_v22 = vmul.f32 %v1729_v18, %v4554_v20 }
 0x230   :  { %v2565_v26 = vpop.eup %2564  ;;  %v2062_v54 = vmul.f32 %v2650_v6, %v1998_v34  ;;  %v1130_v27 = vadd.f32 1.0, %v4611_v62  ;;  %v465_v23 = vmul.f32 %v4615_v42, %v337_v40  ;;  %vm1732_vm15 = vcmp.lt.f32.partialorder %v1731_v0, 0.0004427343  ;;  %v2651_v34 = vld [vmem:[#allocation2 + $0x1b0] sm:$0xff] }
 0x231   :  { %v1727_v11 = vmul.f32 0.6931472, %v2565_v26  ;;  %v1756_v47 = vadd.f32 1.0, %v1755_v36  ;;  %v1758_v24 = vand.u32 2147483647, %v4590_v51  ;;  %2576 = vlog2.f32 %v1743_v60 }
 0x232   :  { %v2567_v43 = vpop.eup %2566  ;;  %2126 = vst [vmem:[#allocation5 + $0x1b8] sm:$0xff] %v2062_v54  ;;  %v1093_v3 = vsel %vm4625_vm14, %v1090_v58, %v1087_v29  ;;  %v1117_v12 = vmul.f32 %v4556_v39, %v1116_v4  ;;  %v1106_v20 = vmul.f32 -0.5, %v4605_v44  ;;  %vm4642_vm0 = vcmp.lt.f32.partialorder %v1118_v1, 0.0004427343 }
 0x233   :  { %v1733_v52 = vsel %vm1732_vm15, %v1730_v22, %v1727_v11  ;;  %v1746_v40 = vmul.f32 -0.5, %v4621_v50  ;;  %v468_v13 = vmul.f32 %v4623_v41, %v340_v14  ;;  %v1114_v33 = vmul.f32 0.6931472, %v2567_v43 }
 0x234   :  { %v1869_v32 = vsub.f32 %v1093_v3, %v1733_v52  ;;  %v4650_v28 = vpop.eup %2568  ;;  %2578 = vlog2.f32 %v1130_v27  ;;  %v4653_v16 = vsub.f32 0.0, %v4611_v62  ;;  %v4655_v39 = vclamps-f32 %v465_v23, 0.999999 }
 0x235   :  { %v1757_v35 = vmul.f32 %v1756_v47, %v4590_v51  ;;  %vm4658_vm1 = vcmp.lt.f32.partialorder %v1758_v24, 0.0004427343  ;;  %v1109_v38 = vand.u32 2147483647, %v4605_v44  ;;  %v1107_v63 = vadd.f32 1.0, %v1106_v20 }
 0x236   :  { %v2571_v10 = vpop.eup %2570  ;;  %v1933_v48 = vmul.f32 0.5, %v1869_v32  ;;  %v1749_v2 = vand.u32 2147483647, %v4621_v50  ;;  %v1770_v55 = vadd.f32 1.0, %v4653_v16  ;;  %v1747_v15 = vadd.f32 1.0, %v1746_v40 }
 0x237   :  { %v4663_v14 = vpop.eup %2572  ;;  %v1754_v30 = vmul.f32 0.6931472, %v2571_v10  ;;  %v1133_v56 = vmul.f32 -0.5, %v4611_v62  ;;  %v1121_v51 = vadd.f32 1.0, %v4655_v39  ;;  %v1120_v59 = vsel %vm4642_vm0, %v1117_v12, %v1114_v33 }
 0x238   :  { %v1997_v7 = vmul.f32 %v4516_v46, %v1933_v48  ;;  %v2575_v5 = vpop.eup %2574  ;;  %2580 = vlog2.f32 %v1770_v55  ;;  %v4674_v19 = vclamps-f32 %v468_v13, 0.999999  ;;  %vm4676_vm2 = vcmp.lt.f32.partialorder %v1109_v38, 0.0004427343 }
 0x239   :  { %v1760_v18 = vsel %vm4658_vm1, %v1757_v35, %v1754_v30  ;;  %v1136_v29 = vand.u32 2147483647, %v4611_v62  ;;  %v1105_v25 = vmul.f32 0.6931472, %v2575_v5  ;;  %v1773_v4 = vmul.f32 -0.5, %v4653_v16 }
 0x23a   :  { %v2061_v0 = vmul.f32 %v2651_v34, %v1997_v7  ;;  %v1872_v36 = vsub.f32 %v1120_v59, %v1760_v18  ;;  %2582 = vlog2.f32 %v1121_v51  ;;  %v4683_v26 = vsub.f32 0.0, %v4655_v39 }
 0x23b   :  { %v2577_v6 = vpop.eup %2576  ;;  %v1108_v58 = vmul.f32 %v4605_v44, %v1107_v63  ;;  %vm4686_vm3 = vcmp.lt.f32.partialorder %v1749_v2, 0.0004427343  ;;  %v1134_v60 = vadd.f32 1.0, %v1133_v56  ;;  %v1748_v22 = vmul.f32 %v1747_v15, %v4621_v50  ;;  %v2653_v56 = vld [vmem:[#allocation2 + $0x1c0] sm:$0xff] }
 0x23c   :  { %2125 = vst [vmem:[#allocation5 + $0x1b0] sm:$0xff] %v2061_v0  ;;  %v1936_v54 = vmul.f32 0.5, %v1872_v36  ;;  %v1745_v11 = vmul.f32 0.6931472, %v2577_v6  ;;  %v1761_v27 = vadd.f32 1.0, %v4683_v26  ;;  %v1148_v23 = vadd.f32 1.0, %v4674_v19 }
 0x23d   :  { %vm4694_vm4 = vcmp.lt.f32.partialorder %v1136_v29, 0.0004427343  ;;  %v1776_v44 = vand.u32 2147483647, %v4653_v16  ;;  %v467_v24 = vmul.f32 %v4650_v28, %v339_v57  ;;  %v1111_v50 = vsel %vm4676_vm2, %v1108_v58, %v1105_v25 }
 0x23e   :  { %v2000_v43 = vmul.f32 %v4526_v61, %v1936_v54  ;;  %v2579_v3 = vpop.eup %2578  ;;  %v1751_v52 = vsel %vm4686_vm3, %v1748_v22, %v1745_v11  ;;  %v1774_v12 = vadd.f32 1.0, %v1773_v4  ;;  %2584 = vlog2.f32 %v1761_v27  ;;  %v2652_v61 = vld [vmem:[#allocation2 + $0x1c8] sm:$0xff] }
 0x23f   :  { %v1871_v32 = vsub.f32 %v1111_v50, %v1751_v52  ;;  %v1135_v17 = vmul.f32 %v4611_v62, %v1134_v60  ;;  %v470_v21 = vmul.f32 %v4663_v14, %v342_v53  ;;  %v1124_v57 = vmul.f32 -0.5, %v4655_v39  ;;  %v2656_v54 = vld [vmem:[#allocation2 + $0x1e8] sm:$0xff] }
 0x240   :  { %v2064_v20 = vmul.f32 %v2652_v61, %v2000_v43  ;;  %v1764_v40 = vmul.f32 -0.5, %v4683_v26  ;;  %2586 = vlog2.f32 %v1148_v23  ;;  %v4713_v13 = vsub.f32 0.0, %v4674_v19 }
 0x241   :  { %v1935_v33 = vmul.f32 0.5, %v1871_v32  ;;  %v1132_v10 = vmul.f32 0.6931472, %v2579_v3  ;;  %v4715_v48 = vclamps-f32 %v467_v24, 0.999999  ;;  %2588 = vrsqrt.f32 %v341_v37  ;;  %v2654_v3 = vld [vmem:[#allocation2 + $0x1d8] sm:$0xff] }
 0x242   :  { %2128 = vst [vmem:[#allocation5 + $0x1c8] sm:$0xff] %v2064_v20  ;;  %v2581_v62 = vpop.eup %2580  ;;  %v1775_v45 = vmul.f32 %v1774_v12, %v4653_v16  ;;  %vm4720_vm5 = vcmp.lt.f32.partialorder %v1776_v44, 0.0004427343  ;;  %v1127_v35 = vand.u32 2147483647, %v4655_v39  ;;  %v1788_v49 = vadd.f32 1.0, %v4713_v13 }
 0x243   :  { %v1999_v38 = vmul.f32 %v4560_v31, %v1935_v33  ;;  %v1772_v30 = vmul.f32 0.6931472, %v2581_v62  ;;  %v1139_v63 = vadd.f32 1.0, %v4715_v48  ;;  %v4728_v2 = vclamps-f32 %v470_v21, 0.999999 }
 0x244   :  { %v2583_v55 = vpop.eup %2582  ;;  %v1125_v7 = vadd.f32 1.0, %v1124_v57  ;;  %v1767_v15 = vand.u32 2147483647, %v4683_v26  ;;  %v1151_v16 = vmul.f32 -0.5, %v4674_v19  ;;  %2590 = vlog2.f32 %v1788_v49 }
 0x245   :  { %v2063_v51 = vmul.f32 %v2653_v56, %v1999_v38  ;;  %v1138_v5 = vsel %vm4694_vm4, %v1135_v17, %v1132_v10  ;;  %v1778_v31 = vsel %vm4720_vm5, %v1775_v45, %v1772_v30  ;;  %v1765_v59 = vadd.f32 1.0, %v1764_v40  ;;  %v2655_v30 = vld [vmem:[#allocation2 + $0x1d0] sm:$0xff] }
 0x246   :  { %v1874_v18 = vsub.f32 %v1138_v5, %v1778_v31  ;;  %vm4736_vm6 = vcmp.lt.f32.partialorder %v1127_v35, 0.0004427343  ;;  %v1791_v0 = vmul.f32 -0.5, %v4713_v13  ;;  %v1123_v36 = vmul.f32 0.6931472, %v2583_v55 }
 0x247   :  { %2127 = vst [vmem:[#allocation5 + $0x1c0] sm:$0xff] %v2063_v51  ;;  %2592 = vlog2.f32 %v1139_v63  ;;  %v4742_v46 = vsub.f32 0.0, %v4715_v48  ;;  %v1166_v29 = vadd.f32 1.0, %v4728_v2  ;;  %v1126_v6 = vmul.f32 %v4655_v39, %v1125_v7 }
 0x248   :  { %v2585_v25 = vpop.eup %2584  ;;  %v1938_v4 = vmul.f32 0.5, %v1874_v18  ;;  %vm4746_vm7 = vcmp.lt.f32.partialorder %v1767_v15, 0.0004427343  ;;  %v1152_v58 = vadd.f32 1.0, %v1151_v16  ;;  %v1766_v60 = vmul.f32 %v1765_v59, %v4683_v26 }
 0x249   :  { %v1763_v1 = vmul.f32 0.6931472, %v2585_v25  ;;  %v1779_v11 = vadd.f32 1.0, %v4742_v46  ;;  %v4753_v22 = vsub.f32 0.0, %v4728_v2  ;;  %v1154_v43 = vand.u32 2147483647, %v4674_v19 }
 0x24a   :  { %v2587_v27 = vpop.eup %2586  ;;  %v2002_v23 = vmul.f32 %v4571_v8, %v1938_v4  ;;  %v1794_v39 = vand.u32 2147483647, %v4713_v13  ;;  %2594 = vlog2.f32 %v1166_v29  ;;  %v1129_v44 = vsel %vm4736_vm6, %v1126_v6, %v1123_v36 }
 0x24b   :  { %v4758_v47 = vpop.eup %2588  ;;  %v1769_v26 = vsel %vm4746_vm7, %v1766_v60, %v1763_v1  ;;  %v1792_v24 = vadd.f32 1.0, %v1791_v0  ;;  %2596 = vlog2.f32 %v1779_v11  ;;  %v1142_v8 = vmul.f32 -0.5, %v4715_v48 }
 0x24c   :  { %v2066_v50 = vmul.f32 %v2654_v3, %v2002_v23  ;;  %v1873_v52 = vsub.f32 %v1129_v44, %v1769_v26  ;;  %v1150_v12 = vmul.f32 0.6931472, %v2587_v27  ;;  %v1782_v61 = vmul.f32 -0.5, %v4742_v46 }
 0x24d   :  { %v1806_v20 = vadd.f32 1.0, %v4753_v22  ;;  %v1153_v21 = vmul.f32 %v4674_v19, %v1152_v58  ;;  %vm4768_vm8 = vcmp.lt.f32.partialorder %v1154_v43, 0.0004427343  ;;  %v469_v40 = vmul.f32 %v4758_v47, %v341_v37 }
 0x24e   :  { %v2591_v32 = vpop.eup %2590  ;;  %2130 = vst [vmem:[#allocation5 + $0x1d8] sm:$0xff] %v2066_v50  ;;  %v1937_v17 = vmul.f32 0.5, %v1873_v52  ;;  %v1793_v10 = vmul.f32 %v1792_v24, %v4713_v13  ;;  %vm1795_vm9 = vcmp.lt.f32.partialorder %v1794_v39, 0.0004427343  ;;  %v1143_v45 = vadd.f32 1.0, %v1142_v8 }
 0x24f   :  { %v1790_v33 = vmul.f32 0.6931472, %v2591_v32  ;;  %2598 = vlog2.f32 %v1806_v20  ;;  %v1145_v53 = vand.u32 2147483647, %v4715_v48  ;;  %v4778_v35 = vclamps-f32 %v469_v40, 0.999999 }
 0x250   :  { %v2001_v62 = vmul.f32 %v4615_v42, %v1937_v17  ;;  %v1156_v49 = vsel %vm4768_vm8, %v1153_v21, %v1150_v12  ;;  %v1783_v9 = vadd.f32 1.0, %v1782_v61  ;;  %v1169_v37 = vmul.f32 -0.5, %v4728_v2  ;;  %v2657_v61 = vld [vmem:[#allocation2 + $0x1e0] sm:$0xff] }
 0x251   :  { %v2593_v19 = vpop.eup %2592  ;;  %v1796_v38 = vsel %vm1795_vm9, %v1793_v10, %v1790_v33  ;;  %v1809_v55 = vmul.f32 -0.5, %v4753_v22  ;;  %v1157_v42 = vadd.f32 1.0, %v4778_v35  ;;  %v1785_v7 = vand.u32 2147483647, %v4742_v46 }
 0x252   :  { %v2065_v63 = vmul.f32 %v2655_v30, %v2001_v62  ;;  %v1876_v13 = vsub.f32 %v1156_v49, %v1796_v38  ;;  %v1237_v15 = vsub.f32 0.0, %v4778_v35  ;;  %v1141_v51 = vmul.f32 0.6931472, %v2593_v19 }
 0x253   :  { %2600 = vlog2.f32 %v1157_v42  ;;  %v1144_v31 = vmul.f32 %v4715_v48, %v1143_v45  ;;  %vm4788_vm10 = vcmp.lt.f32.partialorder %v1145_v53, 0.0004427343  ;;  %v1170_v18 = vadd.f32 1.0, %v1169_v37 }
 0x254   :  { %v2595_v16 = vpop.eup %2594  ;;  %2129 = vst [vmem:[#allocation5 + $0x1d0] sm:$0xff] %v2065_v63  ;;  %v1940_v56 = vmul.f32 0.5, %v1876_v13  ;;  %v1797_v34 = vadd.f32 1.0, %v1237_v15  ;;  %v1784_v29 = vmul.f32 %v1783_v9, %v4742_v46  ;;  %v1810_v25 = vadd.f32 1.0, %v1809_v55  ;;  %v2659_v9 = vld [vmem:[#allocation2 + $0x1f0] sm:$0xff] }
 0x255   :  { %v2597_v5 = vpop.eup %2596  ;;  %vm1786_vm11 = vcmp.lt.f32.partialorder %v1785_v7, 0.0004427343  ;;  %v1172_v4 = vand.u32 2147483647, %v4728_v2  ;;  %v1812_v6 = vand.u32 2147483647, %v4753_v22  ;;  %v1147_v58 = vsel %vm4788_vm10, %v1144_v31, %v1141_v51 }
 0x256   :  { %v2004_v0 = vmul.f32 %v4623_v41, %v1940_v56  ;;  %v1781_v36 = vmul.f32 0.6931472, %v2597_v5  ;;  %2602 = vlog2.f32 %v1797_v34  ;;  %v1168_v60 = vmul.f32 0.6931472, %v2595_v16 }
 0x257   :  { %v1171_v41 = vmul.f32 %v4728_v2, %v1170_v18  ;;  %v1811_v23 = vmul.f32 %v1810_v25, %v4753_v22  ;;  %v1160_v43 = vmul.f32 -0.5, %v4778_v35  ;;  %v1800_v39 = vmul.f32 -0.5, %v1237_v15 }
 0x258   :  { %v2068_v48 = vmul.f32 %v2656_v54, %v2004_v0  ;;  %v1787_v1 = vsel %vm1786_vm11, %v1784_v29, %v1781_v36  ;;  %vm1173_vm12 = vcmp.lt.f32.partialorder %v1172_v4, 0.0004427343  ;;  %vm1813_vm13 = vcmp.lt.f32.partialorder %v1812_v6, 0.0004427343 }
 0x259   :  { %v2599_v11 = vpop.eup %2598  ;;  %v1875_v27 = vsub.f32 %v1147_v58, %v1787_v1  ;;  %v1174_v26 = vsel %vm1173_vm12, %v1171_v41, %v1168_v60  ;;  %v1161_v8 = vadd.f32 1.0, %v1160_v43  ;;  %v1801_v12 = vadd.f32 1.0, %v1800_v39 }
 0x25a   :  { %2132 = vst [vmem:[#allocation5 + $0x1e8] sm:$0xff] %v2068_v48  ;;  %v1808_v46 = vmul.f32 0.6931472, %v2599_v11  ;;  %v1163_v32 = vand.u32 2147483647, %v4778_v35 }
 0x25b   :  { %v1939_v44 = vmul.f32 0.5, %v1875_v27  ;;  %v1803_v22 = vand.u32 2147483647, %v1237_v15  ;;  %v1162_v40 = vmul.f32 %v4778_v35, %v1161_v8  ;;  %v1802_v10 = vmul.f32 %v1801_v12, %v1237_v15 }
 0x25c   :  { %v1814_v24 = vsel %vm1813_vm13, %v1811_v23, %v1808_v46  ;;  %vm1164_vm14 = vcmp.lt.f32.partialorder %v1163_v32, 0.0004427343 }
 0x25d   :  { %v2003_v3 = vmul.f32 %v4650_v28, %v1939_v44  ;;  %v1878_v50 = vsub.f32 %v1174_v26, %v1814_v24  ;;  %v2601_v52 = vpop.eup %2600  ;;  %v2658_v28 = vld [vmem:[#allocation2 + $0x1f8] sm:$0xff]  ;;  %vm1804_vm15 = vcmp.lt.f32.partialorder %v1803_v22, 0.0004427343 }
 0x25e   :  { %v1159_v17 = vmul.f32 0.6931472, %v2601_v52 }
 0x25f   :  { %v2067_v2 = vmul.f32 %v2657_v61, %v2003_v3  ;;  %v1942_v20 = vmul.f32 0.5, %v1878_v50 }
 0x260   :  { %v2603_v21 = vpop.eup %2602  ;;  %v1165_v45 = vsel %vm1164_vm14, %v1162_v40, %v1159_v17 }
 0x261   :  { %2131 = vst [vmem:[#allocation5 + $0x1e0] sm:$0xff] %v2067_v2  ;;  %v2006_v57 = vmul.f32 %v4663_v14, %v1942_v20  ;;  %v1799_v33 = vmul.f32 0.6931472, %v2603_v21 }
 0x263   :  { %v2070_v62 = vmul.f32 %v2658_v28, %v2006_v57  ;;  %v1805_v53 = vsel %vm1804_vm15, %v1802_v10, %v1799_v33 }
 0x264   :  { %v1877_v19 = vsub.f32 %v1165_v45, %v1805_v53 }
 0x265   :  { %2134 = vst [vmem:[#allocation5 + $0x1f8] sm:$0xff] %v2070_v62 }
 0x266   :  { %v1941_v49 = vmul.f32 0.5, %v1877_v19 }
 0x268   :  { %v2005_v38 = vmul.f32 %v4758_v47, %v1941_v49 }
 0x26a   :  { %v2069_v37 = vmul.f32 %v2659_v9, %v2005_v38 }
 0x26c   :  { %2133 = vst [vmem:[#allocation5 + $0x1f0] sm:$0xff] %v2069_v37 }
 0x26d   :  { %2693 = shalt.err (!%p2690_p12)
}
 0x26e   :  { %s2694_s24 = scalar_lea.hbm %s4822_s1, 8192 }
 0x26f   :  { %p2695_p13 = scmp.ne.s32.totalorder %s4822_s1, %s2694_s24  ;;  %p2698_p0 = scmp.lt.u32.totalorder %s2694_s24, %s4822_s1 }
 0x271   :  { %p2700_p1 = pnand %p2698_p0, %p2695_p13 }
 0x273   :  { %2703 = shalt.err (!%p2700_p1)
}
 0x274   :  { %2146 = dma.vmem_to_hbm [thread:$0]  %s2141_s20, 8192, %s4822_s1, [#allocation4], %s2709_s16, %s2709_s16, %s2710_s17  }
 0x275   :  { %2706 = dma.done.wait [#allocation4], 8192  }
 0x276   :  { %2707 = vsyncadd [#allocation4], 4294959104 }
 0x277   :  { %2150 = vsyncpa [#allocation3], 1 }
 0x278   :  { %2151 = vsyncpa [#allocation4], 1 }

</bundles_post_ra>
